<compile_context>
chip_gen: v7x
topology: tpu7x:2x2x1
jax: 0.10.0
libtpu: 0.0.40
codegen_flags: <defaults>
</compile_context>

<pallas_src>
import jax
import jax.numpy as jnp
import numpy as np
from jax import lax
from jax.experimental import pallas as pl
from jax.experimental.pallas import tpu as pltpu

KH = KW = 7      # Conv_Y kernel size
DIL = 2          # Conv_Y dilation
PAD = 6          # Conv_Y padding -> output spatial size == input spatial size
LN_EPS = 1e-5    # nn.LayerNorm default eps


def _tap_mask(H, W):
    """(KH*KW, H*W) {0,1} mask: tap (kh,kw) is valid at output position p=(h,w) iff
    the dilated input coordinate (h + kh*DIL - PAD, w + kw*DIL - PAD) is in-bounds."""
    hh = np.arange(H).reshape(H, 1)
    ww = np.arange(W).reshape(1, W)
    rows = []
    for kh in range(KH):
        for kw in range(KW):
            dh, dw = kh * DIL - PAD, kw * DIL - PAD
            ok = (hh + dh >= 0) & (hh + dh < H) & (ww + dw >= 0) & (ww + dw < W)
            rows.append(ok.reshape(-1))
    return jnp.asarray(np.stack(rows).astype(np.float32), dtype=jnp.bfloat16)


def global_context_block(x, tp):
    """x: (B, C, H, W) float32 (NCHW, as in PyTorch).  tp: torch-layout params."""
    B, C, H, W = x.shape
    HW = H * W
    KK = KH * KW
    Cout = tp["w1"].shape[0]

    # ---- glue: reshape / transpose / cast the PyTorch-layout weights ----
    wk = tp["wk"].reshape(1, C)                        # Conv_key weight (1,C,1,1)
    bk = tp["bk"].reshape(1, 1)
    w1 = tp["w1"].reshape(Cout, C)                     # Conv_value[0] (Cout,C,1,1)
    b1 = tp["b1"].reshape(Cout, 1)
    gamma = tp["gamma"].reshape(Cout, 1)               # LayerNorm([Cout,1,1])
    beta = tp["beta"].reshape(Cout, 1)
    w2 = tp["w2"].reshape(C, Cout)                     # Conv_value[3] (C,Cout,1,1)
    b2 = tp["b2"].reshape(C, 1)
    # Conv_Y weight OIHW (C,C,KH,KW) -> (C_out, KH*KW*C_in), bf16 for the MXU.
    wy_t = jnp.transpose(tp["wy"], (0, 2, 3, 1)).reshape(C, KK * C).astype(jnp.bfloat16)
    by = tp["by"].reshape(C, 1)
    mask = _tap_mask(H, W)                             # (KK, HW) bf16 {0,1}

    # Lane extension so every dilated tap is a static, in-bounds lane slice.
    ext = ((PAD * W + PAD + 127) // 128) * 128         # 128 for H=W=16 (aligned)
    ywidth = 2 * ext + HW

    def kernel(x_ref, mask_ref, wk_ref, bk_ref, w1_ref, b1_ref, g_ref, bt_ref,
               w2_ref, b2_ref, wyt_ref, by_ref, o_ref, yext_ref, col_ref):
        xf = x_ref[...].reshape(C, HW)                               # (C, HW) f32

        # ---- Conv_key (1x1, C->1) + softmax over spatial, lane-dense (1, HW) ----
        logits = jnp.dot(wk_ref[...], xf,
                         preferred_element_type=jnp.float32) + bk_ref[...]   # (1, HW)
        m = jnp.max(logits, axis=1, keepdims=True)                   # (1, 1)
        pexp = jnp.exp(logits - m)                                   # (1, HW)
        denom = jnp.sum(pexp, axis=1, keepdims=True)                 # (1, 1)

        # ---- global context vector: qk[c] = sum_p x[c,p] * attn[p]  (C, 1) ----
        # lane-dense multiply + lane reduce (no 256-step cross-sublane reduce).
        qk = jnp.sum(xf * pexp, axis=1, keepdims=True) / denom       # (C, 1)

        # ---- Conv_value: 1x1 -> LayerNorm([Cout,1,1]) -> ReLU -> 1x1 (all f32) ----
        v = jnp.dot(w1_ref[...], qk, preferred_element_type=jnp.float32) + b1_ref[...]
        mu = jnp.mean(v, axis=0, keepdims=True)
        var = jnp.mean((v - mu) * (v - mu), axis=0, keepdims=True)
        v = (v - mu) * lax.rsqrt(var + LN_EPS)
        v = v * g_ref[...] + bt_ref[...]
        v = jnp.maximum(v, 0.0)
        val = jnp.dot(w2_ref[...], v, preferred_element_type=jnp.float32) + b2_ref[...]

        # ---- residual add; single cast to bf16 for the conv matmul ----
        y_bf = (xf + val).astype(jnp.bfloat16)                       # (C, HW)

        # Zero only the two small lane pads every step (megacore-safe: each core
        # owns its scratch).  Pads are only ever read through a zero mask, but must
        # not hold garbage bits (NaN * 0 = NaN).  Interior store is 128-aligned.
        yext_ref[:, 0:ext] = jnp.zeros((C, ext), jnp.bfloat16)
        yext_ref[:, ext + HW:ywidth] = jnp.zeros((C, ext), jnp.bfloat16)
        yext_ref[:, ext:ext + HW] = y_bf

        # ---- im2col: 49 static lane-shifted, masked (C, HW) bf16 copies ----
        # Destination sublane offsets (t*C) are tile-aligned; no per-tap reshapes,
        # no accumulator chain (all copies are short-lived: load -> mul -> store).
        for kh in range(KH):
            for kw in range(KW):
                t = kh * KW + kw
                off = (kh * DIL - PAD) * W + (kw * DIL - PAD)
                s = ext + off
                col_ref[t * C:(t + 1) * C, :] = (
                    yext_ref[:, s:s + HW] * mask_ref[t:t + 1, :])

        # ---- Conv_Y as one MXU matmul (K = KH*KW*C = 1568), f32 accumulation ----
        out = jnp.dot(wyt_ref[...], col_ref[...],
                      preferred_element_type=jnp.float32) + by_ref[...]     # (C, HW)
        o_ref[...] = out.reshape(1, C, HW).astype(o_ref.dtype)

    def full(a):
        return pl.BlockSpec(a.shape, lambda b, _n=a.ndim: (0,) * _n)

    grid_spec = pltpu.PrefetchScalarGridSpec(
        num_scalar_prefetch=0,
        grid=(B,),            # one image per step; "parallel" -> v7x 2-TC sharding.
        in_specs=[
            pl.BlockSpec((1, C, HW), lambda b: (b, 0, 0)),
            full(mask), full(wk), full(bk), full(w1), full(b1),
            full(gamma), full(beta), full(w2), full(b2), full(wy_t), full(by),
        ],
        out_specs=pl.BlockSpec((1, C, HW), lambda b: (b, 0, 0)),
        scratch_shapes=[
            pltpu.VMEM((C, ywidth), jnp.bfloat16),       # lane-extended residual
            pltpu.VMEM((KK * C, HW), jnp.bfloat16),      # im2col matrix (~784 KiB)
        ],
    )
    out = pl.pallas_call(
        kernel,
        out_shape=jax.ShapeDtypeStruct((B, C, HW), jnp.float32),
        grid_spec=grid_spec,
        compiler_params=pltpu.CompilerParams(
            dimension_semantics=("parallel",)),
    )(x.reshape(B, C, HW), mask, wk, bk, w1, b1, gamma, beta, w2, b2, wy_t, by)
    return out.reshape(B, C, H, W)


def reference(x, tp):
    """Pure-JAX NCHW reference that mirrors the PyTorch forward exactly (f32)."""
    B, C, H, W = x.shape
    Cout = tp["w1"].shape[0]
    hp = lax.Precision.HIGHEST
    xf = x.reshape(B, C, H * W)
    logits = jnp.einsum("bcp,c->bp", xf, tp["wk"].reshape(C), precision=hp) + tp["bk"][0]
    attn = jax.nn.softmax(logits, axis=-1)                       # softmax over H*W
    qk = jnp.einsum("bcp,bp->bc", xf, attn, precision=hp)        # (B, C)
    v = jnp.einsum("bc,oc->bo", qk, tp["w1"].reshape(Cout, C), precision=hp) + tp["b1"]
    mu = v.mean(-1, keepdims=True)
    var = ((v - mu) ** 2).mean(-1, keepdims=True)
    v = (v - mu) / jnp.sqrt(var + LN_EPS)
    v = v * tp["gamma"].reshape(Cout) + tp["beta"].reshape(Cout)
    v = jax.nn.relu(v)
    val = jnp.einsum("bo,co->bc", v, tp["w2"].reshape(C, Cout), precision=hp) + tp["b2"]
    y = x + val[:, :, None, None]
    out = lax.conv_general_dilated(
        y, tp["wy"], window_strides=(1, 1),
        padding=((PAD, PAD), (PAD, PAD)), rhs_dilation=(DIL, DIL),
        dimension_numbers=("NCHW", "OIHW", "NCHW"), precision=hp)
    return out + tp["by"].reshape(1, C, 1, 1)


if __name__ == "__main__":
    B, C, H, W = 2, 32, 16, 16          # PyTorch NCHW input shape
    scale = 16
    Cout = C // scale                   # = 2

    key = jax.random.PRNGKey(0)
    ks = jax.random.split(key, 12)
    f32 = jnp.float32
    tp = {
        # torch-layout parameters
        "wk": 0.1 * jax.random.normal(ks[0], (1, C, 1, 1), f32),     # Conv_key.weight
        "bk": 0.1 * jax.random.normal(ks[1], (1,), f32),             # Conv_key.bias
        "w1": 0.1 * jax.random.normal(ks[2], (Cout, C, 1, 1), f32),  # Conv_value[0]
        "b1": 0.1 * jax.random.normal(ks[3], (Cout,), f32),
        "gamma": 1.0 + 0.1 * jax.random.normal(ks[4], (Cout, 1, 1), f32),
        "beta": 0.1 * jax.random.normal(ks[5], (Cout, 1, 1), f32),
        "w2": 0.1 * jax.random.normal(ks[6], (C, Cout, 1, 1), f32),  # Conv_value[3]
        "b2": 0.1 * jax.random.normal(ks[7], (C,), f32),
        "wy": 0.05 * jax.random.normal(ks[8], (C, C, KH, KW), f32),  # Conv_Y.weight
        "by": 0.1 * jax.random.normal(ks[9], (C,), f32),             # Conv_Y.bias
    }
    x = jax.random.normal(ks[10], (B, C, H, W), f32)

    out = jax.block_until_ready(global_context_block(x, tp))
    assert out.shape == (B, C, H, W)

    ref = jax.block_until_ready(reference(x, tp))
    # conv matmul runs in bf16 (f32 accumulation) -> tolerance loosened accordingly
    np.testing.assert_allclose(np.asarray(out), np.asarray(ref),
                               rtol=2e-2, atol=5e-2)
    print("KERNEL_OK")
</pallas_src>

<mosaic_0001>
module attributes {stable_mosaic.version = 11 : i64} {
  func.func @kernel(%arg0: i32, %arg1: memref<1x32x256xf32, #tpu.memory_space<vmem>>, %arg2: memref<49x256xbf16, #tpu.memory_space<vmem>>, %arg3: memref<1x32xf32, #tpu.memory_space<vmem>>, %arg4: memref<1x1xf32, #tpu.memory_space<vmem>>, %arg5: memref<2x32xf32, #tpu.memory_space<vmem>>, %arg6: memref<2x1xf32, #tpu.memory_space<vmem>>, %arg7: memref<2x1xf32, #tpu.memory_space<vmem>>, %arg8: memref<2x1xf32, #tpu.memory_space<vmem>>, %arg9: memref<32x2xf32, #tpu.memory_space<vmem>>, %arg10: memref<32x1xf32, #tpu.memory_space<vmem>>, %arg11: memref<32x1568xbf16, #tpu.memory_space<vmem>>, %arg12: memref<32x1xf32, #tpu.memory_space<vmem>>, %arg13: memref<1x32x256xf32, #tpu.memory_space<vmem>>, %arg14: memref<32x512xbf16, #tpu.memory_space<vmem>>, %arg15: memref<1568x256xbf16, #tpu.memory_space<vmem>>) attributes {dimension_semantics = [#tpu.dimension_semantics<parallel>], iteration_bounds = array<i64: 2>, scalar_prefetch = 0 : i64, scratch_operands = 2 : i64, tpu.core_type = #tpu.core_type<tc>, window_params = [{transform_indices = @transform_0, window_bounds = array<i64: 1, 32, 256>}, {pipeline_mode = #tpu.pipeline_mode<synchronous>, transform_indices = @transform_1, window_bounds = array<i64: 49, 256>}, {pipeline_mode = #tpu.pipeline_mode<synchronous>, transform_indices = @transform_2, window_bounds = array<i64: 1, 32>}, {pipeline_mode = #tpu.pipeline_mode<synchronous>, transform_indices = @transform_3, window_bounds = array<i64: 1, 1>}, {pipeline_mode = #tpu.pipeline_mode<synchronous>, transform_indices = @transform_4, window_bounds = array<i64: 2, 32>}, {pipeline_mode = #tpu.pipeline_mode<synchronous>, transform_indices = @transform_5, window_bounds = array<i64: 2, 1>}, {pipeline_mode = #tpu.pipeline_mode<synchronous>, transform_indices = @transform_6, window_bounds = array<i64: 2, 1>}, {pipeline_mode = #tpu.pipeline_mode<synchronous>, transform_indices = @transform_7, window_bounds = array<i64: 2, 1>}, {pipeline_mode = #tpu.pipeline_mode<synchronous>, transform_indices = @transform_8, window_bounds = array<i64: 32, 2>}, {pipeline_mode = #tpu.pipeline_mode<synchronous>, transform_indices = @transform_9, window_bounds = array<i64: 32, 1>}, {pipeline_mode = #tpu.pipeline_mode<synchronous>, transform_indices = @transform_10, window_bounds = array<i64: 32, 1568>}, {pipeline_mode = #tpu.pipeline_mode<synchronous>, transform_indices = @transform_11, window_bounds = array<i64: 32, 1>}, {transform_indices = @transform_12, window_bounds = array<i64: 1, 32, 256>}]} {
    %c0 = arith.constant 0 : index
    %c0_0 = arith.constant 0 : index
    %c0_1 = arith.constant 0 : index
    %0 = vector.load %arg1[%c0, %c0_0, %c0_1] : memref<1x32x256xf32, #tpu.memory_space<vmem>>, vector<1x32x256xf32>
    %1 = vector.shape_cast %0 : vector<1x32x256xf32> to vector<32x256xf32>
    %c0_2 = arith.constant 0 : index
    %c0_3 = arith.constant 0 : index
    %2 = vector.load %arg3[%c0_2, %c0_3] : memref<1x32xf32, #tpu.memory_space<vmem>>, vector<1x32xf32>
    %cst = arith.constant dense<0.000000e+00> : vector<1x256xf32>
    %3 = tpu.matmul %2, %1, %cst {dimension_numbers = #tpu.dot_dimension_numbers<[1], [0], [0], [1], [0, 0, 1, 1], [], []>} : vector<1x32xf32>, vector<32x256xf32>, vector<1x256xf32> -> vector<1x256xf32>
    %c0_4 = arith.constant 0 : index
    %c0_5 = arith.constant 0 : index
    %4 = vector.load %arg4[%c0_4, %c0_5] : memref<1x1xf32, #tpu.memory_space<vmem>>, vector<1x1xf32>
    %5 = vector.broadcast %4 : vector<1x1xf32> to vector<1x256xf32>
    %6 = arith.addf %3, %5 : vector<1x256xf32>
    %cst_6 = arith.constant dense<0xFF800000> : vector<1xf32>
    %7 = vector.multi_reduction <maximumf>, %6, %cst_6 [1] : vector<1x256xf32> to vector<1xf32>
    %8 = vector.shape_cast %7 : vector<1xf32> to vector<1x1xf32>
    %9 = vector.broadcast %8 : vector<1x1xf32> to vector<1x256xf32>
    %10 = arith.subf %6, %9 : vector<1x256xf32>
    %11 = math.exp %10 : vector<1x256xf32>
    %cst_7 = arith.constant dense<0.000000e+00> : vector<1xf32>
    %12 = vector.multi_reduction <add>, %11, %cst_7 [1] : vector<1x256xf32> to vector<1xf32>
    %13 = vector.shape_cast %12 : vector<1xf32> to vector<1x1xf32>
    %14 = vector.broadcast %11 : vector<1x256xf32> to vector<32x256xf32>
    %15 = arith.mulf %1, %14 : vector<32x256xf32>
    %cst_8 = arith.constant dense<0.000000e+00> : vector<32xf32>
    %16 = vector.multi_reduction <add>, %15, %cst_8 [1] : vector<32x256xf32> to vector<32xf32>
    %17 = vector.shape_cast %16 : vector<32xf32> to vector<32x1xf32>
    %18 = vector.broadcast %13 : vector<1x1xf32> to vector<32x1xf32>
    %19 = arith.divf %17, %18 : vector<32x1xf32>
    %c0_9 = arith.constant 0 : index
    %c0_10 = arith.constant 0 : index
    %20 = vector.load %arg5[%c0_9, %c0_10] : memref<2x32xf32, #tpu.memory_space<vmem>>, vector<2x32xf32>
    %cst_11 = arith.constant dense<0.000000e+00> : vector<2x1xf32>
    %21 = tpu.matmul %20, %19, %cst_11 {dimension_numbers = #tpu.dot_dimension_numbers<[1], [0], [0], [1], [0, 0, 1, 1], [], []>} : vector<2x32xf32>, vector<32x1xf32>, vector<2x1xf32> -> vector<2x1xf32>
    %c0_12 = arith.constant 0 : index
    %c0_13 = arith.constant 0 : index
    %22 = vector.load %arg6[%c0_12, %c0_13] : memref<2x1xf32, #tpu.memory_space<vmem>>, vector<2x1xf32>
    %23 = arith.addf %21, %22 : vector<2x1xf32>
    %cst_14 = arith.constant dense<0.000000e+00> : vector<1xf32>
    %24 = vector.multi_reduction <add>, %23, %cst_14 [0] : vector<2x1xf32> to vector<1xf32>
    %25 = vector.shape_cast %24 : vector<1xf32> to vector<1x1xf32>
    %cst_15 = arith.constant 2.000000e+00 : f32
    %26 = vector.broadcast %cst_15 : f32 to vector<1x1xf32>
    %27 = arith.divf %25, %26 : vector<1x1xf32>
    %28 = vector.broadcast %27 : vector<1x1xf32> to vector<2x1xf32>
    %29 = arith.subf %23, %28 : vector<2x1xf32>
    %30 = vector.broadcast %27 : vector<1x1xf32> to vector<2x1xf32>
    %31 = arith.subf %23, %30 : vector<2x1xf32>
    %32 = arith.mulf %29, %31 : vector<2x1xf32>
    %cst_16 = arith.constant dense<0.000000e+00> : vector<1xf32>
    %33 = vector.multi_reduction <add>, %32, %cst_16 [0] : vector<2x1xf32> to vector<1xf32>
    %34 = vector.shape_cast %33 : vector<1xf32> to vector<1x1xf32>
    %cst_17 = arith.constant 2.000000e+00 : f32
    %35 = vector.broadcast %cst_17 : f32 to vector<1x1xf32>
    %36 = arith.divf %34, %35 : vector<1x1xf32>
    %37 = vector.broadcast %27 : vector<1x1xf32> to vector<2x1xf32>
    %38 = arith.subf %23, %37 : vector<2x1xf32>
    %cst_18 = arith.constant 9.99999974E-6 : f32
    %39 = vector.broadcast %cst_18 : f32 to vector<1x1xf32>
    %40 = arith.addf %36, %39 : vector<1x1xf32>
    %41 = math.rsqrt %40 : vector<1x1xf32>
    %42 = vector.broadcast %41 : vector<1x1xf32> to vector<2x1xf32>
    %43 = arith.mulf %38, %42 : vector<2x1xf32>
    %c0_19 = arith.constant 0 : index
    %c0_20 = arith.constant 0 : index
    %44 = vector.load %arg7[%c0_19, %c0_20] : memref<2x1xf32, #tpu.memory_space<vmem>>, vector<2x1xf32>
    %45 = arith.mulf %43, %44 : vector<2x1xf32>
    %c0_21 = arith.constant 0 : index
    %c0_22 = arith.constant 0 : index
    %46 = vector.load %arg8[%c0_21, %c0_22] : memref<2x1xf32, #tpu.memory_space<vmem>>, vector<2x1xf32>
    %47 = arith.addf %45, %46 : vector<2x1xf32>
    %cst_23 = arith.constant 0.000000e+00 : f32
    %48 = vector.broadcast %cst_23 : f32 to vector<2x1xf32>
    %49 = arith.maximumf %47, %48 : vector<2x1xf32>
    %c0_24 = arith.constant 0 : index
    %c0_25 = arith.constant 0 : index
    %50 = vector.load %arg9[%c0_24, %c0_25] : memref<32x2xf32, #tpu.memory_space<vmem>>, vector<32x2xf32>
    %cst_26 = arith.constant dense<0.000000e+00> : vector<32x1xf32>
    %51 = tpu.matmul %50, %49, %cst_26 {dimension_numbers = #tpu.dot_dimension_numbers<[1], [0], [0], [1], [0, 0, 1, 1], [], []>} : vector<32x2xf32>, vector<2x1xf32>, vector<32x1xf32> -> vector<32x1xf32>
    %c0_27 = arith.constant 0 : index
    %c0_28 = arith.constant 0 : index
    %52 = vector.load %arg10[%c0_27, %c0_28] : memref<32x1xf32, #tpu.memory_space<vmem>>, vector<32x1xf32>
    %53 = arith.addf %51, %52 : vector<32x1xf32>
    %54 = vector.broadcast %53 : vector<32x1xf32> to vector<32x256xf32>
    %55 = arith.addf %1, %54 : vector<32x256xf32>
    %56 = arith.truncf %55 : vector<32x256xf32> to vector<32x256xbf16>
    %cst_29 = arith.constant 0.000000e+00 : bf16
    %57 = vector.broadcast %cst_29 : bf16 to vector<32x128xbf16>
    %c0_30 = arith.constant 0 : index
    %c0_31 = arith.constant 0 : index
    %58 = vector.load %arg14[%c0_30, %c0_31] : memref<32x512xbf16, #tpu.memory_space<vmem>>, vector<32x128xbf16>
    tpu.vector_store %arg14[%c0_30, %c0_31], %57 {strides = array<i32>} : memref<32x512xbf16, #tpu.memory_space<vmem>>, vector<32x128xbf16>,
    %cst_32 = arith.constant 0.000000e+00 : bf16
    %59 = vector.broadcast %cst_32 : bf16 to vector<32x128xbf16>
    %c0_33 = arith.constant 0 : index
    %c384 = arith.constant 384 : index
    %60 = vector.load %arg14[%c0_33, %c384] : memref<32x512xbf16, #tpu.memory_space<vmem>>, vector<32x128xbf16>
    tpu.vector_store %arg14[%c0_33, %c384], %59 {strides = array<i32>} : memref<32x512xbf16, #tpu.memory_space<vmem>>, vector<32x128xbf16>,
    %c0_34 = arith.constant 0 : index
    %c128 = arith.constant 128 : index
    %61 = vector.load %arg14[%c0_34, %c128] : memref<32x512xbf16, #tpu.memory_space<vmem>>, vector<32x256xbf16>
    tpu.vector_store %arg14[%c0_34, %c128], %56 {strides = array<i32>} : memref<32x512xbf16, #tpu.memory_space<vmem>>, vector<32x256xbf16>,
    %c0_35 = arith.constant 0 : index
    %c26 = arith.constant 26 : index
    %62 = vector.load %arg14[%c0_35, %c26] : memref<32x512xbf16, #tpu.memory_space<vmem>>, vector<32x256xbf16>
    %c0_36 = arith.constant 0 : index
    %c0_37 = arith.constant 0 : index
    %63 = vector.load %arg2[%c0_36, %c0_37] : memref<49x256xbf16, #tpu.memory_space<vmem>>, vector<1x256xbf16>
    %64 = vector.broadcast %63 : vector<1x256xbf16> to vector<32x256xbf16>
    %65 = arith.mulf %62, %64 : vector<32x256xbf16>
    %c0_38 = arith.constant 0 : index
    %c0_39 = arith.constant 0 : index
    %66 = vector.load %arg15[%c0_38, %c0_39] : memref<1568x256xbf16, #tpu.memory_space<vmem>>, vector<32x256xbf16>
    tpu.vector_store %arg15[%c0_38, %c0_39], %65 {strides = array<i32>} : memref<1568x256xbf16, #tpu.memory_space<vmem>>, vector<32x256xbf16>,
    %c0_40 = arith.constant 0 : index
    %c28 = arith.constant 28 : index
    %67 = vector.load %arg14[%c0_40, %c28] : memref<32x512xbf16, #tpu.memory_space<vmem>>, vector<32x256xbf16>
    %c1 = arith.constant 1 : index
    %c0_41 = arith.constant 0 : index
    %68 = vector.load %arg2[%c1, %c0_41] : memref<49x256xbf16, #tpu.memory_space<vmem>>, vector<1x256xbf16>
    %69 = vector.broadcast %68 : vector<1x256xbf16> to vector<32x256xbf16>
    %70 = arith.mulf %67, %69 : vector<32x256xbf16>
    %c32 = arith.constant 32 : index
    %c0_42 = arith.constant 0 : index
    %71 = vector.load %arg15[%c32, %c0_42] : memref<1568x256xbf16, #tpu.memory_space<vmem>>, vector<32x256xbf16>
    tpu.vector_store %arg15[%c32, %c0_42], %70 {strides = array<i32>} : memref<1568x256xbf16, #tpu.memory_space<vmem>>, vector<32x256xbf16>,
    %c0_43 = arith.constant 0 : index
    %c30 = arith.constant 30 : index
    %72 = vector.load %arg14[%c0_43, %c30] : memref<32x512xbf16, #tpu.memory_space<vmem>>, vector<32x256xbf16>
    %c2 = arith.constant 2 : index
    %c0_44 = arith.constant 0 : index
    %73 = vector.load %arg2[%c2, %c0_44] : memref<49x256xbf16, #tpu.memory_space<vmem>>, vector<1x256xbf16>
    %74 = vector.broadcast %73 : vector<1x256xbf16> to vector<32x256xbf16>
    %75 = arith.mulf %72, %74 : vector<32x256xbf16>
    %c64 = arith.constant 64 : index
    %c0_45 = arith.constant 0 : index
    %76 = vector.load %arg15[%c64, %c0_45] : memref<1568x256xbf16, #tpu.memory_space<vmem>>, vector<32x256xbf16>
    tpu.vector_store %arg15[%c64, %c0_45], %75 {strides = array<i32>} : memref<1568x256xbf16, #tpu.memory_space<vmem>>, vector<32x256xbf16>,
    %c0_46 = arith.constant 0 : index
    %c32_47 = arith.constant 32 : index
    %77 = vector.load %arg14[%c0_46, %c32_47] : memref<32x512xbf16, #tpu.memory_space<vmem>>, vector<32x256xbf16>
    %c3 = arith.constant 3 : index
    %c0_48 = arith.constant 0 : index
    %78 = vector.load %arg2[%c3, %c0_48] : memref<49x256xbf16, #tpu.memory_space<vmem>>, vector<1x256xbf16>
    %79 = vector.broadcast %78 : vector<1x256xbf16> to vector<32x256xbf16>
    %80 = arith.mulf %77, %79 : vector<32x256xbf16>
    %c96 = arith.constant 96 : index
    %c0_49 = arith.constant 0 : index
    %81 = vector.load %arg15[%c96, %c0_49] : memref<1568x256xbf16, #tpu.memory_space<vmem>>, vector<32x256xbf16>
    tpu.vector_store %arg15[%c96, %c0_49], %80 {strides = array<i32>} : memref<1568x256xbf16, #tpu.memory_space<vmem>>, vector<32x256xbf16>,
    %c0_50 = arith.constant 0 : index
    %c34 = arith.constant 34 : index
    %82 = vector.load %arg14[%c0_50, %c34] : memref<32x512xbf16, #tpu.memory_space<vmem>>, vector<32x256xbf16>
    %c4 = arith.constant 4 : index
    %c0_51 = arith.constant 0 : index
    %83 = vector.load %arg2[%c4, %c0_51] : memref<49x256xbf16, #tpu.memory_space<vmem>>, vector<1x256xbf16>
    %84 = vector.broadcast %83 : vector<1x256xbf16> to vector<32x256xbf16>
    %85 = arith.mulf %82, %84 : vector<32x256xbf16>
    %c128_52 = arith.constant 128 : index
    %c0_53 = arith.constant 0 : index
    %86 = vector.load %arg15[%c128_52, %c0_53] : memref<1568x256xbf16, #tpu.memory_space<vmem>>, vector<32x256xbf16>
    tpu.vector_store %arg15[%c128_52, %c0_53], %85 {strides = array<i32>} : memref<1568x256xbf16, #tpu.memory_space<vmem>>, vector<32x256xbf16>,
    %c0_54 = arith.constant 0 : index
    %c36 = arith.constant 36 : index
    %87 = vector.load %arg14[%c0_54, %c36] : memref<32x512xbf16, #tpu.memory_space<vmem>>, vector<32x256xbf16>
    %c5 = arith.constant 5 : index
    %c0_55 = arith.constant 0 : index
    %88 = vector.load %arg2[%c5, %c0_55] : memref<49x256xbf16, #tpu.memory_space<vmem>>, vector<1x256xbf16>
    %89 = vector.broadcast %88 : vector<1x256xbf16> to vector<32x256xbf16>
    %90 = arith.mulf %87, %89 : vector<32x256xbf16>
    %c160 = arith.constant 160 : index
    %c0_56 = arith.constant 0 : index
    %91 = vector.load %arg15[%c160, %c0_56] : memref<1568x256xbf16, #tpu.memory_space<vmem>>, vector<32x256xbf16>
    tpu.vector_store %arg15[%c160, %c0_56], %90 {strides = array<i32>} : memref<1568x256xbf16, #tpu.memory_space<vmem>>, vector<32x256xbf16>,
    %c0_57 = arith.constant 0 : index
    %c38 = arith.constant 38 : index
    %92 = vector.load %arg14[%c0_57, %c38] : memref<32x512xbf16, #tpu.memory_space<vmem>>, vector<32x256xbf16>
    %c6 = arith.constant 6 : index
    %c0_58 = arith.constant 0 : index
    %93 = vector.load %arg2[%c6, %c0_58] : memref<49x256xbf16, #tpu.memory_space<vmem>>, vector<1x256xbf16>
    %94 = vector.broadcast %93 : vector<1x256xbf16> to vector<32x256xbf16>
    %95 = arith.mulf %92, %94 : vector<32x256xbf16>
    %c192 = arith.constant 192 : index
    %c0_59 = arith.constant 0 : index
    %96 = vector.load %arg15[%c192, %c0_59] : memref<1568x256xbf16, #tpu.memory_space<vmem>>, vector<32x256xbf16>
    tpu.vector_store %arg15[%c192, %c0_59], %95 {strides = array<i32>} : memref<1568x256xbf16, #tpu.memory_space<vmem>>, vector<32x256xbf16>,
    %c0_60 = arith.constant 0 : index
    %c58 = arith.constant 58 : index
    %97 = vector.load %arg14[%c0_60, %c58] : memref<32x512xbf16, #tpu.memory_space<vmem>>, vector<32x256xbf16>
    %c7 = arith.constant 7 : index
    %c0_61 = arith.constant 0 : index
    %98 = vector.load %arg2[%c7, %c0_61] : memref<49x256xbf16, #tpu.memory_space<vmem>>, vector<1x256xbf16>
    %99 = vector.broadcast %98 : vector<1x256xbf16> to vector<32x256xbf16>
    %100 = arith.mulf %97, %99 : vector<32x256xbf16>
    %c224 = arith.constant 224 : index
    %c0_62 = arith.constant 0 : index
    %101 = vector.load %arg15[%c224, %c0_62] : memref<1568x256xbf16, #tpu.memory_space<vmem>>, vector<32x256xbf16>
    tpu.vector_store %arg15[%c224, %c0_62], %100 {strides = array<i32>} : memref<1568x256xbf16, #tpu.memory_space<vmem>>, vector<32x256xbf16>,
    %c0_63 = arith.constant 0 : index
    %c60 = arith.constant 60 : index
    %102 = vector.load %arg14[%c0_63, %c60] : memref<32x512xbf16, #tpu.memory_space<vmem>>, vector<32x256xbf16>
    %c8 = arith.constant 8 : index
    %c0_64 = arith.constant 0 : index
    %103 = vector.load %arg2[%c8, %c0_64] : memref<49x256xbf16, #tpu.memory_space<vmem>>, vector<1x256xbf16>
    %104 = vector.broadcast %103 : vector<1x256xbf16> to vector<32x256xbf16>
    %105 = arith.mulf %102, %104 : vector<32x256xbf16>
    %c256 = arith.constant 256 : index
    %c0_65 = arith.constant 0 : index
    %106 = vector.load %arg15[%c256, %c0_65] : memref<1568x256xbf16, #tpu.memory_space<vmem>>, vector<32x256xbf16>
    tpu.vector_store %arg15[%c256, %c0_65], %105 {strides = array<i32>} : memref<1568x256xbf16, #tpu.memory_space<vmem>>, vector<32x256xbf16>,
    %c0_66 = arith.constant 0 : index
    %c62 = arith.constant 62 : index
    %107 = vector.load %arg14[%c0_66, %c62] : memref<32x512xbf16, #tpu.memory_space<vmem>>, vector<32x256xbf16>
    %c9 = arith.constant 9 : index
    %c0_67 = arith.constant 0 : index
    %108 = vector.load %arg2[%c9, %c0_67] : memref<49x256xbf16, #tpu.memory_space<vmem>>, vector<1x256xbf16>
    %109 = vector.broadcast %108 : vector<1x256xbf16> to vector<32x256xbf16>
    %110 = arith.mulf %107, %109 : vector<32x256xbf16>
    %c288 = arith.constant 288 : index
    %c0_68 = arith.constant 0 : index
    %111 = vector.load %arg15[%c288, %c0_68] : memref<1568x256xbf16, #tpu.memory_space<vmem>>, vector<32x256xbf16>
    tpu.vector_store %arg15[%c288, %c0_68], %110 {strides = array<i32>} : memref<1568x256xbf16, #tpu.memory_space<vmem>>, vector<32x256xbf16>,
    %c0_69 = arith.constant 0 : index
    %c64_70 = arith.constant 64 : index
    %112 = vector.load %arg14[%c0_69, %c64_70] : memref<32x512xbf16, #tpu.memory_space<vmem>>, vector<32x256xbf16>
    %c10 = arith.constant 10 : index
    %c0_71 = arith.constant 0 : index
    %113 = vector.load %arg2[%c10, %c0_71] : memref<49x256xbf16, #tpu.memory_space<vmem>>, vector<1x256xbf16>
    %114 = vector.broadcast %113 : vector<1x256xbf16> to vector<32x256xbf16>
    %115 = arith.mulf %112, %114 : vector<32x256xbf16>
    %c320 = arith.constant 320 : index
    %c0_72 = arith.constant 0 : index
    %116 = vector.load %arg15[%c320, %c0_72] : memref<1568x256xbf16, #tpu.memory_space<vmem>>, vector<32x256xbf16>
    tpu.vector_store %arg15[%c320, %c0_72], %115 {strides = array<i32>} : memref<1568x256xbf16, #tpu.memory_space<vmem>>, vector<32x256xbf16>,
    %c0_73 = arith.constant 0 : index
    %c66 = arith.constant 66 : index
    %117 = vector.load %arg14[%c0_73, %c66] : memref<32x512xbf16, #tpu.memory_space<vmem>>, vector<32x256xbf16>
    %c11 = arith.constant 11 : index
    %c0_74 = arith.constant 0 : index
    %118 = vector.load %arg2[%c11, %c0_74] : memref<49x256xbf16, #tpu.memory_space<vmem>>, vector<1x256xbf16>
    %119 = vector.broadcast %118 : vector<1x256xbf16> to vector<32x256xbf16>
    %120 = arith.mulf %117, %119 : vector<32x256xbf16>
    %c352 = arith.constant 352 : index
    %c0_75 = arith.constant 0 : index
    %121 = vector.load %arg15[%c352, %c0_75] : memref<1568x256xbf16, #tpu.memory_space<vmem>>, vector<32x256xbf16>
    tpu.vector_store %arg15[%c352, %c0_75], %120 {strides = array<i32>} : memref<1568x256xbf16, #tpu.memory_space<vmem>>, vector<32x256xbf16>,
    %c0_76 = arith.constant 0 : index
    %c68 = arith.constant 68 : index
    %122 = vector.load %arg14[%c0_76, %c68] : memref<32x512xbf16, #tpu.memory_space<vmem>>, vector<32x256xbf16>
    %c12 = arith.constant 12 : index
    %c0_77 = arith.constant 0 : index
    %123 = vector.load %arg2[%c12, %c0_77] : memref<49x256xbf16, #tpu.memory_space<vmem>>, vector<1x256xbf16>
    %124 = vector.broadcast %123 : vector<1x256xbf16> to vector<32x256xbf16>
    %125 = arith.mulf %122, %124 : vector<32x256xbf16>
    %c384_78 = arith.constant 384 : index
    %c0_79 = arith.constant 0 : index
    %126 = vector.load %arg15[%c384_78, %c0_79] : memref<1568x256xbf16, #tpu.memory_space<vmem>>, vector<32x256xbf16>
    tpu.vector_store %arg15[%c384_78, %c0_79], %125 {strides = array<i32>} : memref<1568x256xbf16, #tpu.memory_space<vmem>>, vector<32x256xbf16>,
    %c0_80 = arith.constant 0 : index
    %c70 = arith.constant 70 : index
    %127 = vector.load %arg14[%c0_80, %c70] : memref<32x512xbf16, #tpu.memory_space<vmem>>, vector<32x256xbf16>
    %c13 = arith.constant 13 : index
    %c0_81 = arith.constant 0 : index
    %128 = vector.load %arg2[%c13, %c0_81] : memref<49x256xbf16, #tpu.memory_space<vmem>>, vector<1x256xbf16>
    %129 = vector.broadcast %128 : vector<1x256xbf16> to vector<32x256xbf16>
    %130 = arith.mulf %127, %129 : vector<32x256xbf16>
    %c416 = arith.constant 416 : index
    %c0_82 = arith.constant 0 : index
    %131 = vector.load %arg15[%c416, %c0_82] : memref<1568x256xbf16, #tpu.memory_space<vmem>>, vector<32x256xbf16>
    tpu.vector_store %arg15[%c416, %c0_82], %130 {strides = array<i32>} : memref<1568x256xbf16, #tpu.memory_space<vmem>>, vector<32x256xbf16>,
    %c0_83 = arith.constant 0 : index
    %c90 = arith.constant 90 : index
    %132 = vector.load %arg14[%c0_83, %c90] : memref<32x512xbf16, #tpu.memory_space<vmem>>, vector<32x256xbf16>
    %c14 = arith.constant 14 : index
    %c0_84 = arith.constant 0 : index
    %133 = vector.load %arg2[%c14, %c0_84] : memref<49x256xbf16, #tpu.memory_space<vmem>>, vector<1x256xbf16>
    %134 = vector.broadcast %133 : vector<1x256xbf16> to vector<32x256xbf16>
    %135 = arith.mulf %132, %134 : vector<32x256xbf16>
    %c448 = arith.constant 448 : index
    %c0_85 = arith.constant 0 : index
    %136 = vector.load %arg15[%c448, %c0_85] : memref<1568x256xbf16, #tpu.memory_space<vmem>>, vector<32x256xbf16>
    tpu.vector_store %arg15[%c448, %c0_85], %135 {strides = array<i32>} : memref<1568x256xbf16, #tpu.memory_space<vmem>>, vector<32x256xbf16>,
    %c0_86 = arith.constant 0 : index
    %c92 = arith.constant 92 : index
    %137 = vector.load %arg14[%c0_86, %c92] : memref<32x512xbf16, #tpu.memory_space<vmem>>, vector<32x256xbf16>
    %c15 = arith.constant 15 : index
    %c0_87 = arith.constant 0 : index
    %138 = vector.load %arg2[%c15, %c0_87] : memref<49x256xbf16, #tpu.memory_space<vmem>>, vector<1x256xbf16>
    %139 = vector.broadcast %138 : vector<1x256xbf16> to vector<32x256xbf16>
    %140 = arith.mulf %137, %139 : vector<32x256xbf16>
    %c480 = arith.constant 480 : index
    %c0_88 = arith.constant 0 : index
    %141 = vector.load %arg15[%c480, %c0_88] : memref<1568x256xbf16, #tpu.memory_space<vmem>>, vector<32x256xbf16>
    tpu.vector_store %arg15[%c480, %c0_88], %140 {strides = array<i32>} : memref<1568x256xbf16, #tpu.memory_space<vmem>>, vector<32x256xbf16>,
    %c0_89 = arith.constant 0 : index
    %c94 = arith.constant 94 : index
    %142 = vector.load %arg14[%c0_89, %c94] : memref<32x512xbf16, #tpu.memory_space<vmem>>, vector<32x256xbf16>
    %c16 = arith.constant 16 : index
    %c0_90 = arith.constant 0 : index
    %143 = vector.load %arg2[%c16, %c0_90] : memref<49x256xbf16, #tpu.memory_space<vmem>>, vector<1x256xbf16>
    %144 = vector.broadcast %143 : vector<1x256xbf16> to vector<32x256xbf16>
    %145 = arith.mulf %142, %144 : vector<32x256xbf16>
    %c512 = arith.constant 512 : index
    %c0_91 = arith.constant 0 : index
    %146 = vector.load %arg15[%c512, %c0_91] : memref<1568x256xbf16, #tpu.memory_space<vmem>>, vector<32x256xbf16>
    tpu.vector_store %arg15[%c512, %c0_91], %145 {strides = array<i32>} : memref<1568x256xbf16, #tpu.memory_space<vmem>>, vector<32x256xbf16>,
    %c0_92 = arith.constant 0 : index
    %c96_93 = arith.constant 96 : index
    %147 = vector.load %arg14[%c0_92, %c96_93] : memref<32x512xbf16, #tpu.memory_space<vmem>>, vector<32x256xbf16>
    %c17 = arith.constant 17 : index
    %c0_94 = arith.constant 0 : index
    %148 = vector.load %arg2[%c17, %c0_94] : memref<49x256xbf16, #tpu.memory_space<vmem>>, vector<1x256xbf16>
    %149 = vector.broadcast %148 : vector<1x256xbf16> to vector<32x256xbf16>
    %150 = arith.mulf %147, %149 : vector<32x256xbf16>
    %c544 = arith.constant 544 : index
    %c0_95 = arith.constant 0 : index
    %151 = vector.load %arg15[%c544, %c0_95] : memref<1568x256xbf16, #tpu.memory_space<vmem>>, vector<32x256xbf16>
    tpu.vector_store %arg15[%c544, %c0_95], %150 {strides = array<i32>} : memref<1568x256xbf16, #tpu.memory_space<vmem>>, vector<32x256xbf16>,
    %c0_96 = arith.constant 0 : index
    %c98 = arith.constant 98 : index
    %152 = vector.load %arg14[%c0_96, %c98] : memref<32x512xbf16, #tpu.memory_space<vmem>>, vector<32x256xbf16>
    %c18 = arith.constant 18 : index
    %c0_97 = arith.constant 0 : index
    %153 = vector.load %arg2[%c18, %c0_97] : memref<49x256xbf16, #tpu.memory_space<vmem>>, vector<1x256xbf16>
    %154 = vector.broadcast %153 : vector<1x256xbf16> to vector<32x256xbf16>
    %155 = arith.mulf %152, %154 : vector<32x256xbf16>
    %c576 = arith.constant 576 : index
    %c0_98 = arith.constant 0 : index
    %156 = vector.load %arg15[%c576, %c0_98] : memref<1568x256xbf16, #tpu.memory_space<vmem>>, vector<32x256xbf16>
    tpu.vector_store %arg15[%c576, %c0_98], %155 {strides = array<i32>} : memref<1568x256xbf16, #tpu.memory_space<vmem>>, vector<32x256xbf16>,
    %c0_99 = arith.constant 0 : index
    %c100 = arith.constant 100 : index
    %157 = vector.load %arg14[%c0_99, %c100] : memref<32x512xbf16, #tpu.memory_space<vmem>>, vector<32x256xbf16>
    %c19 = arith.constant 19 : index
    %c0_100 = arith.constant 0 : index
    %158 = vector.load %arg2[%c19, %c0_100] : memref<49x256xbf16, #tpu.memory_space<vmem>>, vector<1x256xbf16>
    %159 = vector.broadcast %158 : vector<1x256xbf16> to vector<32x256xbf16>
    %160 = arith.mulf %157, %159 : vector<32x256xbf16>
    %c608 = arith.constant 608 : index
    %c0_101 = arith.constant 0 : index
    %161 = vector.load %arg15[%c608, %c0_101] : memref<1568x256xbf16, #tpu.memory_space<vmem>>, vector<32x256xbf16>
    tpu.vector_store %arg15[%c608, %c0_101], %160 {strides = array<i32>} : memref<1568x256xbf16, #tpu.memory_space<vmem>>, vector<32x256xbf16>,
    %c0_102 = arith.constant 0 : index
    %c102 = arith.constant 102 : index
    %162 = vector.load %arg14[%c0_102, %c102] : memref<32x512xbf16, #tpu.memory_space<vmem>>, vector<32x256xbf16>
    %c20 = arith.constant 20 : index
    %c0_103 = arith.constant 0 : index
    %163 = vector.load %arg2[%c20, %c0_103] : memref<49x256xbf16, #tpu.memory_space<vmem>>, vector<1x256xbf16>
    %164 = vector.broadcast %163 : vector<1x256xbf16> to vector<32x256xbf16>
    %165 = arith.mulf %162, %164 : vector<32x256xbf16>
    %c640 = arith.constant 640 : index
    %c0_104 = arith.constant 0 : index
    %166 = vector.load %arg15[%c640, %c0_104] : memref<1568x256xbf16, #tpu.memory_space<vmem>>, vector<32x256xbf16>
    tpu.vector_store %arg15[%c640, %c0_104], %165 {strides = array<i32>} : memref<1568x256xbf16, #tpu.memory_space<vmem>>, vector<32x256xbf16>,
    %c0_105 = arith.constant 0 : index
    %c122 = arith.constant 122 : index
    %167 = vector.load %arg14[%c0_105, %c122] : memref<32x512xbf16, #tpu.memory_space<vmem>>, vector<32x256xbf16>
    %c21 = arith.constant 21 : index
    %c0_106 = arith.constant 0 : index
    %168 = vector.load %arg2[%c21, %c0_106] : memref<49x256xbf16, #tpu.memory_space<vmem>>, vector<1x256xbf16>
    %169 = vector.broadcast %168 : vector<1x256xbf16> to vector<32x256xbf16>
    %170 = arith.mulf %167, %169 : vector<32x256xbf16>
    %c672 = arith.constant 672 : index
    %c0_107 = arith.constant 0 : index
    %171 = vector.load %arg15[%c672, %c0_107] : memref<1568x256xbf16, #tpu.memory_space<vmem>>, vector<32x256xbf16>
    tpu.vector_store %arg15[%c672, %c0_107], %170 {strides = array<i32>} : memref<1568x256xbf16, #tpu.memory_space<vmem>>, vector<32x256xbf16>,
    %c0_108 = arith.constant 0 : index
    %c124 = arith.constant 124 : index
    %172 = vector.load %arg14[%c0_108, %c124] : memref<32x512xbf16, #tpu.memory_space<vmem>>, vector<32x256xbf16>
    %c22 = arith.constant 22 : index
    %c0_109 = arith.constant 0 : index
    %173 = vector.load %arg2[%c22, %c0_109] : memref<49x256xbf16, #tpu.memory_space<vmem>>, vector<1x256xbf16>
    %174 = vector.broadcast %173 : vector<1x256xbf16> to vector<32x256xbf16>
    %175 = arith.mulf %172, %174 : vector<32x256xbf16>
    %c704 = arith.constant 704 : index
    %c0_110 = arith.constant 0 : index
    %176 = vector.load %arg15[%c704, %c0_110] : memref<1568x256xbf16, #tpu.memory_space<vmem>>, vector<32x256xbf16>
    tpu.vector_store %arg15[%c704, %c0_110], %175 {strides = array<i32>} : memref<1568x256xbf16, #tpu.memory_space<vmem>>, vector<32x256xbf16>,
    %c0_111 = arith.constant 0 : index
    %c126 = arith.constant 126 : index
    %177 = vector.load %arg14[%c0_111, %c126] : memref<32x512xbf16, #tpu.memory_space<vmem>>, vector<32x256xbf16>
    %c23 = arith.constant 23 : index
    %c0_112 = arith.constant 0 : index
    %178 = vector.load %arg2[%c23, %c0_112] : memref<49x256xbf16, #tpu.memory_space<vmem>>, vector<1x256xbf16>
    %179 = vector.broadcast %178 : vector<1x256xbf16> to vector<32x256xbf16>
    %180 = arith.mulf %177, %179 : vector<32x256xbf16>
    %c736 = arith.constant 736 : index
    %c0_113 = arith.constant 0 : index
    %181 = vector.load %arg15[%c736, %c0_113] : memref<1568x256xbf16, #tpu.memory_space<vmem>>, vector<32x256xbf16>
    tpu.vector_store %arg15[%c736, %c0_113], %180 {strides = array<i32>} : memref<1568x256xbf16, #tpu.memory_space<vmem>>, vector<32x256xbf16>,
    %c0_114 = arith.constant 0 : index
    %c128_115 = arith.constant 128 : index
    %182 = vector.load %arg14[%c0_114, %c128_115] : memref<32x512xbf16, #tpu.memory_space<vmem>>, vector<32x256xbf16>
    %c24 = arith.constant 24 : index
    %c0_116 = arith.constant 0 : index
    %183 = vector.load %arg2[%c24, %c0_116] : memref<49x256xbf16, #tpu.memory_space<vmem>>, vector<1x256xbf16>
    %184 = vector.broadcast %183 : vector<1x256xbf16> to vector<32x256xbf16>
    %185 = arith.mulf %182, %184 : vector<32x256xbf16>
    %c768 = arith.constant 768 : index
    %c0_117 = arith.constant 0 : index
    %186 = vector.load %arg15[%c768, %c0_117] : memref<1568x256xbf16, #tpu.memory_space<vmem>>, vector<32x256xbf16>
    tpu.vector_store %arg15[%c768, %c0_117], %185 {strides = array<i32>} : memref<1568x256xbf16, #tpu.memory_space<vmem>>, vector<32x256xbf16>,
    %c0_118 = arith.constant 0 : index
    %c130 = arith.constant 130 : index
    %187 = vector.load %arg14[%c0_118, %c130] : memref<32x512xbf16, #tpu.memory_space<vmem>>, vector<32x256xbf16>
    %c25 = arith.constant 25 : index
    %c0_119 = arith.constant 0 : index
    %188 = vector.load %arg2[%c25, %c0_119] : memref<49x256xbf16, #tpu.memory_space<vmem>>, vector<1x256xbf16>
    %189 = vector.broadcast %188 : vector<1x256xbf16> to vector<32x256xbf16>
    %190 = arith.mulf %187, %189 : vector<32x256xbf16>
    %c800 = arith.constant 800 : index
    %c0_120 = arith.constant 0 : index
    %191 = vector.load %arg15[%c800, %c0_120] : memref<1568x256xbf16, #tpu.memory_space<vmem>>, vector<32x256xbf16>
    tpu.vector_store %arg15[%c800, %c0_120], %190 {strides = array<i32>} : memref<1568x256xbf16, #tpu.memory_space<vmem>>, vector<32x256xbf16>,
    %c0_121 = arith.constant 0 : index
    %c132 = arith.constant 132 : index
    %192 = vector.load %arg14[%c0_121, %c132] : memref<32x512xbf16, #tpu.memory_space<vmem>>, vector<32x256xbf16>
    %c26_122 = arith.constant 26 : index
    %c0_123 = arith.constant 0 : index
    %193 = vector.load %arg2[%c26_122, %c0_123] : memref<49x256xbf16, #tpu.memory_space<vmem>>, vector<1x256xbf16>
    %194 = vector.broadcast %193 : vector<1x256xbf16> to vector<32x256xbf16>
    %195 = arith.mulf %192, %194 : vector<32x256xbf16>
    %c832 = arith.constant 832 : index
    %c0_124 = arith.constant 0 : index
    %196 = vector.load %arg15[%c832, %c0_124] : memref<1568x256xbf16, #tpu.memory_space<vmem>>, vector<32x256xbf16>
    tpu.vector_store %arg15[%c832, %c0_124], %195 {strides = array<i32>} : memref<1568x256xbf16, #tpu.memory_space<vmem>>, vector<32x256xbf16>,
    %c0_125 = arith.constant 0 : index
    %c134 = arith.constant 134 : index
    %197 = vector.load %arg14[%c0_125, %c134] : memref<32x512xbf16, #tpu.memory_space<vmem>>, vector<32x256xbf16>
    %c27 = arith.constant 27 : index
    %c0_126 = arith.constant 0 : index
    %198 = vector.load %arg2[%c27, %c0_126] : memref<49x256xbf16, #tpu.memory_space<vmem>>, vector<1x256xbf16>
    %199 = vector.broadcast %198 : vector<1x256xbf16> to vector<32x256xbf16>
    %200 = arith.mulf %197, %199 : vector<32x256xbf16>
    %c864 = arith.constant 864 : index
    %c0_127 = arith.constant 0 : index
    %201 = vector.load %arg15[%c864, %c0_127] : memref<1568x256xbf16, #tpu.memory_space<vmem>>, vector<32x256xbf16>
    tpu.vector_store %arg15[%c864, %c0_127], %200 {strides = array<i32>} : memref<1568x256xbf16, #tpu.memory_space<vmem>>, vector<32x256xbf16>,
    %c0_128 = arith.constant 0 : index
    %c154 = arith.constant 154 : index
    %202 = vector.load %arg14[%c0_128, %c154] : memref<32x512xbf16, #tpu.memory_space<vmem>>, vector<32x256xbf16>
    %c28_129 = arith.constant 28 : index
    %c0_130 = arith.constant 0 : index
    %203 = vector.load %arg2[%c28_129, %c0_130] : memref<49x256xbf16, #tpu.memory_space<vmem>>, vector<1x256xbf16>
    %204 = vector.broadcast %203 : vector<1x256xbf16> to vector<32x256xbf16>
    %205 = arith.mulf %202, %204 : vector<32x256xbf16>
    %c896 = arith.constant 896 : index
    %c0_131 = arith.constant 0 : index
    %206 = vector.load %arg15[%c896, %c0_131] : memref<1568x256xbf16, #tpu.memory_space<vmem>>, vector<32x256xbf16>
    tpu.vector_store %arg15[%c896, %c0_131], %205 {strides = array<i32>} : memref<1568x256xbf16, #tpu.memory_space<vmem>>, vector<32x256xbf16>,
    %c0_132 = arith.constant 0 : index
    %c156 = arith.constant 156 : index
    %207 = vector.load %arg14[%c0_132, %c156] : memref<32x512xbf16, #tpu.memory_space<vmem>>, vector<32x256xbf16>
    %c29 = arith.constant 29 : index
    %c0_133 = arith.constant 0 : index
    %208 = vector.load %arg2[%c29, %c0_133] : memref<49x256xbf16, #tpu.memory_space<vmem>>, vector<1x256xbf16>
    %209 = vector.broadcast %208 : vector<1x256xbf16> to vector<32x256xbf16>
    %210 = arith.mulf %207, %209 : vector<32x256xbf16>
    %c928 = arith.constant 928 : index
    %c0_134 = arith.constant 0 : index
    %211 = vector.load %arg15[%c928, %c0_134] : memref<1568x256xbf16, #tpu.memory_space<vmem>>, vector<32x256xbf16>
    tpu.vector_store %arg15[%c928, %c0_134], %210 {strides = array<i32>} : memref<1568x256xbf16, #tpu.memory_space<vmem>>, vector<32x256xbf16>,
    %c0_135 = arith.constant 0 : index
    %c158 = arith.constant 158 : index
    %212 = vector.load %arg14[%c0_135, %c158] : memref<32x512xbf16, #tpu.memory_space<vmem>>, vector<32x256xbf16>
    %c30_136 = arith.constant 30 : index
    %c0_137 = arith.constant 0 : index
    %213 = vector.load %arg2[%c30_136, %c0_137] : memref<49x256xbf16, #tpu.memory_space<vmem>>, vector<1x256xbf16>
    %214 = vector.broadcast %213 : vector<1x256xbf16> to vector<32x256xbf16>
    %215 = arith.mulf %212, %214 : vector<32x256xbf16>
    %c960 = arith.constant 960 : index
    %c0_138 = arith.constant 0 : index
    %216 = vector.load %arg15[%c960, %c0_138] : memref<1568x256xbf16, #tpu.memory_space<vmem>>, vector<32x256xbf16>
    tpu.vector_store %arg15[%c960, %c0_138], %215 {strides = array<i32>} : memref<1568x256xbf16, #tpu.memory_space<vmem>>, vector<32x256xbf16>,
    %c0_139 = arith.constant 0 : index
    %c160_140 = arith.constant 160 : index
    %217 = vector.load %arg14[%c0_139, %c160_140] : memref<32x512xbf16, #tpu.memory_space<vmem>>, vector<32x256xbf16>
    %c31 = arith.constant 31 : index
    %c0_141 = arith.constant 0 : index
    %218 = vector.load %arg2[%c31, %c0_141] : memref<49x256xbf16, #tpu.memory_space<vmem>>, vector<1x256xbf16>
    %219 = vector.broadcast %218 : vector<1x256xbf16> to vector<32x256xbf16>
    %220 = arith.mulf %217, %219 : vector<32x256xbf16>
    %c992 = arith.constant 992 : index
    %c0_142 = arith.constant 0 : index
    %221 = vector.load %arg15[%c992, %c0_142] : memref<1568x256xbf16, #tpu.memory_space<vmem>>, vector<32x256xbf16>
    tpu.vector_store %arg15[%c992, %c0_142], %220 {strides = array<i32>} : memref<1568x256xbf16, #tpu.memory_space<vmem>>, vector<32x256xbf16>,
    %c0_143 = arith.constant 0 : index
    %c162 = arith.constant 162 : index
    %222 = vector.load %arg14[%c0_143, %c162] : memref<32x512xbf16, #tpu.memory_space<vmem>>, vector<32x256xbf16>
    %c32_144 = arith.constant 32 : index
    %c0_145 = arith.constant 0 : index
    %223 = vector.load %arg2[%c32_144, %c0_145] : memref<49x256xbf16, #tpu.memory_space<vmem>>, vector<1x256xbf16>
    %224 = vector.broadcast %223 : vector<1x256xbf16> to vector<32x256xbf16>
    %225 = arith.mulf %222, %224 : vector<32x256xbf16>
    %c1024 = arith.constant 1024 : index
    %c0_146 = arith.constant 0 : index
    %226 = vector.load %arg15[%c1024, %c0_146] : memref<1568x256xbf16, #tpu.memory_space<vmem>>, vector<32x256xbf16>
    tpu.vector_store %arg15[%c1024, %c0_146], %225 {strides = array<i32>} : memref<1568x256xbf16, #tpu.memory_space<vmem>>, vector<32x256xbf16>,
    %c0_147 = arith.constant 0 : index
    %c164 = arith.constant 164 : index
    %227 = vector.load %arg14[%c0_147, %c164] : memref<32x512xbf16, #tpu.memory_space<vmem>>, vector<32x256xbf16>
    %c33 = arith.constant 33 : index
    %c0_148 = arith.constant 0 : index
    %228 = vector.load %arg2[%c33, %c0_148] : memref<49x256xbf16, #tpu.memory_space<vmem>>, vector<1x256xbf16>
    %229 = vector.broadcast %228 : vector<1x256xbf16> to vector<32x256xbf16>
    %230 = arith.mulf %227, %229 : vector<32x256xbf16>
    %c1056 = arith.constant 1056 : index
    %c0_149 = arith.constant 0 : index
    %231 = vector.load %arg15[%c1056, %c0_149] : memref<1568x256xbf16, #tpu.memory_space<vmem>>, vector<32x256xbf16>
    tpu.vector_store %arg15[%c1056, %c0_149], %230 {strides = array<i32>} : memref<1568x256xbf16, #tpu.memory_space<vmem>>, vector<32x256xbf16>,
    %c0_150 = arith.constant 0 : index
    %c166 = arith.constant 166 : index
    %232 = vector.load %arg14[%c0_150, %c166] : memref<32x512xbf16, #tpu.memory_space<vmem>>, vector<32x256xbf16>
    %c34_151 = arith.constant 34 : index
    %c0_152 = arith.constant 0 : index
    %233 = vector.load %arg2[%c34_151, %c0_152] : memref<49x256xbf16, #tpu.memory_space<vmem>>, vector<1x256xbf16>
    %234 = vector.broadcast %233 : vector<1x256xbf16> to vector<32x256xbf16>
    %235 = arith.mulf %232, %234 : vector<32x256xbf16>
    %c1088 = arith.constant 1088 : index
    %c0_153 = arith.constant 0 : index
    %236 = vector.load %arg15[%c1088, %c0_153] : memref<1568x256xbf16, #tpu.memory_space<vmem>>, vector<32x256xbf16>
    tpu.vector_store %arg15[%c1088, %c0_153], %235 {strides = array<i32>} : memref<1568x256xbf16, #tpu.memory_space<vmem>>, vector<32x256xbf16>,
    %c0_154 = arith.constant 0 : index
    %c186 = arith.constant 186 : index
    %237 = vector.load %arg14[%c0_154, %c186] : memref<32x512xbf16, #tpu.memory_space<vmem>>, vector<32x256xbf16>
    %c35 = arith.constant 35 : index
    %c0_155 = arith.constant 0 : index
    %238 = vector.load %arg2[%c35, %c0_155] : memref<49x256xbf16, #tpu.memory_space<vmem>>, vector<1x256xbf16>
    %239 = vector.broadcast %238 : vector<1x256xbf16> to vector<32x256xbf16>
    %240 = arith.mulf %237, %239 : vector<32x256xbf16>
    %c1120 = arith.constant 1120 : index
    %c0_156 = arith.constant 0 : index
    %241 = vector.load %arg15[%c1120, %c0_156] : memref<1568x256xbf16, #tpu.memory_space<vmem>>, vector<32x256xbf16>
    tpu.vector_store %arg15[%c1120, %c0_156], %240 {strides = array<i32>} : memref<1568x256xbf16, #tpu.memory_space<vmem>>, vector<32x256xbf16>,
    %c0_157 = arith.constant 0 : index
    %c188 = arith.constant 188 : index
    %242 = vector.load %arg14[%c0_157, %c188] : memref<32x512xbf16, #tpu.memory_space<vmem>>, vector<32x256xbf16>
    %c36_158 = arith.constant 36 : index
    %c0_159 = arith.constant 0 : index
    %243 = vector.load %arg2[%c36_158, %c0_159] : memref<49x256xbf16, #tpu.memory_space<vmem>>, vector<1x256xbf16>
    %244 = vector.broadcast %243 : vector<1x256xbf16> to vector<32x256xbf16>
    %245 = arith.mulf %242, %244 : vector<32x256xbf16>
    %c1152 = arith.constant 1152 : index
    %c0_160 = arith.constant 0 : index
    %246 = vector.load %arg15[%c1152, %c0_160] : memref<1568x256xbf16, #tpu.memory_space<vmem>>, vector<32x256xbf16>
    tpu.vector_store %arg15[%c1152, %c0_160], %245 {strides = array<i32>} : memref<1568x256xbf16, #tpu.memory_space<vmem>>, vector<32x256xbf16>,
    %c0_161 = arith.constant 0 : index
    %c190 = arith.constant 190 : index
    %247 = vector.load %arg14[%c0_161, %c190] : memref<32x512xbf16, #tpu.memory_space<vmem>>, vector<32x256xbf16>
    %c37 = arith.constant 37 : index
    %c0_162 = arith.constant 0 : index
    %248 = vector.load %arg2[%c37, %c0_162] : memref<49x256xbf16, #tpu.memory_space<vmem>>, vector<1x256xbf16>
    %249 = vector.broadcast %248 : vector<1x256xbf16> to vector<32x256xbf16>
    %250 = arith.mulf %247, %249 : vector<32x256xbf16>
    %c1184 = arith.constant 1184 : index
    %c0_163 = arith.constant 0 : index
    %251 = vector.load %arg15[%c1184, %c0_163] : memref<1568x256xbf16, #tpu.memory_space<vmem>>, vector<32x256xbf16>
    tpu.vector_store %arg15[%c1184, %c0_163], %250 {strides = array<i32>} : memref<1568x256xbf16, #tpu.memory_space<vmem>>, vector<32x256xbf16>,
    %c0_164 = arith.constant 0 : index
    %c192_165 = arith.constant 192 : index
    %252 = vector.load %arg14[%c0_164, %c192_165] : memref<32x512xbf16, #tpu.memory_space<vmem>>, vector<32x256xbf16>
    %c38_166 = arith.constant 38 : index
    %c0_167 = arith.constant 0 : index
    %253 = vector.load %arg2[%c38_166, %c0_167] : memref<49x256xbf16, #tpu.memory_space<vmem>>, vector<1x256xbf16>
    %254 = vector.broadcast %253 : vector<1x256xbf16> to vector<32x256xbf16>
    %255 = arith.mulf %252, %254 : vector<32x256xbf16>
    %c1216 = arith.constant 1216 : index
    %c0_168 = arith.constant 0 : index
    %256 = vector.load %arg15[%c1216, %c0_168] : memref<1568x256xbf16, #tpu.memory_space<vmem>>, vector<32x256xbf16>
    tpu.vector_store %arg15[%c1216, %c0_168], %255 {strides = array<i32>} : memref<1568x256xbf16, #tpu.memory_space<vmem>>, vector<32x256xbf16>,
    %c0_169 = arith.constant 0 : index
    %c194 = arith.constant 194 : index
    %257 = vector.load %arg14[%c0_169, %c194] : memref<32x512xbf16, #tpu.memory_space<vmem>>, vector<32x256xbf16>
    %c39 = arith.constant 39 : index
    %c0_170 = arith.constant 0 : index
    %258 = vector.load %arg2[%c39, %c0_170] : memref<49x256xbf16, #tpu.memory_space<vmem>>, vector<1x256xbf16>
    %259 = vector.broadcast %258 : vector<1x256xbf16> to vector<32x256xbf16>
    %260 = arith.mulf %257, %259 : vector<32x256xbf16>
    %c1248 = arith.constant 1248 : index
    %c0_171 = arith.constant 0 : index
    %261 = vector.load %arg15[%c1248, %c0_171] : memref<1568x256xbf16, #tpu.memory_space<vmem>>, vector<32x256xbf16>
    tpu.vector_store %arg15[%c1248, %c0_171], %260 {strides = array<i32>} : memref<1568x256xbf16, #tpu.memory_space<vmem>>, vector<32x256xbf16>,
    %c0_172 = arith.constant 0 : index
    %c196 = arith.constant 196 : index
    %262 = vector.load %arg14[%c0_172, %c196] : memref<32x512xbf16, #tpu.memory_space<vmem>>, vector<32x256xbf16>
    %c40 = arith.constant 40 : index
    %c0_173 = arith.constant 0 : index
    %263 = vector.load %arg2[%c40, %c0_173] : memref<49x256xbf16, #tpu.memory_space<vmem>>, vector<1x256xbf16>
    %264 = vector.broadcast %263 : vector<1x256xbf16> to vector<32x256xbf16>
    %265 = arith.mulf %262, %264 : vector<32x256xbf16>
    %c1280 = arith.constant 1280 : index
    %c0_174 = arith.constant 0 : index
    %266 = vector.load %arg15[%c1280, %c0_174] : memref<1568x256xbf16, #tpu.memory_space<vmem>>, vector<32x256xbf16>
    tpu.vector_store %arg15[%c1280, %c0_174], %265 {strides = array<i32>} : memref<1568x256xbf16, #tpu.memory_space<vmem>>, vector<32x256xbf16>,
    %c0_175 = arith.constant 0 : index
    %c198 = arith.constant 198 : index
    %267 = vector.load %arg14[%c0_175, %c198] : memref<32x512xbf16, #tpu.memory_space<vmem>>, vector<32x256xbf16>
    %c41 = arith.constant 41 : index
    %c0_176 = arith.constant 0 : index
    %268 = vector.load %arg2[%c41, %c0_176] : memref<49x256xbf16, #tpu.memory_space<vmem>>, vector<1x256xbf16>
    %269 = vector.broadcast %268 : vector<1x256xbf16> to vector<32x256xbf16>
    %270 = arith.mulf %267, %269 : vector<32x256xbf16>
    %c1312 = arith.constant 1312 : index
    %c0_177 = arith.constant 0 : index
    %271 = vector.load %arg15[%c1312, %c0_177] : memref<1568x256xbf16, #tpu.memory_space<vmem>>, vector<32x256xbf16>
    tpu.vector_store %arg15[%c1312, %c0_177], %270 {strides = array<i32>} : memref<1568x256xbf16, #tpu.memory_space<vmem>>, vector<32x256xbf16>,
    %c0_178 = arith.constant 0 : index
    %c218 = arith.constant 218 : index
    %272 = vector.load %arg14[%c0_178, %c218] : memref<32x512xbf16, #tpu.memory_space<vmem>>, vector<32x256xbf16>
    %c42 = arith.constant 42 : index
    %c0_179 = arith.constant 0 : index
    %273 = vector.load %arg2[%c42, %c0_179] : memref<49x256xbf16, #tpu.memory_space<vmem>>, vector<1x256xbf16>
    %274 = vector.broadcast %273 : vector<1x256xbf16> to vector<32x256xbf16>
    %275 = arith.mulf %272, %274 : vector<32x256xbf16>
    %c1344 = arith.constant 1344 : index
    %c0_180 = arith.constant 0 : index
    %276 = vector.load %arg15[%c1344, %c0_180] : memref<1568x256xbf16, #tpu.memory_space<vmem>>, vector<32x256xbf16>
    tpu.vector_store %arg15[%c1344, %c0_180], %275 {strides = array<i32>} : memref<1568x256xbf16, #tpu.memory_space<vmem>>, vector<32x256xbf16>,
    %c0_181 = arith.constant 0 : index
    %c220 = arith.constant 220 : index
    %277 = vector.load %arg14[%c0_181, %c220] : memref<32x512xbf16, #tpu.memory_space<vmem>>, vector<32x256xbf16>
    %c43 = arith.constant 43 : index
    %c0_182 = arith.constant 0 : index
    %278 = vector.load %arg2[%c43, %c0_182] : memref<49x256xbf16, #tpu.memory_space<vmem>>, vector<1x256xbf16>
    %279 = vector.broadcast %278 : vector<1x256xbf16> to vector<32x256xbf16>
    %280 = arith.mulf %277, %279 : vector<32x256xbf16>
    %c1376 = arith.constant 1376 : index
    %c0_183 = arith.constant 0 : index
    %281 = vector.load %arg15[%c1376, %c0_183] : memref<1568x256xbf16, #tpu.memory_space<vmem>>, vector<32x256xbf16>
    tpu.vector_store %arg15[%c1376, %c0_183], %280 {strides = array<i32>} : memref<1568x256xbf16, #tpu.memory_space<vmem>>, vector<32x256xbf16>,
    %c0_184 = arith.constant 0 : index
    %c222 = arith.constant 222 : index
    %282 = vector.load %arg14[%c0_184, %c222] : memref<32x512xbf16, #tpu.memory_space<vmem>>, vector<32x256xbf16>
    %c44 = arith.constant 44 : index
    %c0_185 = arith.constant 0 : index
    %283 = vector.load %arg2[%c44, %c0_185] : memref<49x256xbf16, #tpu.memory_space<vmem>>, vector<1x256xbf16>
    %284 = vector.broadcast %283 : vector<1x256xbf16> to vector<32x256xbf16>
    %285 = arith.mulf %282, %284 : vector<32x256xbf16>
    %c1408 = arith.constant 1408 : index
    %c0_186 = arith.constant 0 : index
    %286 = vector.load %arg15[%c1408, %c0_186] : memref<1568x256xbf16, #tpu.memory_space<vmem>>, vector<32x256xbf16>
    tpu.vector_store %arg15[%c1408, %c0_186], %285 {strides = array<i32>} : memref<1568x256xbf16, #tpu.memory_space<vmem>>, vector<32x256xbf16>,
    %c0_187 = arith.constant 0 : index
    %c224_188 = arith.constant 224 : index
    %287 = vector.load %arg14[%c0_187, %c224_188] : memref<32x512xbf16, #tpu.memory_space<vmem>>, vector<32x256xbf16>
    %c45 = arith.constant 45 : index
    %c0_189 = arith.constant 0 : index
    %288 = vector.load %arg2[%c45, %c0_189] : memref<49x256xbf16, #tpu.memory_space<vmem>>, vector<1x256xbf16>
    %289 = vector.broadcast %288 : vector<1x256xbf16> to vector<32x256xbf16>
    %290 = arith.mulf %287, %289 : vector<32x256xbf16>
    %c1440 = arith.constant 1440 : index
    %c0_190 = arith.constant 0 : index
    %291 = vector.load %arg15[%c1440, %c0_190] : memref<1568x256xbf16, #tpu.memory_space<vmem>>, vector<32x256xbf16>
    tpu.vector_store %arg15[%c1440, %c0_190], %290 {strides = array<i32>} : memref<1568x256xbf16, #tpu.memory_space<vmem>>, vector<32x256xbf16>,
    %c0_191 = arith.constant 0 : index
    %c226 = arith.constant 226 : index
    %292 = vector.load %arg14[%c0_191, %c226] : memref<32x512xbf16, #tpu.memory_space<vmem>>, vector<32x256xbf16>
    %c46 = arith.constant 46 : index
    %c0_192 = arith.constant 0 : index
    %293 = vector.load %arg2[%c46, %c0_192] : memref<49x256xbf16, #tpu.memory_space<vmem>>, vector<1x256xbf16>
    %294 = vector.broadcast %293 : vector<1x256xbf16> to vector<32x256xbf16>
    %295 = arith.mulf %292, %294 : vector<32x256xbf16>
    %c1472 = arith.constant 1472 : index
    %c0_193 = arith.constant 0 : index
    %296 = vector.load %arg15[%c1472, %c0_193] : memref<1568x256xbf16, #tpu.memory_space<vmem>>, vector<32x256xbf16>
    tpu.vector_store %arg15[%c1472, %c0_193], %295 {strides = array<i32>} : memref<1568x256xbf16, #tpu.memory_space<vmem>>, vector<32x256xbf16>,
    %c0_194 = arith.constant 0 : index
    %c228 = arith.constant 228 : index
    %297 = vector.load %arg14[%c0_194, %c228] : memref<32x512xbf16, #tpu.memory_space<vmem>>, vector<32x256xbf16>
    %c47 = arith.constant 47 : index
    %c0_195 = arith.constant 0 : index
    %298 = vector.load %arg2[%c47, %c0_195] : memref<49x256xbf16, #tpu.memory_space<vmem>>, vector<1x256xbf16>
    %299 = vector.broadcast %298 : vector<1x256xbf16> to vector<32x256xbf16>
    %300 = arith.mulf %297, %299 : vector<32x256xbf16>
    %c1504 = arith.constant 1504 : index
    %c0_196 = arith.constant 0 : index
    %301 = vector.load %arg15[%c1504, %c0_196] : memref<1568x256xbf16, #tpu.memory_space<vmem>>, vector<32x256xbf16>
    tpu.vector_store %arg15[%c1504, %c0_196], %300 {strides = array<i32>} : memref<1568x256xbf16, #tpu.memory_space<vmem>>, vector<32x256xbf16>,
    %c0_197 = arith.constant 0 : index
    %c230 = arith.constant 230 : index
    %302 = vector.load %arg14[%c0_197, %c230] : memref<32x512xbf16, #tpu.memory_space<vmem>>, vector<32x256xbf16>
    %c48 = arith.constant 48 : index
    %c0_198 = arith.constant 0 : index
    %303 = vector.load %arg2[%c48, %c0_198] : memref<49x256xbf16, #tpu.memory_space<vmem>>, vector<1x256xbf16>
    %304 = vector.broadcast %303 : vector<1x256xbf16> to vector<32x256xbf16>
    %305 = arith.mulf %302, %304 : vector<32x256xbf16>
    %c1536 = arith.constant 1536 : index
    %c0_199 = arith.constant 0 : index
    %306 = vector.load %arg15[%c1536, %c0_199] : memref<1568x256xbf16, #tpu.memory_space<vmem>>, vector<32x256xbf16>
    tpu.vector_store %arg15[%c1536, %c0_199], %305 {strides = array<i32>} : memref<1568x256xbf16, #tpu.memory_space<vmem>>, vector<32x256xbf16>,
    %c0_200 = arith.constant 0 : index
    %c0_201 = arith.constant 0 : index
    %307 = vector.load %arg11[%c0_200, %c0_201] : memref<32x1568xbf16, #tpu.memory_space<vmem>>, vector<32x1568xbf16>
    %c0_202 = arith.constant 0 : index
    %c0_203 = arith.constant 0 : index
    %308 = vector.load %arg15[%c0_202, %c0_203] : memref<1568x256xbf16, #tpu.memory_space<vmem>>, vector<1568x256xbf16>
    %cst_204 = arith.constant dense<0.000000e+00> : vector<32x256xf32>
    %309 = tpu.matmul %307, %308, %cst_204 {dimension_numbers = #tpu.dot_dimension_numbers<[1], [0], [0], [1], [0, 0, 1, 1], [], []>} : vector<32x1568xbf16>, vector<1568x256xbf16>, vector<32x256xf32> -> vector<32x256xf32>
    %c0_205 = arith.constant 0 : index
    %c0_206 = arith.constant 0 : index
    %310 = vector.load %arg12[%c0_205, %c0_206] : memref<32x1xf32, #tpu.memory_space<vmem>>, vector<32x1xf32>
    %311 = vector.broadcast %310 : vector<32x1xf32> to vector<32x256xf32>
    %312 = arith.addf %309, %311 : vector<32x256xf32>
    %313 = vector.shape_cast %312 : vector<32x256xf32> to vector<1x32x256xf32>
    %c0_207 = arith.constant 0 : index
    %c0_208 = arith.constant 0 : index
    %c0_209 = arith.constant 0 : index
    %314 = vector.load %arg13[%c0_207, %c0_208, %c0_209] : memref<1x32x256xf32, #tpu.memory_space<vmem>>, vector<1x32x256xf32>
    tpu.vector_store %arg13[%c0_207, %c0_208, %c0_209], %313 {strides = array<i32>} : memref<1x32x256xf32, #tpu.memory_space<vmem>>, vector<1x32x256xf32>,
    return
  }
  func.func @transform_0(%arg0: i32) -> (i32, i32, i32) {
    %c0_i32 = arith.constant 0 : i32
    %c0_i32_0 = arith.constant 0 : i32
    %c0_i32_1 = arith.constant 0 : i32
    return %arg0, %c0_i32, %c0_i32_0 : i32, i32, i32
  }
  func.func @transform_1(%arg0: i32) -> (i32, i32) {
    %c0_i32 = arith.constant 0 : i32
    %c0_i32_0 = arith.constant 0 : i32
    %c0_i32_1 = arith.constant 0 : i32
    return %c0_i32, %c0_i32_0 : i32, i32
  }
  func.func @transform_2(%arg0: i32) -> (i32, i32) {
    %c0_i32 = arith.constant 0 : i32
    %c0_i32_0 = arith.constant 0 : i32
    %c0_i32_1 = arith.constant 0 : i32
    return %c0_i32, %c0_i32_0 : i32, i32
  }
  func.func @transform_3(%arg0: i32) -> (i32, i32) {
    %c0_i32 = arith.constant 0 : i32
    %c0_i32_0 = arith.constant 0 : i32
    %c0_i32_1 = arith.constant 0 : i32
    return %c0_i32, %c0_i32_0 : i32, i32
  }
  func.func @transform_4(%arg0: i32) -> (i32, i32) {
    %c0_i32 = arith.constant 0 : i32
    %c0_i32_0 = arith.constant 0 : i32
    %c0_i32_1 = arith.constant 0 : i32
    return %c0_i32, %c0_i32_0 : i32, i32
  }
  func.func @transform_5(%arg0: i32) -> (i32, i32) {
    %c0_i32 = arith.constant 0 : i32
    %c0_i32_0 = arith.constant 0 : i32
    %c0_i32_1 = arith.constant 0 : i32
    return %c0_i32, %c0_i32_0 : i32, i32
  }
  func.func @transform_6(%arg0: i32) -> (i32, i32) {
    %c0_i32 = arith.constant 0 : i32
    %c0_i32_0 = arith.constant 0 : i32
    %c0_i32_1 = arith.constant 0 : i32
    return %c0_i32, %c0_i32_0 : i32, i32
  }
  func.func @transform_7(%arg0: i32) -> (i32, i32) {
    %c0_i32 = arith.constant 0 : i32
    %c0_i32_0 = arith.constant 0 : i32
    %c0_i32_1 = arith.constant 0 : i32
    return %c0_i32, %c0_i32_0 : i32, i32
  }
  func.func @transform_8(%arg0: i32) -> (i32, i32) {
    %c0_i32 = arith.constant 0 : i32
    %c0_i32_0 = arith.constant 0 : i32
    %c0_i32_1 = arith.constant 0 : i32
    return %c0_i32, %c0_i32_0 : i32, i32
  }
  func.func @transform_9(%arg0: i32) -> (i32, i32) {
    %c0_i32 = arith.constant 0 : i32
    %c0_i32_0 = arith.constant 0 : i32
    %c0_i32_1 = arith.constant 0 : i32
    return %c0_i32, %c0_i32_0 : i32, i32
  }
  func.func @transform_10(%arg0: i32) -> (i32, i32) {
    %c0_i32 = arith.constant 0 : i32
    %c0_i32_0 = arith.constant 0 : i32
    %c0_i32_1 = arith.constant 0 : i32
    return %c0_i32, %c0_i32_0 : i32, i32
  }
  func.func @transform_11(%arg0: i32) -> (i32, i32) {
    %c0_i32 = arith.constant 0 : i32
    %c0_i32_0 = arith.constant 0 : i32
    %c0_i32_1 = arith.constant 0 : i32
    return %c0_i32, %c0_i32_0 : i32, i32
  }
  func.func @transform_12(%arg0: i32) -> (i32, i32, i32) {
    %c0_i32 = arith.constant 0 : i32
    %c0_i32_0 = arith.constant 0 : i32
    %c0_i32_1 = arith.constant 0 : i32
    return %arg0, %c0_i32, %c0_i32_0 : i32, i32, i32
  }
}

</mosaic_0001>

<bundles_post_ra>
// kernel: tpu_custom_call.1
= control target key start
LH: loop header
LB: loop body
LE: loop exit
PB: predicated region body
PF: predicated region fallthrough
CT: control target
= control target key end

     0   :  { %s8855_s0 = inlined_call_operand.hbm [shape: f32[2,32,256], index: 0, kind: input, shape index: {}]   ;;  %s8856_s1 = inlined_call_operand.vmem [shape: bf16[49,256], index: 1, kind: input, shape index: {}]   ;;  %s8857_s2 = inlined_call_operand.vmem [shape: f32[1,32], index: 2, kind: input, shape index: {}]   ;;  %s8858_s3 = inlined_call_operand.<no memory space> [shape: f32[1,1], index: 3, kind: input, shape index: {}]   ;;  %s8859_s4 = inlined_call_operand.vmem [shape: f32[2,32], index: 4, kind: input, shape index: {}]   ;;  %s8860_s5 = inlined_call_operand.vmem [shape: f32[2,1], index: 5, kind: input, shape index: {}]   ;;  %s8861_s6 = inlined_call_operand.vmem [shape: f32[2,1], index: 6, kind: input, shape index: {}]   ;;  %s8862_s7 = inlined_call_operand.vmem [shape: f32[2,1], index: 7, kind: input, shape index: {}]   ;;  %s8863_s8 = inlined_call_operand.vmem [shape: f32[32,2], index: 8, kind: input, shape index: {}]   ;;  %s8864_s9 = inlined_call_operand.vmem [shape: f32[32,1], index: 9, kind: input, shape index: {}]   ;;  %s8865_s10 = inlined_call_operand.hbm [shape: bf16[32,1568], index: 10, kind: input, shape index: {}]   ;;  %s8866_s11 = inlined_call_operand.vmem [shape: f32[32,1], index: 11, kind: input, shape index: {}]   ;;  %s8867_s12 = inlined_call_operand.hbm [shape: f32[2,32,256], index: 12, kind: output, shape index: {}]  }
   0x1   :  { %9084 = sst [smem:[#allocation183_spill]] %s8855_s0  ;;  %v17_v0 = vstv %s8858_s3 }
   0x2   :  { %9085 = sst [smem:[#allocation184_spill]] %s8857_s2  ;;  %18 = vst [vmem:[#allocation4] sm:$0x1] %v17_v0 }
   0x3   :  { %9086 = sst [smem:[#allocation185_spill]] %s8859_s4 }
   0x4   :  { %9087 = sst [smem:[#allocation186_spill]] %s8860_s5 }
   0x5   :  { %9088 = sst [smem:[#allocation187_spill]] %s8861_s6 }
   0x6   :  { %9089 = sst [smem:[#allocation188_spill]] %s8862_s7 }
   0x7   :  { %9090 = sst [smem:[#allocation189_spill]] %s8863_s8 }
   0x8   :  { %9091 = sst [smem:[#allocation190_spill]] %s8865_s10 }
   0x9   :  { %9092 = sst [smem:[#allocation191_spill]] %s8866_s11 }
   0xa   :  { %9093 = sst [smem:[#allocation192_spill]] %s8867_s12 }
   0xb   :  { %19 = vsyncpa [#allocation6], 0 }
   0xc   :  { %21 = vsyncpa [#allocation6 + $0x1], 0 }
   0xd   :  { %22 = vsyncpa [#allocation9], 0 }
   0xe   :  { %23 = vsyncpa [#allocation7], 0 }
   0xf   :  { %25 = vsyncpa [#allocation7 + $0x1], 0  ;;  %s6010_s23 = smov 0   ;;  %s6012_s24 = smov 0  }
  0x10   :  { %s6014_s25 = smov 0   ;;  %s6016_s26 = smov 0  }
  0x11 LB: > { %9094 = sst [smem:[#allocation14_spill]] %s5888_s23  ;;  %s6031_s3 = sadd.s32 4294967295, %s5900_s26   ;;  %s5900_s26 = sphi %s6016_s26, %s9775_s26   ;;  %s5896_s25 = sphi %s6014_s25, %s9778_s25   ;;  %s5892_s24 = sphi %s6012_s24, %s9777_s24   ;;  %s5888_s23 = sphi %s6010_s23, %s9776_s23  }
  0x12   : > { %9095 = sst [smem:[#allocation15_spill]] %s5892_s24  ;;  %s5274_s27 = sadd.s32 4294967294, %s5900_s26  }
  0x13   : > { %9096 = sst [smem:[#allocation16_spill]] %s5896_s25  ;;  %p51_p0 = scmp.ne.s32.totalorder %s5892_s24, %s5888_s23 }
  0x14   : > { %9097 = sst [smem:[#allocation17_spill]] %s5900_s26  ;;  %p8871_p1 = scmp.eq.s32.totalorder %s6031_s3, 0 }
  0x15   : > { %9098 = sst [smem:[#allocation18_spill]] %s6031_s3  ;;  %p312_p3 = scmp.eq.s32.totalorder %s5274_s27, 1 }
  0x16   : > { %p6040_p4 = por %p8871_p1, %p51_p0  ;;  %p5275_p5 = scmp.ge.s32.totalorder %s5900_s26, 1 }
  0x17   : > { %p6045_p6 = por %p312_p3, %p51_p0  ;;  %p319_p7 = scmp.lt.s32.totalorder %s5900_s26, 3 }
  0x18   : > { %s9099_s28 = scalar_select %p6040_p4, 1, 0 }
  0x19   : > { %s9100_s29 = scalar_select %p6045_p6, 1, 0 }
  0x1a   : > { %p6050_p8 = pnand %p5275_p5, %p319_p7  ;;  %s5902_s13 = smov [#allocation8]  }
  0x1b   : > { %9101 = sst [smem:[#allocation19_spill]] %s9100_s29  ;;  %s358_s14 = sshll.u32 %s5902_s13, 4  ;;  %s6054_s14 = int_to_ptr.vmem [resolvable:$true] %s358_s14 }
  0x1c   : > { %s9102_s30 = scalar_select %p6050_p8, 1, 0 }
  0x1d   : > { %p5532_p9 = pneg %p6050_p8  ;;  %s6066_s16 = sadd.s32 1, %s5900_s26  }
  0x1e   : > { %9104 = sst [smem:[#allocation20_spill]] %s6066_s16  ;;  %s38_s17 = sadd.s32 1, %s5896_s25 }
  0x1f   : > { %p6061_p11 = pnand %p5532_p9, %p8871_p1  ;;  %s35_s18 = ssub.s32 %s5900_s26, %s6066_s16 }
  0x20   : > { %s9105_s10 = sld [smem:[#allocation190_spill]] }
  0x21   : > { %p5774_p13 = pneg %p6061_p11 }
  0x26   : > { %s5772_s21 = scalar_lea.hbm %s9105_s10, 3328 }
  0x27   : > { %p5773_p12 = scmp.ne.s32.totalorder %s9105_s10, %s5772_s21  ;;  %p5779_p5 = scmp.lt.u32.totalorder %s5772_s21, %s9105_s10 }
  0x29   : > { %p5775_p0 = pnand %p5774_p13, %p5773_p12 }
  0x2b   : > { %p5776_p3 = pneg %p5775_p0 }
  0x2d   : > { %p5781_p7 = pnand %p5779_p5, %p5776_p3 }
  0x2f   : > { %5784 = shalt.err (!%p5781_p7)
}
  0x30   : > { %s5785_s16 = scalar_lea.vmem %s6054_s14, 3328  ;;  %p5793_p2 = scmp.lt.s32.totalorder %s6054_s14, %s6054_s14 }
  0x31   : > { %p5786_p9 = scmp.ne.s32.totalorder %s6054_s14, %s5785_s16  ;;  %p5794_p6 = scmp.lt.s32.totalorder %s5785_s16, %s5785_s16 }
  0x33   : > { %p5788_p10 = pnand %p5786_p9, %p5774_p13  ;;  %p5795_p4 = por %p5794_p6, %p5793_p2 }
  0x35   : > { %p5789_p1 = pneg %p5788_p10 }
  0x37   : > { %p5796_p8 = pnand %p5795_p4, %p5789_p1 }
  0x39   : > { %5799 = shalt.err (!%p5796_p8)
}
  0x3a   : > { %s5903_s19 = smov 832   ;;  %s5904_s29 = smov 52  }
  0x3b   : > { %5535 = dma.hbm_to_vmem [thread:$0]  (!%p6061_p11), %s9105_s10, 3328, %s6054_s14, [#allocation9], %s5903_s19, %s5903_s19, %s5904_s29  }
  0x3c   : > { %p36_p2 = scmp.eq.s32.totalorder %s35_s18, 0  ;;  %p45_p1 = scmp.ne.s32.totalorder %s5896_s25, %s5892_s24 }
  0x3d   : > { %p46_p4 = scmp.eq.s32.totalorder %s5900_s26, 0  ;;  %p5545_p6 = scmp.lt.s32.totalorder %s5900_s26, 2 }
  0x3e   : > { %s6097_s16 = scalar_select %p36_p2, %s5896_s25, %s38_s17  }
  0x3f   : > { %p47_p8 = por %p46_p4, %p45_p1  ;;  %p9107_p10 = scmp.eq.s32.totalorder %s6031_s3, 1 }
  0x40   : > { %9106 = sst [smem:[#allocation21_spill]] %s6097_s16  ;;  %s375_s27 = sand.u32 1, %s5896_s25  }
  0x41   : > { %p6101_p12 = por %p9107_p10, %p45_p1  ;;  %s5423_s13 = sshll.u32 %s5900_s26, 10 }
  0x42   : > { %s5278_s23 = sshll.u32 %s375_s27, 6  ;;  %s9110_s0 = sld [smem:[#allocation183_spill]] }
  0x43   : > { %s9108_s22 = scalar_select %p6101_p12, 1, 0 }
  0x44   : > { %s379_s14 = scalar_lea.vmem [#allocation5], %s5278_s23  ;;  %p6112_p11 = pnand %p5545_p6, %p47_p8 }
  0x45   : > { %9109 = sst [smem:[#allocation22_spill]] %s9108_s22  ;;  %s386_s17 = sshll.u32 %s379_s14, 4  ;;  %s6116_s17 = int_to_ptr.vmem [resolvable:$true] %s386_s17 }
  0x46   : > { %s6118_s19 = scalar_lea.sflag [#allocation6], %s375_s27  ;;  %p5802_p0 = pneg %p6112_p11 }
  0x48   : > { %s6110_s20 = scalar_lea.hbm %s9110_s0, %s5423_s13  ;;  %s5805_s21 = scalar_lea.hbm %s9110_s0, 2048 }
  0x49   : > { %s5800_s29 = scalar_lea.hbm %s6110_s20, 1024  ;;  %p5806_p7 = scmp.lt.u32.totalorder %s6110_s20, %s9110_s0 }
  0x4a   : > { %p5801_p13 = scmp.ne.s32.totalorder %s6110_s20, %s5800_s29  ;;  %p5807_p9 = scmp.lt.u32.totalorder %s5805_s21, %s5800_s29 }
  0x4b   : > { %p5809_p1 = scmp.lt.u32.totalorder %s5800_s29, %s6110_s20 }
  0x4c   : > { %p5803_p3 = pnand %p5802_p0, %p5801_p13  ;;  %p5808_p2 = por %p5807_p9, %p5806_p7 }
  0x4e   : > { %p5804_p5 = pneg %p5803_p3  ;;  %p5810_p4 = por %p5809_p1, %p5808_p2 }
  0x50   : > { %p5811_p6 = pnand %p5810_p4, %p5804_p5 }
  0x52   : > { %5814 = shalt.err (!%p5811_p6)
}
  0x53   : > { %s5815_s27 = scalar_lea.vmem %s6116_s17, 1024  ;;  %s5905_s14 = smov [#allocation5]  }
  0x54   : > { %p5816_p8 = scmp.ne.s32.totalorder %s6116_s17, %s5815_s27  ;;  %s5820_s12 = sshll.u32 %s5905_s14, 4  ;;  %s5821_s12 = int_to_ptr.vmem [resolvable:$false] %s5820_s12 }
  0x55   : > { %s5822_s23 = scalar_lea.vmem %s5821_s12, 2048  ;;  %p5823_p3 = scmp.lt.s32.totalorder %s6116_s17, %s5821_s12 }
  0x56   : > { %p5818_p10 = pnand %p5816_p8, %p5802_p0  ;;  %p5824_p7 = scmp.lt.s32.totalorder %s5822_s23, %s5815_s27 }
  0x58   : > { %p5819_p13 = pneg %p5818_p10  ;;  %p5825_p9 = por %p5824_p7, %p5823_p3 }
  0x5a   : > { %p5826_p2 = pnand %p5825_p9, %p5819_p13 }
  0x5c   : > { %5829 = shalt.err (!%p5826_p2)
}
  0x5d   : > { %s5906_s29 = smov 256   ;;  %s5907_s21 = smov 16  }
  0x5e   : > { %5539 = dma.hbm_to_vmem [thread:$0]  (!%p6112_p11), %s6110_s20, 1024, %s6116_s17, %s6118_s19, %s5906_s29, %s5906_s29, %s5907_s21  }
  0x5f   : > { %p9112_p0 = scmp.ne.s32.totalorder %s9102_s30, 0 }
  0x61   : > { %398 = sbr.rel (%p9112_p0) target bundleno = 3833 (0xef9), region = 68 }
  0x68   : > { %s6149_s13 = sand.u32 1, %s5892_s24   ;;  %p9114_p5 = scmp.ne.s32.totalorder %s9099_s28, 0 }
  0x69   : > { %9113 = sst [smem:[#allocation23_spill]] %s6149_s13  ;;  %s8876_s15 = sshll.u32 %s6149_s13, 6 }
  0x6a   : > { %s401_s27 = scalar_lea.sflag [#allocation6], %s6149_s13  ;;  %s6155_s14 = scalar_lea.vmem [#allocation5], %s8876_s15 }
  0x6b   : > { %5875 = dma.done.wait (%p9114_p5), %s401_s27, 1024  }
  0x6c   : > { %5877 = vsyncadd (%p9114_p5), %s401_s27, 4294966272  ;;  %p9115_p11 = scmp.eq.s32.totalorder %s6031_s3, 0 }
  0x6e   : > { %5879 = dma.done.wait (%p9115_p11), [#allocation9], 3328   ;;  %p9116_p1 = pmov %p9115_p11 }
  0x6f   : > { %v5908_v1 = vmov 0.0   ;;  %v8925_v2 = vmov 0   ;;  %v451_v3 = vld [vmem:[%s6155_s14 + $0x8] sm:$0xff]  ;;  %v453_v4 = vld [vmem:[%s6155_s14 + $0x18] sm:$0xff]  ;;  %v450_v5 = vld [vmem:[%s6155_s14] sm:$0xff]  ;;  %s9117_s2 = sld [smem:[#allocation184_spill]]  ;;  %v465_v17 = vlaneseq }
  0x70   : > { %5881 = vsyncadd (%p9116_p1), [#allocation9], 4294963968  ;;  %537 = vmatprep.mubr.f32.mxu0 %v5908_v1  ;;  %5618 = vset.pattern.permute.xlu0 %v8925_v2  ;;  %v5454_v6 = vpack.c.bf16 %v453_v4, %v451_v3  ;;  %v452_v7 = vld [vmem:[%s6155_s14 + $0x10] sm:$0xff]  ;;  %v455_v8 = vld [vmem:[%s6155_s14 + $0x28] sm:$0xff]  ;;  %vm9030_vm0 = vcmask 261120   ;;  %vm544_vm1 = vcmask 1040384  }
  0x71   : > { %5619 = vset.pattern.permute.xlu1 %v8925_v2  ;;  %v457_v9 = vld [vmem:[%s6155_s14 + $0x38] sm:$0xff]  ;;  %v5456_v10 = vpack.c.bf16 %v452_v7, %v450_v5  ;;  %v454_v12 = vld [vmem:[%s6155_s14 + $0x20] sm:$0xff]  ;;  %v456_v13 = vld [vmem:[%s6155_s14 + $0x30] sm:$0xff]  ;;  %v6180_v18 = vshrl.u32 %v465_v17, 7  ;;  %v5910_v59 = vmov 0.0|0.0   ;;  %s8897_s18 = smov 26  }
  0x72   : > { %v5458_v11 = vpack.c.bf16 %v457_v9, %v455_v8  ;;  %5455 = vmatprep.subr.bf16.mxu0 %v5454_v6  ;;  %v459_v14 = vld [vmem:[#allocation4] sm:$0x1]  ;;  %v5460_v15 = vpack.c.bf16 %v456_v13, %v454_v12  ;;  %s8883_s23 = smov 102   ;;  %s8893_s29 = smov 28   ;;  %vm5932_vm2 = vmmov 0   ;;  %vm673_vm3 = vcmask 1024  }
  0x73   : > { %5457 = vmatpush1.bf16.msra.mxu0 %v5456_v10  ;;  %462 = vperm.xlu0 %5618, %v459_v14   ;;  %v6183_v19 = vsub.s32 0, %v6180_v18  ;;  %v857_v53 = vld [vmem:[%s8856_s1] sm:$0x11]  ;;  %s8881_s28 = smov 100   ;;  %s8891_s30 = smov 30   ;;  %vm722_vm4 = vcmask 1041408  }
  0x74   : > { %5459 = vmatprep.subr.bf16.mxu0 %v5458_v11  ;;  %v5292_v54 = vcombine.low %v857_v53, %v857_v53  ;;  %v5293_v56 = vcombine.high %v857_v53, %v857_v53  ;;  %s8879_s19 = smov 98   ;;  %s8887_s12 = smov 32   ;;  %v6251_v53 = vsub.s32 2, %v6180_v18  ;;  %vm8999_vm5 = vcmask 15360  }
  0x75   : > { %v458_v16 = vld [vmem:[%s9117_s2] sm:$0x1]  ;;  %s8877_s20 = smov 96   ;;  %s8885_s17 = smov 34   ;;  %vm883_vm6 = vcmask 211968   ;;  %vm959_vm7 = vcmask 228352  }
  0x76   : > { %v864_v55 = vpack.i.b16 %v5292_v54, %v5292_v54  ;;  %v871_v58 = vpack.i.b16 %v5293_v56, %v5293_v56  ;;  %s8889_s15 = smov 94   ;;  %s8895_s21 = smov 36   ;;  %vm9027_vm8 = vcmask 244736   ;;  %vm9038_vm9 = vcmask 277504  }
  0x77   : > { %5461 = vmatpush1.bf16.msra.mxu0 %v5460_v15  ;;  %s9131_s4 = sld [smem:[#allocation185_spill]]  ;;  %s8911_s27 = smov 4   ;;  %vm1259_vm10 = vcmask 293888   ;;  %vm1333_vm11 = vcmask 310272   ;;  %vm1409_vm12 = vcmask 474112   ;;  %vm8994_vm13 = vcmask 490496  }
  0x78   : > { %v869_v57 = vrot.slane %v864_v55, %v6183_v19  ;;  %5462 = vmatprep.subr.bf16.mxu0 %v5910_v59  ;;  %v876_v60 = vrot.slane %v871_v58, %v6183_v19  ;;  %s9134_s5 = sld [smem:[#allocation186_spill]]  ;;  %s9142_s6 = sld [smem:[#allocation187_spill]]  ;;  %vm8996_vm14 = vcmask 506880   ;;  %vm1633_vm15 = vcmask 523264  }
  0x79   : > { %s9143_s7 = sld [smem:[#allocation188_spill]]  ;;  %s9144_s8 = sld [smem:[#allocation189_spill]] }
  0x7a   : > { %5285 = vmatmul.mubr.msk.f32.vlgmr.msra.gmra.mrb[0].mxu0 %vm9030_vm0, %v458_v16  ;;  %s9154_s0 = smov 38   ;;  %s9156_s2 = smov 58  }
  0x7b   : > { %5443 = vmatprep.mubr.msk.f32.mxu0 %vm5932_vm2, %v5908_v1  ;;  %s9188_s10 = smov 70   ;;  %s9191_s25 = smov 92   ;;  %vm1512_vm2 = vcmask 556032  }
  0x7c   : > { %s9192_s24 = smov 90   ;;  %s9212_s26 = smov 122  }
  0x7d   : > { %s9215_s22 = smov 124   ;;  %s9226_s3 = smov 126  }
  0x7e   : > { %s9393_s13 = smov 6   ;;  %s5939_s11 = smov [#allocation10]  }
  0xf2   : > { %v463_v20 = vpop.permute.xlu0 %462 }
  0xf3   : > { %v468_v21 = vrot.slane %v463_v20, %v6183_v19 }
 0x14d   : > { %v539_v22 = vpop.f32.mrb[0].mxu0 }
 0x14e   : > { %v540_v23 = vadd.f32 %v539_v22, %v468_v21  ;;  %v541_v24 = vpop.f32.mrb[1].mxu0 }
 0x14f   : > { %v542_v25 = vadd.f32 %v541_v24, %v468_v21 }
 0x150   : > { %v545_v26 = vsel %vm544_vm1, %v540_v23, -inf }
 0x151   : > { %v546_v27 = vsel %vm544_vm1, %v542_v25, -inf }
 0x152   : > { %v547_v28 = vmax.f32 %v545_v26, %v546_v27  ;;  %v1007_v26 = vld [vmem:[%s8856_s1] sm:$0x22] }
 0x153   : > { %v5297_v27 = vcombine.high %v1007_v26, %v1007_v26 }
 0x154   : > { %548 = vmax.xlane.f32.xlu0 %v547_v28  ;;  %v5296_v28 = vcombine.low %v1007_v26, %v1007_v26 }
 0x1e1   : > { %v549_v29 = vpop.xlane.xlu0 %548 }
 0x1e2   : > { %v550_v30 = vsub.f32 %v540_v23, %v549_v29  ;;  %v551_v31 = vsub.f32 %v542_v25, %v549_v29 }
 0x1e4   : > { %v552_v32 = vmul.f32 1.442695, %v550_v30  ;;  %v554_v33 = vmul.f32 1.442695, %v551_v31  ;;  %v6220_v30 = vsub.s32 1, %v6180_v18  ;;  %v1021_v31 = vpack.i.b16 %v5297_v27, %v5297_v27 }
 0x1e6   : > { %5756 = vpow2.f32 %v552_v32  ;;  %v1014_v32 = vpack.i.b16 %v5296_v28, %v5296_v28 }
 0x1e7   : > { %5758 = vpow2.f32 %v554_v33 }
 0x1f0   : > { %v5757_v34 = vpop.eup %5756 }
 0x1f1   : > { %v5759_v35 = vpop.eup %5758  ;;  %v556_v36 = vsel %vm544_vm1, %v5757_v34, 0.0  ;;  %v564_v37 = vrot.slane %v5757_v34, %v6183_v19 }
 0x1f2   : > { %v557_v38 = vsel %vm544_vm1, %v5759_v35, 0.0  ;;  %v568_v39 = vrot.slane %v5759_v35, %v6183_v19  ;;  %v1026_v35 = vrot.slane %v1021_v31, %v6220_v30  ;;  %vm8997_vm1 = vcmask 539648  }
 0x1f3   : > { %v558_v40 = vadd.f32 %v557_v38, %v556_v36  ;;  %v569_v41 = vmul.f32 %v564_v37, %v450_v5  ;;  %v571_v44 = vmul.f32 %v564_v37, %v452_v7  ;;  %v573_v47 = vmul.f32 %v564_v37, %v454_v12 }
 0x1f4   : > { %v570_v42 = vmul.f32 %v568_v39, %v451_v3  ;;  %v572_v45 = vmul.f32 %v568_v39, %v453_v4  ;;  %v574_v48 = vmul.f32 %v568_v39, %v455_v8  ;;  %v575_v50 = vmul.f32 %v564_v37, %v456_v13  ;;  %v931_v3 = vld [vmem:[%s8856_s1] sm:$0x11]  ;;  %v1081_v37 = vld [vmem:[%s8856_s1] sm:$0x22] }
 0x1f5   : > { %559 = vadd.xlane.f32.xlu1 %v558_v40  ;;  %v576_v51 = vmul.f32 %v568_v39, %v457_v9  ;;  %v5295_v4 = vcombine.high %v931_v3, %v931_v3  ;;  %v5294_v5 = vcombine.low %v931_v3, %v931_v3  ;;  %v1019_v36 = vrot.slane %v1014_v32, %v6220_v30 }
 0x1f6   : > { %v577_v43 = vadd.f32 %v570_v42, %v569_v41  ;;  %v580_v46 = vadd.f32 %v572_v45, %v571_v44  ;;  %v583_v49 = vadd.f32 %v574_v48, %v573_v47  ;;  %v5299_v38 = vcombine.high %v1081_v37, %v1081_v37 }
 0x1f7   : > { %v586_v52 = vadd.f32 %v576_v51, %v575_v50  ;;  %v946_v10 = vshrl.u32 %v5295_v4, 16  ;;  %v938_v11 = vshrl.u32 %v5294_v5, 16  ;;  %v5298_v39 = vcombine.low %v1081_v37, %v1081_v37 }
 0x1f8   : > { %v1096_v40 = vshrl.u32 %v5299_v38, 16 }
 0x1f9   : > { %578 = vadd.xlane.f32.xlu1 %v577_v43  ;;  %v947_v17 = vpack.i.b16 %v946_v10, %v946_v10  ;;  %v939_v20 = vpack.i.b16 %v938_v11, %v938_v11  ;;  %v1088_v41 = vshrl.u32 %v5298_v39, 16  ;;  %v1307_v10 = vld [vmem:[%s8856_s1] sm:$0x88]  ;;  %v1457_v39 = vld [vmem:[%s8856_s1 + $0x8] sm:$0x11] }
 0x1fa   : > { %v1097_v43 = vpack.i.b16 %v1096_v40, %v1096_v40  ;;  %v5305_v11 = vcombine.high %v1307_v10, %v1307_v10  ;;  %v5309_v40 = vcombine.high %v1457_v39, %v1457_v39 }
 0x1fb   : > { %v952_v23 = vrot.slane %v947_v17, %v6183_v19  ;;  %v944_v24 = vrot.slane %v939_v20, %v6183_v19  ;;  %v1089_v44 = vpack.i.b16 %v1088_v41, %v1088_v41  ;;  %v5308_v41 = vcombine.low %v1457_v39, %v1457_v39  ;;  %v1754_v39 = vld [vmem:[%s8856_s1 + $0x8] sm:$0x44] }
 0x1fc   : > { %v1102_v47 = vrot.slane %v1097_v43, %v6220_v30 }
 0x1fd   : > { %581 = vadd.xlane.f32.xlu1 %v580_v46  ;;  %v1094_v48 = vrot.slane %v1089_v44, %v6220_v30  ;;  %v1471_v44 = vpack.i.b16 %v5309_v40, %v5309_v40  ;;  %v5317_v40 = vcombine.high %v1754_v39, %v1754_v39 }
 0x201   : > { %584 = vadd.xlane.f32.xlu1 %v583_v49  ;;  %v1157_v49 = vld [vmem:[%s8856_s1] sm:$0x44] }
 0x202   : > { %v5301_v50 = vcombine.high %v1157_v49, %v1157_v49  ;;  %v5300_v51 = vcombine.low %v1157_v49, %v1157_v49  ;;  %v1476_v49 = vrot.slane %v1471_v44, %v6183_v19 }
 0x204   : > { %v1171_v54 = vpack.i.b16 %v5301_v50, %v5301_v50  ;;  %v1164_v55 = vpack.i.b16 %v5300_v51, %v5300_v51  ;;  %v1531_v51 = vld [vmem:[%s8856_s1 + $0x8] sm:$0x11] }
 0x205   : > { %587 = vadd.xlane.f32.xlu1 %v586_v52 }
 0x206   : > { %v1176_v58 = vrot.slane %v1171_v54, %v6251_v53  ;;  %v5311_v54 = vcombine.high %v1531_v51, %v1531_v51 }
 0x216   : > { %879 = vrot.lane.b32.xlu1 %v869_v57, %s8897_s18 }
 0x21a   : > { %881 = vrot.lane.b32.xlu1 %v876_v60, %s8897_s18  ;;  %v1231_v60 = vld [vmem:[%s8856_s1] sm:$0x44]  ;;  %s8915_s18 = smov 6  }
 0x282   : > { %v560_v61 = vpop.xlane.xlu1 %559 }
 0x283   : > { %v592_v62 = vrot.slane %v560_v61, %v6183_v19  ;;  %v5303_v61 = vcombine.high %v1231_v60, %v1231_v60 }
 0x285   : > { %5760 = vrcp.f32 %v592_v62  ;;  %v5302_v62 = vcombine.low %v1231_v60, %v1231_v60 }
 0x286   : > { %v579_v63 = vpop.xlane.xlu1 %578 }
 0x28a   : > { %v582_v0 = vpop.xlane.xlu1 %581 }
 0x28e   : > { %v585_v6 = vpop.xlane.xlu1 %584 }
 0x28f   : > { %v5761_v7 = vpop.eup %5760 }
 0x290   : > { %v594_v8 = vmul.f32 %v5761_v7, %v579_v63  ;;  %v595_v9 = vmul.f32 %v5761_v7, %v582_v0  ;;  %v596_v14 = vmul.f32 %v5761_v7, %v585_v6  ;;  %v1246_v63 = vshrl.u32 %v5303_v61, 16 }
 0x291   : > { %v1238_v0 = vshrl.u32 %v5302_v62, 16 }
 0x292   : > { %v5463_v12 = vpack.c.bf16 %v595_v9, %v594_v8  ;;  %v588_v13 = vpop.xlane.xlu1 %587  ;;  %v1247_v4 = vpack.i.b16 %v1246_v63, %v1246_v63 }
 0x293   : > { %v597_v15 = vmul.f32 %v5761_v7, %v588_v13  ;;  %v1239_v5 = vpack.i.b16 %v1238_v0, %v1238_v0 }
 0x294   : > { %5464 = vmatpush3.bf16.msra.mxu0 %v5463_v12  ;;  %v1252_v8 = vrot.slane %v1247_v4, %v6251_v53  ;;  %v5304_v12 = vcombine.low %v1307_v10, %v1307_v10 }
 0x295   : > { %v5466_v16 = vpack.c.bf16 %v597_v15, %v596_v14  ;;  %5465 = vmatprep.subr.bf16.mxu0 %v5910_v59  ;;  %v1169_v59 = vrot.slane %v1164_v55, %v6251_v53  ;;  %v1244_v9 = vrot.slane %v1239_v5, %v6251_v53  ;;  %v6282_v14 = vsub.s32 3, %v6180_v18  ;;  %v1381_v18 = vld [vmem:[%s8856_s1] sm:$0x88]  ;;  %v1607_v5 = vld [vmem:[%s8856_s1 + $0x8] sm:$0x22] }
 0x296   : > { %v6203_v21 = vpop.permute.xlu1 %879  ;;  %v1321_v15 = vpack.i.b16 %v5305_v11, %v5305_v11  ;;  %v5306_v26 = vcombine.low %v1381_v18, %v1381_v18  ;;  %v5310_v55 = vcombine.low %v1531_v51, %v1531_v51 }
 0x297   : > { %v888_v22 = vmul.bf16 0, %v6203_v21 }
 0x298   : > { %5467 = vmatpush3.bf16.msra.mxu0 %v5466_v16  ;;  %v1314_v16 = vpack.i.b16 %v5304_v12, %v5304_v12  ;;  %v1388_v28 = vshrl.u32 %v5306_v26, 16 }
 0x299   : > { %906 = vrot.lane.b32.xlu0 %v888_v22, %s8883_s23  ;;  %900 = vrot.lane.b32.xlu1 %v888_v22, %s8883_s23  ;;  %v1326_v22 = vrot.slane %v1321_v15, %v6282_v14  ;;  %s8907_s23 = smov 90  }
 0x29a   : > { %v6212_v25 = vpop.permute.xlu1 %881 }
 0x29d   : > { %957 = vrot.lane.b32.xlu0 %v952_v23, %s8893_s29  ;;  %955 = vrot.lane.b32.xlu1 %v944_v24, %s8893_s29  ;;  %v1319_v23 = vrot.slane %v1314_v16, %v6282_v14  ;;  %v5307_v24 = vcombine.high %v1381_v18, %v1381_v18  ;;  %s8905_s29 = smov 64  }
 0x29f   : > { %v1396_v27 = vshrl.u32 %v5307_v24, 16 }
 0x2a1   : > { %v1397_v32 = vpack.i.b16 %v1396_v27, %v1396_v27 }
 0x2a3   : > { %v1402_v37 = vrot.slane %v1397_v32, %v6282_v14 }
 0x30b   : > { %v6217_v29 = vpop.permute.xlu1 %900 }
 0x30c   : > { %9118 = vst [vmem:[#allocation24_spill] sm:$0xff] %v6217_v29 }
 0x30f   : > { %v6222_v33 = vpop.permute.xlu1 %955 }
 0x310   : > { %v964_v34 = vmul.bf16 0, %v6222_v33 }
 0x312   : > { %982 = vrot.lane.b32.xlu0 %v964_v34, %s8881_s28  ;;  %976 = vrot.lane.b32.xlu1 %v964_v34, %s8881_s28  ;;  %v1389_v34 = vpack.i.b16 %v1388_v28, %v1388_v28  ;;  %s8921_s28 = smov 58  }
 0x314   : > { %v1394_v38 = vrot.slane %v1389_v34, %v6282_v14 }
 0x316   : > { %1031 = vrot.lane.b32.xlu0 %v1026_v35, %s8891_s30  ;;  %1029 = vrot.lane.b32.xlu1 %v1019_v36, %s8891_s30  ;;  %s8901_s30 = smov 68  }
 0x384   : > { %v6234_v42 = vpop.permute.xlu1 %976 }
 0x385   : > { %9119 = vst [vmem:[#allocation25_spill] sm:$0xff] %v6234_v42 }
 0x388   : > { %v6236_v45 = vpop.permute.xlu1 %1029 }
 0x389   : > { %v1038_v46 = vmul.bf16 0, %v6236_v45 }
 0x38b   : > { %1056 = vrot.lane.b32.xlu0 %v1038_v46, %s8879_s19  ;;  %1050 = vrot.lane.b32.xlu1 %v1038_v46, %s8879_s19  ;;  %s8913_s19 = smov 92   ;;  %v1464_v46 = vpack.i.b16 %v5308_v41, %v5308_v41  ;;  %v5316_v41 = vcombine.low %v1754_v39, %v1754_v39  ;;  %v1972_v39 = vld [vmem:[%s8856_s1 + $0x8] sm:$0x88] }
 0x38d   : > { %v1469_v50 = vrot.slane %v1464_v46, %v6183_v19  ;;  %v1768_v46 = vpack.i.b16 %v5317_v40, %v5317_v40 }
 0x38f   : > { %1107 = vrot.lane.b32.xlu0 %v1102_v47, %s8887_s12  ;;  %1105 = vrot.lane.b32.xlu1 %v1094_v48, %s8887_s12  ;;  %s8899_s12 = smov 70   ;;  %v1773_v51 = vrot.slane %v1768_v46, %v6251_v53  ;;  %v2742_v46 = vld [vmem:[%s8856_s1 + $0x18] sm:$0x22] }
 0x3fd   : > { %v6248_v52 = vpop.permute.xlu1 %1050 }
 0x3fe   : > { %9120 = vst [vmem:[#allocation26_spill] sm:$0xff] %v6248_v52 }
 0x401   : > { %v6253_v56 = vpop.permute.xlu1 %1105 }
 0x402   : > { %v1114_v57 = vmul.bf16 0, %v6253_v56 }
 0x404   : > { %1132 = vrot.lane.b32.xlu0 %v1114_v57, %s8877_s20  ;;  %1126 = vrot.lane.b32.xlu1 %v1114_v57, %s8877_s20  ;;  %s8923_s20 = smov 38   ;;  %v1546_v57 = vshrl.u32 %v5311_v54, 16 }
 0x406   : > { %v1547_v60 = vpack.i.b16 %v1546_v57, %v1546_v57 }
 0x408   : > { %1181 = vrot.lane.b32.xlu0 %v1176_v58, %s8885_s17  ;;  %1179 = vrot.lane.b32.xlu1 %v1169_v59, %s8885_s17  ;;  %s8919_s17 = smov 60   ;;  %v1538_v58 = vshrl.u32 %v5310_v55, 16  ;;  %v1552_v0 = vrot.slane %v1547_v60, %v6183_v19  ;;  %v1826_v55 = vld [vmem:[%s8856_s1 + $0x8] sm:$0x44] }
 0x409   : > { %v5319_v57 = vcombine.high %v1826_v55, %v1826_v55 }
 0x40a   : > { %v1539_v61 = vpack.i.b16 %v1538_v58, %v1538_v58  ;;  %v5318_v58 = vcombine.low %v1826_v55, %v1826_v55  ;;  %v5323_v55 = vcombine.high %v1972_v39, %v1972_v39 }
 0x40b   : > { %v1841_v60 = vshrl.u32 %v5319_v57, 16 }
 0x40c   : > { %v1544_v4 = vrot.slane %v1539_v61, %v6183_v19  ;;  %v1833_v61 = vshrl.u32 %v5318_v58, 16 }
 0x476   : > { %v6265_v3 = vpop.permute.xlu1 %1126 }
 0x477   : > { %9121 = vst [vmem:[#allocation27_spill] sm:$0xff] %v6265_v3 }
 0x47a   : > { %v6267_v6 = vpop.permute.xlu1 %1179 }
 0x47b   : > { %v1188_v7 = vmul.bf16 0, %v6267_v6 }
 0x47d   : > { %1206 = vrot.lane.b32.xlu0 %v1188_v7, %s8889_s15  ;;  %1200 = vrot.lane.b32.xlu1 %v1188_v7, %s8889_s15  ;;  %s8917_s15 = smov 62   ;;  %v5313_v7 = vcombine.high %v1607_v5, %v1607_v5 }
 0x47f   : > { %v1621_v10 = vpack.i.b16 %v5313_v7, %v5313_v7 }
 0x481   : > { %1257 = vrot.lane.b32.xlu0 %v1252_v8, %s8895_s21  ;;  %1255 = vrot.lane.b32.xlu1 %v1244_v9, %s8895_s21  ;;  %v5312_v8 = vcombine.low %v1607_v5, %v1607_v5  ;;  %s8903_s21 = smov 66   ;;  %v1626_v16 = vrot.slane %v1621_v10, %v6220_v30 }
 0x483   : > { %v1614_v11 = vpack.i.b16 %v5312_v8, %v5312_v8 }
 0x4ef   : > { %v6279_v13 = vpop.permute.xlu1 %1200 }
 0x4f0   : > { %9122 = vst [vmem:[#allocation28_spill] sm:$0xff] %v6279_v13 }
 0x4f3   : > { %v6284_v17 = vpop.permute.xlu1 %1255 }
 0x4f4   : > { %v1264_v20 = vmul.bf16 0, %v6284_v17 }
 0x4f6   : > { %1282 = vrot.lane.b32.xlu0 %v1264_v20, %s8913_s19  ;;  %1276 = vrot.lane.b32.xlu1 %v1264_v20, %s8913_s19  ;;  %v1619_v20 = vrot.slane %v1614_v11, %v6220_v30  ;;  %v1900_v11 = vld [vmem:[%s8856_s1 + $0x8] sm:$0x88] }
 0x4fa   : > { %1331 = vrot.lane.b32.xlu0 %v1326_v22, %s8923_s20  ;;  %1329 = vrot.lane.b32.xlu1 %v1319_v23, %s8923_s20  ;;  %v1680_v22 = vld [vmem:[%s8856_s1 + $0x8] sm:$0x22] }
 0x4fb   : > { %v5315_v23 = vcombine.high %v1680_v22, %v1680_v22  ;;  %v5314_v18 = vcombine.low %v1680_v22, %v1680_v22 }
 0x4fd   : > { %v1695_v24 = vshrl.u32 %v5315_v23, 16  ;;  %v1687_v26 = vshrl.u32 %v5314_v18, 16 }
 0x4ff   : > { %v1696_v28 = vpack.i.b16 %v1695_v24, %v1695_v24  ;;  %v1688_v32 = vpack.i.b16 %v1687_v26, %v1687_v26 }
 0x568   : > { %v6296_v31 = vpop.permute.xlu1 %1276 }
 0x569   : > { %9123 = vst [vmem:[#allocation29_spill] sm:$0xff] %v6296_v31 }
 0x56c   : > { %v6298_v35 = vpop.permute.xlu1 %1329 }
 0x56d   : > { %v1338_v36 = vmul.bf16 0, %v6298_v35 }
 0x56f   : > { %1356 = vrot.lane.b32.xlu0 %v1338_v36, %s8907_s23  ;;  %1350 = vrot.lane.b32.xlu1 %v1338_v36, %s8907_s23 }
 0x573   : > { %1407 = vrot.lane.b32.xlu0 %v1402_v37, %s8921_s28  ;;  %1405 = vrot.lane.b32.xlu1 %v1394_v38, %s8921_s28  ;;  %v1701_v37 = vrot.slane %v1696_v28, %v6220_v30  ;;  %v1693_v38 = vrot.slane %v1688_v32, %v6220_v30  ;;  %v598_v32 = vld [vmem:[%s9131_s4] sm:$0x3]  ;;  %s9158_s4 = smov 102  }
 0x574   : > { %5444 = vmatmul.mubr.msk.f32.vlgmr.msra.gmra.mrb[2].mxu0 %vm9030_vm0, %v598_v32 }
 0x5e1   : > { %v6310_v43 = vpop.permute.xlu1 %1350 }
 0x5e2   : > { %9124 = vst [vmem:[#allocation30_spill] sm:$0xff] %v6310_v43 }
 0x5e5   : > { %v6312_v47 = vpop.permute.xlu1 %1405 }
 0x5e6   : > { %v1414_v48 = vmul.bf16 0, %v6312_v47 }
 0x5e8   : > { %1432 = vrot.lane.b32.xlu0 %v1414_v48, %s8899_s12  ;;  %1426 = vrot.lane.b32.xlu1 %v1414_v48, %s8899_s12  ;;  %v1761_v48 = vpack.i.b16 %v5316_v41, %v5316_v41 }
 0x5ea   : > { %v1766_v54 = vrot.slane %v1761_v48, %v6251_v53  ;;  %v5322_v48 = vcombine.low %v1972_v39, %v1972_v39 }
 0x5ec   : > { %1481 = vrot.lane.b32.xlu0 %v1476_v49, %s8919_s17  ;;  %1479 = vrot.lane.b32.xlu1 %v1469_v50, %s8919_s17  ;;  %v1979_v57 = vshrl.u32 %v5322_v48, 16 }
 0x647   : > { %v669_v48 = vpop.f32.mrb[2].mxu0 }
 0x65a   : > { %v6324_v59 = vpop.permute.xlu1 %1426 }
 0x65b   : > { %9125 = vst [vmem:[#allocation31_spill] sm:$0xff] %v6324_v59 }
 0x65e   : > { %v6326_v62 = vpop.permute.xlu1 %1479 }
 0x65f   : > { %v1488_v63 = vmul.bf16 0, %v6326_v62 }
 0x661   : > { %1506 = vrot.lane.b32.xlu0 %v1488_v63, %s8901_s30  ;;  %1500 = vrot.lane.b32.xlu1 %v1488_v63, %s8901_s30 }
 0x665   : > { %1557 = vrot.lane.b32.xlu0 %v1552_v0, %s8917_s15  ;;  %1555 = vrot.lane.b32.xlu1 %v1544_v4, %s8917_s15  ;;  %v1842_v0 = vpack.i.b16 %v1841_v60, %v1841_v60  ;;  %v1834_v4 = vpack.i.b16 %v1833_v61, %v1833_v61  ;;  %v2814_v60 = vld [vmem:[%s8856_s1 + $0x18] sm:$0x22] }
 0x667   : > { %v1847_v8 = vrot.slane %v1842_v0, %v6251_v53  ;;  %v1839_v10 = vrot.slane %v1834_v4, %v6251_v53 }
 0x6d3   : > { %v6338_v9 = vpop.permute.xlu1 %1500 }
 0x6d4   : > { %9126 = vst [vmem:[#allocation32_spill] sm:$0xff] %v6338_v9 }
 0x6d7   : > { %v6340_v12 = vpop.permute.xlu1 %1555 }
 0x6d8   : > { %v1564_v15 = vmul.bf16 0, %v6340_v12 }
 0x6da   : > { %1582 = vrot.lane.b32.xlu0 %v1564_v15, %s8903_s21  ;;  %1576 = vrot.lane.b32.xlu1 %v1564_v15, %s8903_s21  ;;  %v5321_v15 = vcombine.high %v1900_v11, %v1900_v11 }
 0x6dc   : > { %v1914_v22 = vpack.i.b16 %v5321_v15, %v5321_v15  ;;  %v5345_v15 = vcombine.high %v2742_v46, %v2742_v46 }
 0x6de   : > { %1631 = vrot.lane.b32.xlu0 %v1626_v16, %s8905_s29  ;;  %1629 = vrot.lane.b32.xlu1 %v1619_v20, %s8905_s29  ;;  %v5320_v16 = vcombine.low %v1900_v11, %v1900_v11  ;;  %v1919_v26 = vrot.slane %v1914_v22, %v6282_v14  ;;  %v5346_v11 = vcombine.low %v2814_v60, %v2814_v60 }
 0x6e0   : > { %v1907_v23 = vpack.i.b16 %v5320_v16, %v5320_v16 }
 0x6e2   : > { %v1912_v28 = vrot.slane %v1907_v23, %v6282_v14 }
 0x74c   : > { %v6352_v27 = vpop.permute.xlu1 %1576 }
 0x74d   : > { %9127 = vst [vmem:[#allocation33_spill] sm:$0xff] %v6352_v27 }
 0x750   : > { %v6354_v34 = vpop.permute.xlu1 %1629 }
 0x751   : > { %v1638_v36 = vmul.bf16 0, %v6354_v34 }
 0x753   : > { %1656 = vrot.lane.b32.xlu0 %v1638_v36, %s8905_s29  ;;  %1650 = vrot.lane.b32.xlu1 %v1638_v36, %s8905_s29  ;;  %v2668_v36 = vld [vmem:[%s8856_s1 + $0x18] sm:$0x11]  ;;  %s9139_s29 = smov 94  }
 0x757   : > { %1706 = vrot.lane.b32.xlu0 %v1701_v37, %s8903_s21  ;;  %1704 = vrot.lane.b32.xlu1 %v1693_v38, %s8903_s21  ;;  %v5342_v37 = vcombine.low %v2668_v36, %v2668_v36  ;;  %v5343_v38 = vcombine.high %v2668_v36, %v2668_v36  ;;  %s9141_s21 = smov 34  }
 0x759   : > { %v2675_v40 = vshrl.u32 %v5342_v37, 16  ;;  %v2683_v41 = vshrl.u32 %v5343_v38, 16 }
 0x7c5   : > { %v6366_v44 = vpop.permute.xlu1 %1650 }
 0x7c6   : > { %9128 = vst [vmem:[#allocation34_spill] sm:$0xff] %v6366_v44 }
 0x7c9   : > { %v6368_v49 = vpop.permute.xlu1 %1704 }
 0x7ca   : > { %v1712_v50 = vmul.bf16 0, %v6368_v49 }
 0x7cc   : > { %1730 = vrot.lane.b32.xlu0 %v1712_v50, %s8917_s15  ;;  %1724 = vrot.lane.b32.xlu1 %v1712_v50, %s8917_s15  ;;  %v2676_v50 = vpack.i.b16 %v2675_v40, %v2675_v40  ;;  %s8927_s15 = smov 126  }
 0x7ce   : > { %v2681_v0 = vrot.slane %v2676_v50, %v6183_v19 }
 0x7d0   : > { %1778 = vrot.lane.b32.xlu0 %v1773_v51, %s8901_s30  ;;  %1776 = vrot.lane.b32.xlu1 %v1766_v54, %s8901_s30  ;;  %v2684_v51 = vpack.i.b16 %v2683_v41, %v2683_v41  ;;  %v5344_v54 = vcombine.low %v2742_v46, %v2742_v46  ;;  %s9133_s30 = smov 26   ;;  %v599_v46 = vld [vmem:[%s9134_s5] sm:$0x3]  ;;  %s9165_s5 = smov 98  }
 0x7d1   : > { %v670_v50 = vadd.f32 %v669_v48, %v599_v46  ;;  %v2046_v48 = vld [vmem:[%s8856_s1 + $0x10] sm:$0x11] }
 0x7d2   : > { %v2689_v4 = vrot.slane %v2684_v51, %v6183_v19  ;;  %v5445_v51 = vpop.f32.mrb[3].mxu0 }
 0x83e   : > { %v6380_v63 = vpop.permute.xlu1 %1724 }
 0x83f   : > { %9129 = vst [vmem:[#allocation35_spill] sm:$0xff] %v6380_v63 }
 0x842   : > { %v6382_v5 = vpop.permute.xlu1 %1776 }
 0x843   : > { %v1784_v7 = vmul.bf16 0, %v6382_v5 }
 0x845   : > { %1802 = vrot.lane.b32.xlu0 %v1784_v7, %s8919_s17  ;;  %1796 = vrot.lane.b32.xlu1 %v1784_v7, %s8919_s17  ;;  %v2749_v7 = vpack.i.b16 %v5344_v54, %v5344_v54  ;;  %v674_v54 = vsel %vm673_vm3, %v670_v50, 0.0  ;;  %s8929_s17 = smov 124  }
 0x847   : > { %v2754_v22 = vrot.slane %v2749_v7, %v6220_v30  ;;  %v2960_v7 = vld [vmem:[%s8856_s1 + $0x18] sm:$0x44] }
 0x849   : > { %1852 = vrot.lane.b32.xlu0 %v1847_v8, %s8899_s12  ;;  %1850 = vrot.lane.b32.xlu1 %v1839_v10, %s8899_s12  ;;  %v1987_v8 = vshrl.u32 %v5323_v55, 16  ;;  %v1980_v10 = vpack.i.b16 %v1979_v57, %v1979_v57  ;;  %v675_v55 = vrot.slane %v674_v54, 4  ;;  %s9136_s12 = smov 36  }
 0x84b   : > { %v1988_v16 = vpack.i.b16 %v1987_v8, %v1987_v8  ;;  %v1985_v23 = vrot.slane %v1980_v10, %v6282_v14  ;;  %v676_v57 = vadd.f32 %v675_v55, %v674_v54  ;;  %v5347_v8 = vcombine.high %v2814_v60, %v2814_v60  ;;  %v6475_v54 = vld [vmem:[%s8856_s1 + $0x18] sm:$0x88] }
 0x84d   : > { %v1993_v32 = vrot.slane %v1988_v16, %v6282_v14 }
 0x8b7   : > { %v6394_v20 = vpop.permute.xlu1 %1796 }
 0x8b8   : > { %9130 = vst [vmem:[#allocation36_spill] sm:$0xff] %v6394_v20 }
 0x8bb   : > { %v6396_v18 = vpop.permute.xlu1 %1850 }
 0x8bc   : > { %v1858_v24 = vmul.bf16 0, %v6396_v18 }
 0x8be   : > { %1876 = vrot.lane.b32.xlu0 %v1858_v24, %s8921_s28  ;;  %1870 = vrot.lane.b32.xlu1 %v1858_v24, %s8921_s28  ;;  %v2821_v24 = vshrl.u32 %v5346_v11, 16  ;;  %v5350_v11 = vcombine.low %v2960_v7, %v2960_v7 }
 0x8c0   : > { %v2822_v36 = vpack.i.b16 %v2821_v24, %v2821_v24  ;;  %v2967_v24 = vshrl.u32 %v5350_v11, 16 }
 0x8c2   : > { %1924 = vrot.lane.b32.xlu0 %v1919_v26, %s8907_s23  ;;  %1922 = vrot.lane.b32.xlu1 %v1912_v28, %s8907_s23  ;;  %s8909_s23 = smov 2   ;;  %v2756_v26 = vpack.i.b16 %v5345_v15, %v5345_v15  ;;  %v2888_v28 = vld [vmem:[%s8856_s1 + $0x18] sm:$0x44]  ;;  %v2827_v39 = vrot.slane %v2822_v36, %v6220_v30  ;;  %v3034_v36 = vld [vmem:[%s8856_s1 + $0x18] sm:$0x88] }
 0x8c3   : > { %v5348_v37 = vcombine.low %v2888_v28, %v2888_v28  ;;  %v5352_v46 = vcombine.low %v3034_v36, %v3034_v36 }
 0x8c4   : > { %v2761_v38 = vrot.slane %v2756_v26, %v6220_v30 }
 0x8c5   : > { %v2895_v40 = vpack.i.b16 %v5348_v37, %v5348_v37 }
 0x8c7   : > { %v2900_v41 = vrot.slane %v2895_v40, %v6251_v53 }
 0x930   : > { %v6419_v1 = vpop.permute.xlu1 %1870 }
 0x931   : > { %9132 = vst [vmem:[#allocation37_spill] sm:$0xff] %v6419_v1 }
 0x934   : > { %v6421_v58 = vpop.permute.xlu1 %1922 }
 0x935   : > { %v1930_v61 = vmul.bf16 0, %v6421_v58 }
 0x937   : > { %1948 = vrot.lane.b32.xlu0 %v1930_v61, %s8923_s20  ;;  %1942 = vrot.lane.b32.xlu1 %v1930_v61, %s8923_s20  ;;  %v677_v61 = vrot.slane %v676_v57, 2  ;;  %s8931_s20 = smov 122  }
 0x93b   : > { %2692 = vrot.lane.b32.xlu0 %v2681_v0, %s8909_s23  ;;  %2694 = vrot.lane.b32.xlu1 %v2689_v4, %s8909_s23  ;;  %v678_v0 = vadd.f32 %v677_v61, %v676_v57  ;;  %s9138_s23 = smov 30  }
 0x93d   : > { %v679_v4 = vrot.slane %v678_v0, 1 }
 0x93f   : > { %2764 = vrot.lane.b32.xlu0 %v2754_v22, %s8911_s27  ;;  %1996 = vrot.lane.b32.xlu1 %v1985_v23, %s8913_s19  ;;  %v680_v10 = vadd.f32 %v679_v4, %v678_v0  ;;  %v2829_v22 = vshrl.u32 %v5347_v8, 16  ;;  %v5325_v0 = vcombine.high %v2046_v48, %v2046_v48  ;;  %v3041_v8 = vpack.i.b16 %v5352_v46, %v5352_v46 }
 0x941   : > { %v682_v15 = vmul.f32 0.5, %v680_v10  ;;  %v2830_v37 = vpack.i.b16 %v2829_v22, %v2829_v22  ;;  %v5354_v10 = vcombine.low %v6475_v54, %v6475_v54  ;;  %v2060_v22 = vpack.i.b16 %v5325_v0, %v5325_v0 }
 0x943   : > { %1998 = vrot.lane.b32.xlu0 %v1993_v32, %s8913_s19  ;;  %2766 = vrot.lane.b32.xlu1 %v2761_v38, %s8911_s27  ;;  %v6457_v23 = vsub.f32 %v670_v50, %v682_v15  ;;  %v5349_v38 = vcombine.high %v2888_v28, %v2888_v28  ;;  %v2835_v28 = vrot.slane %v2830_v37, %v6220_v30  ;;  %s9137_s19 = smov 28   ;;  %s9140_s27 = smov 32  }
 0x944   : > { %v2065_v46 = vrot.slane %v2060_v22, %v6183_v19  ;;  %v696_v22 = vld [vmem:[%s9142_s6] sm:$0x3]  ;;  %s9167_s6 = smov 64  }
 0x945   : > { %v684_v26 = vmul.f32 %v6457_v23, %v6457_v23  ;;  %v2902_v57 = vpack.i.b16 %v5349_v38, %v5349_v38  ;;  %v3113_v38 = vshrl.u32 %v5354_v10, 16 }
 0x947   : > { %2838 = vrot.lane.b32.xlu0 %v2827_v39, %s8915_s18  ;;  %v685_v60 = vsel %vm673_vm3, %v684_v26, 0.0  ;;  %v5351_v39 = vcombine.high %v2960_v7, %v2960_v7  ;;  %v2907_v37 = vrot.slane %v2902_v57, %v6251_v53  ;;  %vm8998_vm3 = vcmask 572416  }
 0x948   : > { %v686_v40 = vrot.slane %v685_v60, 4 }
 0x949   : > { %v2975_v61 = vshrl.u32 %v5351_v39, 16 }
 0x94a   : > { %v687_v51 = vadd.f32 %v686_v40, %v685_v60  ;;  %v3046_v60 = vrot.slane %v3041_v8, %v6282_v14  ;;  %v3180_v40 = vld [vmem:[%s8856_s1 + $0x20] sm:$0x11] }
 0x94b   : > { %2910 = vrot.lane.b32.xlu0 %v2900_v41, %s9133_s30  ;;  %v2968_v41 = vpack.i.b16 %v2967_v24, %v2967_v24  ;;  %v2976_v15 = vpack.i.b16 %v2975_v61, %v2975_v61  ;;  %v5324_v24 = vcombine.low %v2046_v48, %v2046_v48  ;;  %v5356_v57 = vcombine.low %v3180_v40, %v3180_v40 }
 0x94c   : > { %v688_v4 = vrot.slane %v687_v51, 2 }
 0x94d   : > { %v2973_v7 = vrot.slane %v2968_v41, %v6251_v53  ;;  %v2981_v41 = vrot.slane %v2976_v15, %v6251_v53  ;;  %v2053_v48 = vpack.i.b16 %v5324_v24, %v5324_v24  ;;  %v3187_v8 = vpack.i.b16 %v5356_v57, %v5356_v57 }
 0x94e   : > { %v689_v11 = vadd.f32 %v688_v4, %v687_v51 }
 0x94f   : > { %v2058_v0 = vrot.slane %v2053_v48, %v6183_v19 }
 0x950   : > { %v690_v26 = vrot.slane %v689_v11, 1 }
 0x952   : > { %v691_v39 = vadd.f32 %v690_v26, %v689_v11  ;;  %v698_v26 = vld [vmem:[%s9143_s7] sm:$0x3]  ;;  %s9182_s7 = smov 96  }
 0x954   : > { %v692_v51 = vmul.f32 0.5, %v691_v39  ;;  %v703_v39 = vld [vmem:[%s9144_s8 + $0x10] sm:$0xff] }
 0x956   : > { %v693_v61 = vadd.f32 1e-05, %v692_v51 }
 0x958   : > { %5762 = vrsqrt.f32 %v693_v61 }
 0x962   : > { %v5763_v11 = vpop.eup %5762 }
 0x963   : > { %v695_v15 = vmul.f32 %v5763_v11, %v6457_v23  ;;  %v702_v23 = vld [vmem:[%s9144_s8 + $0x8] sm:$0xff] }
 0x965   : > { %v697_v24 = vmul.f32 %v696_v22, %v695_v15 }
 0x9a9   : > { %v6455_v16 = vpop.permute.xlu1 %1942 }
 0x9aa   : > { %9135 = vst [vmem:[#allocation38_spill] sm:$0xff] %v6455_v16 }
 0x9ad   : > { %v6461_v32 = vpop.permute.xlu1 %2694 }
 0x9b1   : > { %v6470_v50 = vpop.permute.xlu1 %1996 }
 0x9b2   : > { %v2004_v55 = vmul.bf16 0, %v6470_v50 }
 0x9b4   : > { %2022 = vrot.lane.b32.xlu0 %v2004_v55, %s9136_s12  ;;  %2016 = vrot.lane.b32.xlu1 %v2004_v55, %s9136_s12  ;;  %v5353_v55 = vcombine.high %v3034_v36, %v3034_v36  ;;  %v3192_v36 = vrot.slane %v3187_v8, %v6183_v19  ;;  %v3252_v8 = vld [vmem:[%s8856_s1 + $0x20] sm:$0x11] }
 0x9b5   : > { %v6532_v51 = vpop.permute.xlu1 %2766  ;;  %v5359_v22 = vcombine.high %v3252_v8, %v3252_v8 }
 0x9b6   : > { %v3048_v4 = vpack.i.b16 %v5353_v55, %v5353_v55 }
 0x9b8   : > { %2840 = vrot.lane.b32.xlu1 %v2835_v28, %s8915_s18  ;;  %2984 = vrot.lane.b32.xlu0 %v2973_v7, %s9137_s19  ;;  %v3114_v28 = vpack.i.b16 %v3113_v38, %v3113_v38  ;;  %v3053_v10 = vrot.slane %v3048_v4, %v6282_v14  ;;  %v701_v38 = vld [vmem:[%s9144_s8] sm:$0xff]  ;;  %s9160_s18 = smov 60  }
 0x9b9   : > { %5448 = vmatprep.mubr.msk.f32.mxu1 %vm8999_vm5, %v701_v38 }
 0x9ba   : > { %v3119_v7 = vrot.slane %v3114_v28, %v6282_v14 }
 0x9bc   : > { %2912 = vrot.lane.b32.xlu1 %v2907_v37, %s9133_s30  ;;  %3056 = vrot.lane.b32.xlu0 %v3046_v60, %s9138_s23  ;;  %v699_v37 = vadd.f32 %v698_v26, %v697_v24  ;;  %s5834_s30 = sshll.u32 %s5939_s11, 4  ;;  %s5835_s30 = int_to_ptr.vmem [resolvable:$false] %s5834_s30 }
 0x9be   : > { %v700_v60 = vmax.f32 %v699_v37, 0.0  ;;  %v5357_v37 = vcombine.high %v3180_v40, %v3180_v40  ;;  %v2702_v40 = vmul.bf16 0, %v6461_v32 }
 0x9c0   : > { %2986 = vrot.lane.b32.xlu1 %v2981_v41, %s9137_s19  ;;  %2070 = vrot.lane.b32.xlu0 %v2065_v46, %s9139_s29  ;;  %v704_v41 = vld [vmem:[%s9144_s8 + $0x18] sm:$0xff]  ;;  %v6528_v46 = vpop.permute.xlu0 %906  ;;  %s9184_s8 = smov 68  }
 0x9c1   : > { %5446 = vmatprep.subr.msk.mxu1 %vm722_vm4, %v700_v60  ;;  %9145 = vst [vmem:[#allocation39_spill] sm:$0xff] %v6528_v46 }
 0x9c2   : > { %5447 = vmatpush3.msk.msra.mxu1 %vm722_vm4, %v700_v60  ;;  %vm9003_vm4 = vcmask 736256  }
 0x9c3   : > { %5449 = vmatmul.mubr.msk.f32.vlgmr.msra.gmra.mrb[0].mxu1 %vm8999_vm5, %v702_v23  ;;  %v3267_v23 = vshrl.u32 %v5359_v22, 16 }
 0x9c4   : > { %2068 = vrot.lane.b32.xlu1 %v2058_v0, %s9139_s29  ;;  %3130 = vrot.lane.b32.xlu0 %v3119_v7, %s9140_s27  ;;  %v6530_v48 = vpop.permute.xlu0 %957  ;;  %v5355_v0 = vcombine.high %v6475_v54, %v6475_v54 }
 0x9c5   : > { %5451 = vmatprep.mubr.msk.f32.mxu1 %vm8999_vm5, %v703_v39 }
 0x9c7   : > { %5452 = vmatmul.mubr.msk.f32.gmra.mrb[2].mxu1 %vm8999_vm5, %v704_v41 }
 0x9c8   : > { %3058 = vrot.lane.b32.xlu1 %v3053_v10, %s9138_s23  ;;  %3202 = vrot.lane.b32.xlu0 %v3192_v36, %s9141_s21  ;;  %v6534_v55 = vpop.permute.xlu0 %982  ;;  %v3121_v10 = vshrl.u32 %v5355_v0, 16  ;;  %v5358_v36 = vcombine.low %v3252_v8, %v3252_v8  ;;  %v3194_v0 = vpack.i.b16 %v5357_v37, %v5357_v37  ;;  %v3326_v8 = vld [vmem:[%s8856_s1 + $0x20] sm:$0x22] }
 0x9c9   : > { %9146 = vst [vmem:[#allocation40_spill] sm:$0xff] %v6534_v55 }
 0x9ca   : > { %v3122_v24 = vpack.i.b16 %v3121_v10, %v3121_v10  ;;  %v3259_v26 = vshrl.u32 %v5358_v36, 16  ;;  %v3268_v10 = vpack.i.b16 %v3267_v23, %v3267_v23  ;;  %v3199_v22 = vrot.slane %v3194_v0, %v6183_v19 }
 0x9cb   : > { %v5361_v23 = vcombine.high %v3326_v8, %v3326_v8 }
 0x9cc   : > { %v6538_v57 = vpop.permute.xlu0 %1031  ;;  %v3127_v39 = vrot.slane %v3122_v24, %v6282_v14  ;;  %v3260_v41 = vpack.i.b16 %v3259_v26, %v3259_v26  ;;  %v3398_v26 = vld [vmem:[%s8856_s1 + $0x20] sm:$0x22]  ;;  %v3273_v37 = vrot.slane %v3268_v10, %v6183_v19 }
 0x9cd   : > { %v5363_v0 = vcombine.high %v3398_v26, %v3398_v26  ;;  %v3340_v10 = vpack.i.b16 %v5361_v23, %v5361_v23 }
 0x9ce   : > { %v3265_v36 = vrot.slane %v3260_v41, %v6183_v19  ;;  %v2774_v41 = vmul.bf16 0, %v6532_v51 }
 0x9d0   : > { %v6544_v4 = vpop.permute.xlu0 %1056 }
 0x9d1   : > { %9149 = vst [vmem:[#allocation43_spill] sm:$0xff] %v6544_v4 }
 0x9d4   : > { %v6553_v15 = vpop.permute.xlu0 %1107 }
 0x9d8   : > { %v6558_v38 = vpop.permute.xlu0 %1132 }
 0x9d9   : > { %9152 = vst [vmem:[#allocation46_spill] sm:$0xff] %v6558_v38 }
 0x9dc   : > { %v6571_v24 = vpop.permute.xlu0 %1181 }
 0xa26   : > { %v6536_v28 = vpop.permute.xlu1 %2016 }
 0xa27   : > { %9147 = vst [vmem:[#allocation41_spill] sm:$0xff] %v6536_v28  ;;  %v6579_v28 = vpop.permute.xlu0 %1206 }
 0xa28   : > { %9153 = vst [vmem:[#allocation47_spill] sm:$0xff] %v6579_v28 }
 0xa2a   : > { %v6540_v61 = vpop.permute.xlu1 %2840 }
 0xa2b   : > { %9148 = vst [vmem:[#allocation42_spill] sm:$0xff] %v6540_v61 }
 0xa2e   : > { %v6546_v7 = vpop.permute.xlu1 %2912 }
 0xa2f   : > { %9150 = vst [vmem:[#allocation44_spill] sm:$0xff] %v6546_v7 }
 0xa32   : > { %v6551_v11 = vpop.permute.xlu1 %2986 }
 0xa33   : > { %9151 = vst [vmem:[#allocation45_spill] sm:$0xff] %v6551_v11 }
 0xa36   : > { %v6555_v60 = vpop.permute.xlu1 %2068 }
 0xa37   : > { %v2076_v54 = vmul.bf16 0, %v6555_v60 }
 0xa39   : > { %2094 = vrot.lane.b32.xlu0 %v2076_v54, %s9141_s21  ;;  %2088 = vrot.lane.b32.xlu1 %v2076_v54, %s9141_s21  ;;  %v5360_v54 = vcombine.low %v3326_v8, %v3326_v8  ;;  %v3345_v8 = vrot.slane %v3340_v10, %v6220_v30 }
 0xa3b   : > { %v3333_v2 = vpack.i.b16 %v5360_v54, %v5360_v54 }
 0xa3d   : > { %2716 = vrot.lane.b32.xlu0 %v2702_v40, %s8927_s15  ;;  %3132 = vrot.lane.b32.xlu1 %v3127_v39, %s9140_s27  ;;  %v5362_v39 = vcombine.low %v3398_v26, %v3398_v26  ;;  %v3338_v16 = vrot.slane %v3333_v2, %v6220_v30  ;;  %v3472_v26 = vld [vmem:[%s8856_s1 + $0x20] sm:$0x44] }
 0xa3f   : > { %v3405_v1 = vshrl.u32 %v5362_v39, 16 }
 0xa41   : > { %3276 = vrot.lane.b32.xlu0 %v3265_v36, %s9136_s12  ;;  %3204 = vrot.lane.b32.xlu1 %v3199_v22, %s9141_s21  ;;  %v6585_v36 = vpop.permute.xlu0 %1257  ;;  %v3413_v22 = vshrl.u32 %v5363_v0, 16  ;;  %v3406_v54 = vpack.i.b16 %v3405_v1, %v3405_v1  ;;  %v3544_v1 = vld [vmem:[%s8856_s1 + $0x20] sm:$0x44]  ;;  %v5365_v0 = vcombine.high %v3472_v26, %v3472_v26 }
 0xa42   : > { %v5366_v10 = vcombine.low %v3544_v1, %v3544_v1  ;;  %v5367_v63 = vcombine.high %v3544_v1, %v3544_v1 }
 0xa43   : > { %v3414_v2 = vpack.i.b16 %v3413_v22, %v3413_v22 }
 0xa44   : > { %v3551_v44 = vshrl.u32 %v5366_v10, 16 }
 0xa45   : > { %2788 = vrot.lane.b32.xlu0 %v2774_v41, %s8929_s17  ;;  %3278 = vrot.lane.b32.xlu1 %v3273_v37, %s9136_s12  ;;  %v2848_v37 = vmul.bf16 0, %v6540_v61  ;;  %v6594_v20 = vpop.permute.xlu0 %1282  ;;  %v3419_v23 = vrot.slane %v3414_v2, %v6220_v30  ;;  %v3486_v2 = vpack.i.b16 %v5365_v0, %v5365_v0  ;;  %v6625_v0 = vpop.permute.xlu1 %3058 }
 0xa46   : > { %9155 = vst [vmem:[#allocation48_spill] sm:$0xff] %v6594_v20  ;;  %9162 = vst [vmem:[#allocation51_spill] sm:$0xff] %v6625_v0 }
 0xa49   : > { %3348 = vrot.lane.b32.xlu0 %v3338_v16, %s9154_s0  ;;  %2722 = vrot.lane.b32.xlu1 %v2702_v40, %s8927_s15  ;;  %v3411_v16 = vrot.slane %v3406_v54, %v6220_v30  ;;  %v5364_v40 = vcombine.low %v3472_v26, %v3472_v26  ;;  %v6605_v22 = vpop.permute.xlu0 %1331  ;;  %v3559_v26 = vshrl.u32 %v5367_v63, 16  ;;  %s9171_s15 = smov 66  }
 0xa4a   : > { %9157 = vst [vmem:[#allocation49_spill] sm:$0xff] %v6605_v22 }
 0xa4b   : > { %v3479_v39 = vpack.i.b16 %v5364_v40, %v5364_v40  ;;  %v2994_v40 = vmul.bf16 0, %v6551_v11  ;;  %v3560_v1 = vpack.i.b16 %v3559_v26, %v3559_v26 }
 0xa4d   : > { %2862 = vrot.lane.b32.xlu0 %v2848_v37, %s8931_s20  ;;  %3350 = vrot.lane.b32.xlu1 %v3345_v8, %s9154_s0  ;;  %v2920_v8 = vmul.bf16 0, %v6546_v7  ;;  %v3484_v54 = vrot.slane %v3479_v39, %v6251_v53  ;;  %v6611_v27 = vpop.permute.xlu0 %1356 }
 0xa4e   : > { %9159 = vst [vmem:[#allocation50_spill] sm:$0xff] %v6611_v27 }
 0xa51   : > { %3422 = vrot.lane.b32.xlu0 %v3411_v16, %s9156_s2  ;;  %2794 = vrot.lane.b32.xlu1 %v2774_v41, %s8929_s17  ;;  %v3491_v41 = vrot.slane %v3486_v2, %v6251_v53  ;;  %v3552_v16 = vpack.i.b16 %v3551_v44, %v3551_v44  ;;  %v6617_v9 = vpop.permute.xlu0 %1407  ;;  %s9161_s17 = smov 100   ;;  %v3565_v44 = vrot.slane %v3560_v1, %v6251_v53 }
 0xa53   : > { %v3557_v39 = vrot.slane %v3552_v16, %v6251_v53 }
 0xa55   : > { %2934 = vrot.lane.b32.xlu0 %v2920_v8, %s9158_s4  ;;  %3424 = vrot.lane.b32.xlu1 %v3419_v23, %s9156_s2  ;;  %v3618_v23 = vld [vmem:[%s8856_s1 + $0x20] sm:$0x88]  ;;  %v6627_v63 = vpop.permute.xlu0 %1432 }
 0xa56   : > { %9163 = vst [vmem:[#allocation52_spill] sm:$0xff] %v6627_v63  ;;  %v5369_v10 = vcombine.high %v3618_v23, %v3618_v23 }
 0xa58   : > { %v3632_v26 = vpack.i.b16 %v5369_v10, %v5369_v10 }
 0xa59   : > { %3494 = vrot.lane.b32.xlu0 %v3484_v54, %s9160_s18  ;;  %2868 = vrot.lane.b32.xlu1 %v2848_v37, %s8931_s20  ;;  %v5368_v37 = vcombine.low %v3618_v23, %v3618_v23  ;;  %s9164_s20 = smov 62   ;;  %v3066_v54 = vmul.bf16 0, %v6625_v0  ;;  %v6639_v63 = vpop.permute.xlu0 %1481 }
 0xa5a   : > { %9166 = vst [vmem:[#allocation53_spill] sm:$0xff] %v6639_v63  ;;  %v3637_v23 = vrot.slane %v3632_v26, %v6282_v14 }
 0xa5b   : > { %v3625_v2 = vpack.i.b16 %v5368_v37, %v5368_v37 }
 0xa5d   : > { %3008 = vrot.lane.b32.xlu0 %v2994_v40, %s9161_s17  ;;  %3496 = vrot.lane.b32.xlu1 %v3491_v41, %s9160_s18  ;;  %v3690_v41 = vld [vmem:[%s8856_s1 + $0x20] sm:$0x88] }
 0xa5e   : > { %v5371_v16 = vcombine.high %v3690_v41, %v3690_v41 }
 0xa60   : > { %v3705_v1 = vshrl.u32 %v5371_v16, 16 }
 0xa61   : > { %2940 = vrot.lane.b32.xlu1 %v2920_v8, %s9158_s4  ;;  %3568 = vrot.lane.b32.xlu0 %v3557_v39, %s9164_s20  ;;  %v3630_v8 = vrot.slane %v3625_v2, %v6282_v14  ;;  %v6644_v39 = vpop.permute.xlu0 %1506 }
 0xa62   : > { %9168 = vst [vmem:[#allocation54_spill] sm:$0xff] %v6644_v39  ;;  %v3706_v37 = vpack.i.b16 %v3705_v1, %v3705_v1 }
 0xa64   : > { %v3711_v10 = vrot.slane %v3706_v37, %v6282_v14 }
 0xa65   : > { %3570 = vrot.lane.b32.xlu1 %v3565_v44, %s9164_s20  ;;  %3080 = vrot.lane.b32.xlu0 %v3066_v54, %s9165_s5  ;;  %v6647_v44 = vpop.permute.xlu0 %1557 }
 0xa66   : > { %9169 = vst [vmem:[#allocation55_spill] sm:$0xff] %v6647_v44 }
 0xa69   : > { %3014 = vrot.lane.b32.xlu1 %v2994_v40, %s9161_s17  ;;  %3640 = vrot.lane.b32.xlu0 %v3630_v8, %s9167_s6  ;;  %v6651_v2 = vpop.permute.xlu0 %1582 }
 0xa6a   : > { %9170 = vst [vmem:[#allocation56_spill] sm:$0xff] %v6651_v2 }
 0xa6d   : > { %3642 = vrot.lane.b32.xlu1 %v3637_v23, %s9167_s6  ;;  %v6654_v40 = vpop.permute.xlu0 %1631 }
 0xa6e   : > { %9172 = vst [vmem:[#allocation57_spill] sm:$0xff] %v6654_v40 }
 0xa71   : > { %3086 = vrot.lane.b32.xlu1 %v3066_v54, %s9165_s5  ;;  %v6656_v26 = vpop.permute.xlu0 %1656 }
 0xa72   : > { %9173 = vst [vmem:[#allocation58_spill] sm:$0xff] %v6656_v26  ;;  %v3764_v26 = vld [vmem:[%s8856_s1 + $0x28] sm:$0x11] }
 0xa73   : > { %v5373_v59 = vcombine.high %v3764_v26, %v3764_v26  ;;  %v5372_v38 = vcombine.low %v3764_v26, %v3764_v26 }
 0xa75   : > { %3716 = vrot.lane.b32.xlu1 %v3711_v10, %s9171_s15  ;;  %v6658_v16 = vpop.permute.xlu0 %1706  ;;  %v5370_v10 = vcombine.low %v3690_v41, %v3690_v41  ;;  %v3771_v4 = vpack.i.b16 %v5372_v38, %v5372_v38 }
 0xa76   : > { %9174 = vst [vmem:[#allocation59_spill] sm:$0xff] %v6658_v16 }
 0xa77   : > { %v3697_v27 = vshrl.u32 %v5370_v10, 16  ;;  %v3776_v26 = vrot.slane %v3771_v4, %v6183_v19 }
 0xa79   : > { %v6660_v8 = vpop.permute.xlu0 %1730  ;;  %v3698_v20 = vpack.i.b16 %v3697_v27, %v3697_v27 }
 0xa7a   : > { %9175 = vst [vmem:[#allocation60_spill] sm:$0xff] %v6660_v8 }
 0xa7d   : > { %v6662_v23 = vpop.permute.xlu0 %1778 }
 0xa7e   : > { %9176 = vst [vmem:[#allocation61_spill] sm:$0xff] %v6662_v23 }
 0xa81   : > { %v6664_v1 = vpop.permute.xlu0 %1802 }
 0xa82   : > { %9177 = vst [vmem:[#allocation62_spill] sm:$0xff] %v6664_v1  ;;  %v3836_v1 = vld [vmem:[%s8856_s1 + $0x28] sm:$0x11] }
 0xa83   : > { %v5375_v31 = vcombine.high %v3836_v1, %v3836_v1  ;;  %v5374_v52 = vcombine.low %v3836_v1, %v3836_v1  ;;  %v2118_v1 = vld [vmem:[%s8856_s1 + $0x10] sm:$0x11] }
 0xa84   : > { %v5326_v42 = vcombine.low %v2118_v1, %v2118_v1  ;;  %v5327_v11 = vcombine.high %v2118_v1, %v2118_v1 }
 0xa85   : > { %v6666_v39 = vpop.permute.xlu0 %1852  ;;  %v3851_v13 = vshrl.u32 %v5375_v31, 16 }
 0xa87   : > { %v3852_v27 = vpack.i.b16 %v3851_v13, %v3851_v13  ;;  %v3843_v13 = vshrl.u32 %v5374_v52, 16  ;;  %v3982_v52 = vld [vmem:[%s8856_s1 + $0x28] sm:$0x22] }
 0xa89   : > { %v6668_v54 = vpop.permute.xlu0 %1876  ;;  %v3857_v31 = vrot.slane %v3852_v27, %v6183_v19  ;;  %v3844_v27 = vpack.i.b16 %v3843_v13, %v3843_v13 }
 0xa8a   : > { %9178 = vst [vmem:[#allocation63_spill] sm:$0xff] %v6668_v54  ;;  %v3778_v54 = vpack.i.b16 %v5373_v59, %v5373_v59 }
 0xa8c   : > { %v3783_v10 = vrot.slane %v3778_v54, %v6183_v19  ;;  %v3910_v54 = vld [vmem:[%s8856_s1 + $0x28] sm:$0x22] }
 0xa8d   : > { %v6670_v37 = vpop.permute.xlu0 %1924  ;;  %v5376_v13 = vcombine.low %v3910_v54, %v3910_v54 }
 0xa8f   : > { %v3917_v0 = vpack.i.b16 %v5376_v13, %v5376_v13 }
 0xa91   : > { %v6672_v2 = vpop.permute.xlu0 %1948 }
 0xa92   : > { %9179 = vst [vmem:[#allocation64_spill] sm:$0xff] %v6672_v2 }
 0xa95   : > { %v6682_v43 = vpop.permute.xlu0 %2692 }
 0xa96   : > { %v6722_v4 = vpop.f32.mrb[0].mxu1 }
 0xa99   : > { %v6687_v2 = vpop.permute.xlu0 %2764 }
 0xaab   : > { %v6677_v8 = vpop.permute.xlu1 %2088 }
 0xaac   : > { %9180 = vst [vmem:[#allocation65_spill] sm:$0xff] %v6677_v8  ;;  %v3703_v8 = vrot.slane %v3698_v20, %v6282_v14  ;;  %v6703_v20 = vpop.permute.xlu0 %1998 }
 0xaaf   : > { %v6684_v28 = vpop.permute.xlu1 %3132 }
 0xab0   : > { %9181 = vst [vmem:[#allocation66_spill] sm:$0xff] %v6684_v28  ;;  %v3140_v41 = vmul.bf16 0, %v6684_v28 }
 0xab2   : > { %3160 = vrot.lane.b32.xlu1 %v3140_v41, %s9182_s7  ;;  %3154 = vrot.lane.b32.xlu0 %v3140_v41, %s9182_s7  ;;  %v6714_v41 = vpop.permute.xlu0 %2838 }
 0xab3   : > { %v6693_v3 = vpop.permute.xlu1 %3204  ;;  %9187 = vst [vmem:[#allocation70_spill] sm:$0xff] %v6714_v41 }
 0xab4   : > { %9183 = vst [vmem:[#allocation67_spill] sm:$0xff] %v6693_v3  ;;  %v3212_v59 = vmul.bf16 0, %v6693_v3 }
 0xab6   : > { %3788 = vrot.lane.b32.xlu1 %v3783_v10, %s9184_s8  ;;  %3714 = vrot.lane.b32.xlu0 %v3703_v8, %s9171_s15  ;;  %v5377_v8 = vcombine.high %v3910_v54, %v3910_v54  ;;  %v6726_v29 = vpop.permute.xlu0 %2910  ;;  %v3922_v54 = vrot.slane %v3917_v0, %v6220_v30  ;;  %v4056_v0 = vld [vmem:[%s8856_s1 + $0x28] sm:$0x44] }
 0xab7   : > { %v6698_v55 = vpop.permute.xlu1 %3278  ;;  %9190 = vst [vmem:[#allocation72_spill] sm:$0xff] %v6726_v29 }
 0xab8   : > { %9185 = vst [vmem:[#allocation68_spill] sm:$0xff] %v6698_v55  ;;  %v3286_v10 = vmul.bf16 0, %v6698_v55 }
 0xaba   : > { %3232 = vrot.lane.b32.xlu1 %v3212_v59, %s9139_s29  ;;  %3226 = vrot.lane.b32.xlu0 %v3212_v59, %s9139_s29  ;;  %v3924_v59 = vpack.i.b16 %v5377_v8, %v5377_v8  ;;  %v2125_v8 = vshrl.u32 %v5326_v42, 16  ;;  %v6737_v7 = vpop.permute.xlu0 %2022 }
 0xabb   : > { %v6709_v38 = vpop.permute.xlu1 %2722  ;;  %9194 = vst [vmem:[#allocation74_spill] sm:$0xff] %v6737_v7 }
 0xabc   : > { %9186 = vst [vmem:[#allocation69_spill] sm:$0xff] %v6709_v38  ;;  %v5379_v38 = vcombine.high %v3982_v52, %v3982_v52  ;;  %v2126_v28 = vpack.i.b16 %v2125_v8, %v2125_v8 }
 0xabe   : > { %3862 = vrot.lane.b32.xlu1 %v3857_v31, %s9188_s10  ;;  %3786 = vrot.lane.b32.xlu0 %v3776_v26, %s9184_s8  ;;  %v3929_v31 = vrot.slane %v3924_v59, %v6220_v30  ;;  %v3849_v26 = vrot.slane %v3844_v27, %v6183_v19  ;;  %v3997_v55 = vshrl.u32 %v5379_v38, 16  ;;  %v2131_v42 = vrot.slane %v2126_v28, %v6183_v19  ;;  %v2192_v27 = vld [vmem:[%s8856_s1 + $0x10] sm:$0x22]  ;;  %v6746_v1 = vpop.permute.xlu0 %2984 }
 0xabf   : > { %v6724_v46 = vpop.permute.xlu1 %3350  ;;  %v2133_v38 = vshrl.u32 %v5327_v11, 16  ;;  %v5378_v59 = vcombine.low %v3982_v52, %v3982_v52  ;;  %9195 = vst [vmem:[#allocation75_spill] sm:$0xff] %v6746_v1  ;;  %v5328_v11 = vcombine.low %v2192_v27, %v2192_v27  ;;  %v5381_v52 = vcombine.high %v4056_v0, %v4056_v0 }
 0xac0   : > { %9189 = vst [vmem:[#allocation71_spill] sm:$0xff] %v6724_v46  ;;  %v3358_v3 = vmul.bf16 0, %v6724_v46 }
 0xac1   : > { %v3989_v28 = vshrl.u32 %v5378_v59, 16  ;;  %v5329_v59 = vcombine.high %v2192_v27, %v2192_v27 }
 0xac2   : > { %3306 = vrot.lane.b32.xlu1 %v3286_v10, %s9191_s25  ;;  %3300 = vrot.lane.b32.xlu0 %v3286_v10, %s9191_s25  ;;  %v3998_v10 = vpack.i.b16 %v3997_v55, %v3997_v55  ;;  %v6757_v8 = vpop.permute.xlu0 %3056 }
 0xac3   : > { %v6735_v29 = vpop.permute.xlu1 %2794  ;;  %9197 = vst [vmem:[#allocation77_spill] sm:$0xff] %v6757_v8 }
 0xac4   : > { %9193 = vst [vmem:[#allocation73_spill] sm:$0xff] %v6735_v29  ;;  %v4003_v55 = vrot.slane %v3998_v10, %v6220_v30  ;;  %v3990_v10 = vpack.i.b16 %v3989_v28, %v3989_v28  ;;  %v6767_v29 = vpop.f32.mrb[1].mxu1 }
 0xac5   : > { %v6786_v8 = vpop.f32.mrb[2].mxu1 }
 0xac6   : > { %3934 = vrot.lane.b32.xlu1 %v3929_v31, %s9192_s24  ;;  %3860 = vrot.lane.b32.xlu0 %v3849_v26, %s9188_s10 }
 0xac7   : > { %v6748_v31 = vpop.permute.xlu1 %3424 }
 0xac8   : > { %9196 = vst [vmem:[#allocation76_spill] sm:$0xff] %v6748_v31  ;;  %v3432_v26 = vmul.bf16 0, %v6748_v31 }
 0xaca   : > { %3378 = vrot.lane.b32.xlu1 %v3358_v3, %s9192_s24  ;;  %3372 = vrot.lane.b32.xlu0 %v3358_v3, %s9192_s24  ;;  %v2134_v3 = vpack.i.b16 %v2133_v38, %v2133_v38  ;;  %v4070_v38 = vpack.i.b16 %v5381_v52, %v5381_v52  ;;  %v2206_v52 = vpack.i.b16 %v5329_v59, %v5329_v59 }
 0xacb   : > { %v6762_v7 = vpop.permute.xlu1 %2868 }
 0xacc   : > { %v2139_v13 = vrot.slane %v2134_v3, %v6183_v19  ;;  %9198 = vst [vmem:[#allocation78_spill] sm:$0xff] %v6762_v7  ;;  %v6776_v7 = vpop.permute.xlu0 %2070  ;;  %v4075_v27 = vrot.slane %v4070_v38, %v6251_v53  ;;  %v2211_v1 = vrot.slane %v2206_v52, %v6220_v30 }
 0xace   : > { %2142 = vrot.lane.b32.xlu1 %v2131_v42, %s9182_s7  ;;  %3932 = vrot.lane.b32.xlu0 %v3922_v54, %s9192_s24  ;;  %v2199_v42 = vpack.i.b16 %v5328_v11, %v5328_v11  ;;  %v2264_v54 = vld [vmem:[%s8856_s1 + $0x10] sm:$0x22]  ;;  %v4128_v11 = vld [vmem:[%s8856_s1 + $0x28] sm:$0x44] }
 0xacf   : > { %v5330_v28 = vcombine.low %v2264_v54, %v2264_v54  ;;  %v6778_v31 = vpop.permute.xlu1 %3496  ;;  %v5331_v41 = vcombine.high %v2264_v54, %v2264_v54  ;;  %v2338_v54 = vld [vmem:[%s8856_s1 + $0x10] sm:$0x44] }
 0xad0   : > { %v2204_v3 = vrot.slane %v2199_v42, %v6220_v30  ;;  %9199 = vst [vmem:[#allocation79_spill] sm:$0xff] %v6778_v31  ;;  %v5383_v42 = vcombine.high %v4128_v11, %v4128_v11  ;;  %v6784_v46 = vpop.permute.xlu0 %3130 }
 0xad1   : > { %9200 = vst [vmem:[#allocation80_spill] sm:$0xff] %v6784_v46 }
 0xad2   : > { %4008 = vrot.lane.b32.xlu1 %v4003_v55, %s9191_s25  ;;  %3446 = vrot.lane.b32.xlu0 %v3432_v26, %s9188_s10  ;;  %v3995_v55 = vrot.slane %v3990_v10, %v6220_v30  ;;  %v2271_v10 = vshrl.u32 %v5330_v28, 16 }
 0xad4   : > { %v2272_v59 = vpack.i.b16 %v2271_v10, %v2271_v10  ;;  %v6795_v28 = vpop.permute.xlu0 %3202 }
 0xad5   : > { %9202 = vst [vmem:[#allocation82_spill] sm:$0xff] %v6795_v28 }
 0xad6   : > { %2144 = vrot.lane.b32.xlu0 %v2139_v13, %s9182_s7  ;;  %3452 = vrot.lane.b32.xlu1 %v3432_v26, %s9188_s10  ;;  %v3504_v13 = vmul.bf16 0, %v6778_v31  ;;  %v5380_v26 = vcombine.low %v4056_v0, %v4056_v0  ;;  %v4143_v31 = vshrl.u32 %v5383_v42, 16  ;;  %v5382_v0 = vcombine.low %v4128_v11, %v4128_v11 }
 0xad7   : > { %v2277_v52 = vrot.slane %v2272_v59, %v6220_v30 }
 0xad8   : > { %v4063_v38 = vpack.i.b16 %v5380_v26, %v5380_v26  ;;  %v2279_v26 = vshrl.u32 %v5331_v41, 16  ;;  %v4135_v42 = vshrl.u32 %v5382_v0, 16  ;;  %v4202_v41 = vld [vmem:[%s8856_s1 + $0x28] sm:$0x88] }
 0xada   : > { %4006 = vrot.lane.b32.xlu0 %v3995_v55, %s9191_s25  ;;  %2214 = vrot.lane.b32.xlu1 %v2204_v3, %s9165_s5  ;;  %v6791_v55 = vpop.permute.xlu1 %2940  ;;  %v6793_v3 = vpop.f32.mrb[3].mxu1  ;;  %v4068_v46 = vrot.slane %v4063_v38, %v6251_v53  ;;  %v5332_v38 = vcombine.low %v2338_v54, %v2338_v54  ;;  %v4136_v59 = vpack.i.b16 %v4135_v42, %v4135_v42 }
 0xadb   : > { %9201 = vst [vmem:[#allocation81_spill] sm:$0xff] %v6791_v55  ;;  %v5385_v55 = vcombine.high %v4202_v41, %v4202_v41 }
 0xade   : > { %3518 = vrot.lane.b32.xlu0 %v3504_v13, %s9184_s8  ;;  %4080 = vrot.lane.b32.xlu1 %v4075_v27, %s9139_s29  ;;  %v4144_v27 = vpack.i.b16 %v4143_v31, %v4143_v31  ;;  %v6804_v10 = vpop.permute.xlu1 %3570  ;;  %v6813_v31 = vpop.permute.xlu0 %2094 }
 0xadf   : > { %9203 = vst [vmem:[#allocation83_spill] sm:$0xff] %v6804_v10  ;;  %v3578_v11 = vmul.bf16 0, %v6804_v10  ;;  %9204 = vst [vmem:[#allocation84_spill] sm:$0xff] %v6813_v31  ;;  %v5333_v10 = vcombine.high %v2338_v54, %v2338_v54 }
 0xae1   : > { %v2352_v31 = vpack.i.b16 %v5333_v10, %v5333_v10 }
 0xae2   : > { %2216 = vrot.lane.b32.xlu0 %v2211_v1, %s9165_s5  ;;  %3524 = vrot.lane.b32.xlu1 %v3504_v13, %s9184_s8  ;;  %v4149_v1 = vrot.slane %v4144_v27, %v6251_v53  ;;  %v2280_v13 = vpack.i.b16 %v2279_v26, %v2279_v26  ;;  %v2410_v27 = vld [vmem:[%s8856_s1 + $0x10] sm:$0x44]  ;;  %v4141_v26 = vrot.slane %v4136_v59, %v6251_v53  ;;  %v6824_v28 = vpop.permute.xlu0 %2716 }
 0xae3   : > { %9206 = vst [vmem:[#allocation86_spill] sm:$0xff] %v6824_v28  ;;  %v5335_v61 = vcombine.high %v2410_v27, %v2410_v27  ;;  %v2357_v10 = vrot.slane %v2352_v31, %v6251_v53  ;;  %v2486_v31 = vld [vmem:[%s8856_s1 + $0x10] sm:$0x88] }
 0xae4   : > { %v2285_v0 = vrot.slane %v2280_v13, %v6220_v30  ;;  %v4216_v30 = vpack.i.b16 %v5385_v55, %v5385_v55 }
 0xae6   : > { %4078 = vrot.lane.b32.xlu0 %v4068_v46, %s9139_s29  ;;  %2288 = vrot.lane.b32.xlu1 %v2277_v52, %s9161_s17  ;;  %v2345_v46 = vpack.i.b16 %v5332_v38, %v5332_v38  ;;  %v6818_v52 = vpop.permute.xlu1 %3014  ;;  %v4274_v38 = vld [vmem:[%s8856_s1 + $0x28] sm:$0x88]  ;;  %v6838_v55 = vpop.permute.xlu0 %3276 }
 0xae7   : > { %9205 = vst [vmem:[#allocation85_spill] sm:$0xff] %v6818_v52  ;;  %v5384_v52 = vcombine.low %v4202_v41, %v4202_v41  ;;  %9208 = vst [vmem:[#allocation88_spill] sm:$0xff] %v6838_v55 }
 0xae8   : > { %v2350_v42 = vrot.slane %v2345_v46, %v6251_v53 }
 0xae9   : > { %v4209_v28 = vpack.i.b16 %v5384_v52, %v5384_v52 }
 0xaea   : > { %3592 = vrot.lane.b32.xlu0 %v3578_v11, %s9171_s15  ;;  %4154 = vrot.lane.b32.xlu1 %v4149_v1, %s9182_s7  ;;  %v5334_v1 = vcombine.low %v2410_v27, %v2410_v27  ;;  %v6829_v13 = vpop.permute.xlu1 %3642 }
 0xaeb   : > { %9207 = vst [vmem:[#allocation87_spill] sm:$0xff] %v6829_v13  ;;  %v3650_v54 = vmul.bf16 0, %v6829_v13  ;;  %v2425_v13 = vshrl.u32 %v5335_v61, 16 }
 0xaec   : > { %v2417_v59 = vshrl.u32 %v5334_v1, 16  ;;  %v5386_v1 = vcombine.low %v4274_v38, %v4274_v38 }
 0xaee   : > { %2290 = vrot.lane.b32.xlu0 %v2285_v0, %s9161_s17  ;;  %3598 = vrot.lane.b32.xlu1 %v3578_v11, %s9171_s15  ;;  %v4221_v11 = vrot.slane %v4216_v30, %v6282_v14  ;;  %v5387_v0 = vcombine.high %v4274_v38, %v4274_v38  ;;  %v6840_v46 = vpop.permute.xlu1 %3086  ;;  %v2418_v41 = vpack.i.b16 %v2417_v59, %v2417_v59  ;;  %v6846_v30 = vpop.permute.xlu0 %2788 }
 0xaef   : > { %9209 = vst [vmem:[#allocation89_spill] sm:$0xff] %v6840_v46  ;;  %9210 = vst [vmem:[#allocation90_spill] sm:$0xff] %v6846_v30  ;;  %v5336_v59 = vcombine.low %v2486_v31, %v2486_v31 }
 0xaf0   : > { %v2423_v52 = vrot.slane %v2418_v41, %v6251_v53 }
 0xaf2   : > { %4152 = vrot.lane.b32.xlu0 %v4141_v26, %s9182_s7  ;;  %2360 = vrot.lane.b32.xlu1 %v2350_v42, %s9158_s4  ;;  %v4289_v26 = vshrl.u32 %v5387_v0, 16  ;;  %v4214_v42 = vrot.slane %v4209_v28, %v6282_v14  ;;  %v6851_v46 = vpop.permute.xlu1 %3716  ;;  %v6860_v0 = vpop.permute.xlu0 %3348 }
 0xaf3   : > { %9211 = vst [vmem:[#allocation91_spill] sm:$0xff] %v6851_v46  ;;  %v3724_v61 = vmul.bf16 0, %v6851_v46  ;;  %9213 = vst [vmem:[#allocation92_spill] sm:$0xff] %v6860_v0 }
 0xaf4   : > { %v4290_v27 = vpack.i.b16 %v4289_v26, %v4289_v26 }
 0xaf6   : > { %3664 = vrot.lane.b32.xlu0 %v3650_v54, %s9167_s6  ;;  %4226 = vrot.lane.b32.xlu1 %v4221_v11, %s9165_s5  ;;  %v2426_v11 = vpack.i.b16 %v2425_v13, %v2425_v13  ;;  %v4295_v28 = vrot.slane %v4290_v27, %v6282_v14  ;;  %v2493_v13 = vpack.i.b16 %v5336_v59, %v5336_v59  ;;  %v6865_v41 = vpop.permute.xlu0 %2862 }
 0xaf7   : > { %9214 = vst [vmem:[#allocation93_spill] sm:$0xff] %v6865_v41  ;;  %v5337_v59 = vcombine.high %v2486_v31, %v2486_v31 }
 0xaf8   : > { %v2431_v38 = vrot.slane %v2426_v11, %v6251_v53 }
 0xafa   : > { %2362 = vrot.lane.b32.xlu0 %v2357_v10, %s9158_s4  ;;  %3670 = vrot.lane.b32.xlu1 %v3650_v54, %s9167_s6  ;;  %v4281_v54 = vshrl.u32 %v5386_v1, 16  ;;  %v2560_v1 = vld [vmem:[%s8856_s1 + $0x10] sm:$0x88] }
 0xafb   : > { %v5339_v41 = vcombine.high %v2560_v1, %v2560_v1 }
 0xafc   : > { %v4282_v10 = vpack.i.b16 %v4281_v54, %v4281_v54 }
 0xafd   : > { %v2575_v46 = vshrl.u32 %v5339_v41, 16 }
 0xafe   : > { %4224 = vrot.lane.b32.xlu0 %v4214_v42, %s9165_s5  ;;  %2434 = vrot.lane.b32.xlu1 %v2423_v52, %s9212_s26  ;;  %v4287_v26 = vrot.slane %v4282_v10, %v6282_v14  ;;  %v2498_v42 = vrot.slane %v2493_v13, %v6282_v14  ;;  %v6873_v52 = vpop.permute.xlu0 %3422  ;;  %v4348_v10 = vld [vmem:[%s8856_s1 + $0x30] sm:$0x11] }
 0xaff   : > { %9216 = vst [vmem:[#allocation94_spill] sm:$0xff] %v6873_v52  ;;  %v5766_v52 = vld [vmem:[%s6155_s14] sm:$0xff] }
 0xb02   : > { %3738 = vrot.lane.b32.xlu0 %v3724_v61, %s9164_s20  ;;  %4300 = vrot.lane.b32.xlu1 %v4295_v28, %s9161_s17  ;;  %v6875_v27 = vpop.permute.xlu0 %2934 }
 0xb03   : > { %9217 = vst [vmem:[#allocation95_spill] sm:$0xff] %v6875_v27  ;;  %v5389_v27 = vcombine.high %v4348_v10, %v4348_v10 }
 0xb06   : > { %2436 = vrot.lane.b32.xlu0 %v2431_v38, %s9212_s26  ;;  %3744 = vrot.lane.b32.xlu1 %v3724_v61, %s9164_s20  ;;  %v6877_v53 = vpop.permute.xlu0 %3494  ;;  %v5338_v61 = vcombine.low %v2560_v1, %v2560_v1 }
 0xb07   : > { %9218 = vst [vmem:[#allocation96_spill] sm:$0xff] %v6877_v53  ;;  %v5765_v53 = vld [vmem:[%s6155_s14 + $0x18] sm:$0xff] }
 0xb08   : > { %v2567_v54 = vshrl.u32 %v5338_v61, 16 }
 0xb0a   : > { %4298 = vrot.lane.b32.xlu0 %v4287_v26, %s9161_s17  ;;  %2508 = vrot.lane.b32.xlu1 %v2498_v42, %s9215_s22  ;;  %v6882_v11 = vpop.permute.xlu0 %3008  ;;  %v2568_v26 = vpack.i.b16 %v2567_v54, %v2567_v54  ;;  %v2500_v42 = vpack.i.b16 %v5337_v59, %v5337_v59  ;;  %v2576_v59 = vpack.i.b16 %v2575_v46, %v2575_v46 }
 0xb0b   : > { %9219 = vst [vmem:[#allocation97_spill] sm:$0xff] %v6882_v11 }
 0xb0c   : > { %v2573_v31 = vrot.slane %v2568_v26, %v6282_v14  ;;  %v2505_v61 = vrot.slane %v2500_v42, %v6282_v14  ;;  %v2581_v41 = vrot.slane %v2576_v59, %v6282_v14 }
 0xb0e   : > { %v6884_v28 = vpop.permute.xlu0 %3568 }
 0xb0f   : > { %9220 = vst [vmem:[#allocation98_spill] sm:$0xff] %v6884_v28 }
 0xb12   : > { %v6891_v13 = vpop.permute.xlu0 %3080 }
 0xb13   : > { %9222 = vst [vmem:[#allocation100_spill] sm:$0xff] %v6891_v13  ;;  %v5388_v13 = vcombine.low %v4348_v10, %v4348_v10 }
 0xb16   : > { %v6900_v28 = vpop.permute.xlu0 %3640 }
 0xb17   : > { %9224 = vst [vmem:[#allocation102_spill] sm:$0xff] %v6900_v28  ;;  %v5764_v28 = vld [vmem:[%s6155_s14 + $0x10] sm:$0xff] }
 0xb24   : > { %v6886_v38 = vpop.permute.xlu1 %3160 }
 0xb25   : > { %9221 = vst [vmem:[#allocation99_spill] sm:$0xff] %v6886_v38  ;;  %v4362_v38 = vpack.i.b16 %v5389_v27, %v5389_v27  ;;  %v4355_v27 = vpack.i.b16 %v5388_v13, %v5388_v13 }
 0xb27   : > { %v4367_v1 = vrot.slane %v4362_v38, %v6183_v19  ;;  %v4360_v46 = vrot.slane %v4355_v27, %v6183_v19 }
 0xb28   : > { %v6893_v30 = vpop.permute.xlu1 %3788 }
 0xb29   : > { %9223 = vst [vmem:[#allocation101_spill] sm:$0xff] %v6893_v30  ;;  %v3796_v11 = vmul.bf16 0, %v6893_v30  ;;  %v6907_v30 = vpop.permute.xlu0 %3154 }
 0xb2a   : > { %9227 = vst [vmem:[#allocation104_spill] sm:$0xff] %v6907_v30  ;;  %v707_v30 = vld [vmem:[%s8864_s9 + $0x10] sm:$0xff] }
 0xb2b   : > { %3816 = vrot.lane.b32.xlu1 %v3796_v11, %s9160_s18  ;;  %3810 = vrot.lane.b32.xlu0 %v3796_v11, %s9160_s18 }
 0xb2c   : > { %v6902_v54 = vpop.permute.xlu1 %3232 }
 0xb2d   : > { %9225 = vst [vmem:[#allocation103_spill] sm:$0xff] %v6902_v54 }
 0xb2f   : > { %2584 = vrot.lane.b32.xlu1 %v2573_v31, %s9226_s3  ;;  %2510 = vrot.lane.b32.xlu0 %v2505_v61, %s9215_s22  ;;  %v6917_v31 = vpop.permute.xlu0 %3714  ;;  %v706_v61 = vld [vmem:[%s8864_s9 + $0x8] sm:$0xff] }
 0xb30   : > { %v6909_v11 = vpop.permute.xlu1 %3862  ;;  %9230 = vst [vmem:[#allocation107_spill] sm:$0xff] %v6917_v31 }
 0xb31   : > { %9228 = vst [vmem:[#allocation105_spill] sm:$0xff] %v6909_v11  ;;  %v3870_v26 = vmul.bf16 0, %v6909_v11 }
 0xb33   : > { %4372 = vrot.lane.b32.xlu1 %v4367_v1, %s9158_s4  ;;  %3884 = vrot.lane.b32.xlu0 %v3870_v26, %s9156_s2  ;;  %v6927_v14 = vpop.permute.xlu0 %3226  ;;  %v798_v1 = vadd.f32 %v6722_v4, %v706_v61 }
 0xb34   : > { %v6915_v42 = vpop.permute.xlu1 %3306  ;;  %9232 = vst [vmem:[#allocation109_spill] sm:$0xff] %v6927_v14 }
 0xb35   : > { %9229 = vst [vmem:[#allocation106_spill] sm:$0xff] %v6915_v42 }
 0xb37   : > { %3890 = vrot.lane.b32.xlu1 %v3870_v26, %s9156_s2  ;;  %2586 = vrot.lane.b32.xlu0 %v2581_v41, %s9226_s3  ;;  %v6939_v41 = vpop.permute.xlu0 %3786 }
 0xb38   : > { %v6922_v38 = vpop.permute.xlu1 %3934  ;;  %9234 = vst [vmem:[#allocation111_spill] sm:$0xff] %v6939_v41 }
 0xb39   : > { %9231 = vst [vmem:[#allocation108_spill] sm:$0xff] %v6922_v38  ;;  %v3942_v10 = vmul.bf16 0, %v6922_v38 }
 0xb3b   : > { %4370 = vrot.lane.b32.xlu0 %v4360_v46, %s9158_s4  ;;  %3962 = vrot.lane.b32.xlu1 %v3942_v10, %s9154_s0 }
 0xb3c   : > { %v6929_v13 = vpop.permute.xlu1 %3378 }
 0xb3d   : > { %9233 = vst [vmem:[#allocation110_spill] sm:$0xff] %v6929_v13  ;;  %v6946_v13 = vpop.permute.xlu0 %3300 }
 0xb3e   : > { %9236 = vst [vmem:[#allocation113_spill] sm:$0xff] %v6946_v13 }
 0xb3f   : > { %3956 = vrot.lane.b32.xlu0 %v3942_v10, %s9154_s0 }
 0xb40   : > { %v6936_v59 = vpop.permute.xlu1 %2142 }
 0xb41   : > { %v2150_v26 = vmul.bf16 0, %v6936_v59  ;;  %v6953_v61 = vpop.permute.xlu0 %3860 }
 0xb42   : > { %9239 = vst [vmem:[#allocation116_spill] sm:$0xff] %v6953_v61 }
 0xb43   : > { %818 = vperm.xlu0 %5618, %v798_v1   ;;  %2162 = vrot.lane.b32.xlu1 %v2150_v26, %s9140_s27 }
 0xb44   : > { %v6942_v27 = vpop.permute.xlu1 %4008 }
 0xb45   : > { %9235 = vst [vmem:[#allocation112_spill] sm:$0xff] %v6942_v27  ;;  %v4016_v46 = vmul.bf16 0, %v6942_v27  ;;  %v6963_v54 = vpop.permute.xlu0 %3372 }
 0xb46   : > { %9241 = vst [vmem:[#allocation118_spill] sm:$0xff] %v6963_v54 }
 0xb47   : > { %4030 = vrot.lane.b32.xlu1 %v4016_v46, %s9136_s12 }
 0xb48   : > { %v6948_v10 = vpop.permute.xlu1 %3452 }
 0xb49   : > { %9237 = vst [vmem:[#allocation114_spill] sm:$0xff] %v6948_v10  ;;  %v6975_v14 = vpop.permute.xlu0 %3932 }
 0xb4a   : > { %9242 = vst [vmem:[#allocation119_spill] sm:$0xff] %v6975_v14 }
 0xb4b   : > { %2168 = vrot.lane.b32.xlu1 %v2150_v26, %s9140_s27  ;;  %v705_v26 = vld [vmem:[%s8864_s9] sm:$0xff] }
 0xb4c   : > { %v6951_v4 = vpop.permute.xlu1 %2214  ;;  %v793_v10 = vadd.f32 %v6767_v29, %v705_v26  ;;  %v803_v29 = vadd.f32 %v6793_v3, %v707_v30 }
 0xb4d   : > { %9238 = vst [vmem:[#allocation115_spill] sm:$0xff] %v6951_v4  ;;  %v8963_v1 = vmul.bf16 0, %v6951_v4  ;;  %v6984_v26 = vpop.permute.xlu0 %3446 }
 0xb4e   : > { %9244 = vst [vmem:[#allocation121_spill] sm:$0xff] %v6984_v26 }
 0xb4f   : > { %4036 = vrot.lane.b32.xlu1 %v4016_v46, %s9136_s12  ;;  %v708_v46 = vld [vmem:[%s8864_s9 + $0x18] sm:$0xff] }
 0xb50   : > { %v6957_v42 = vpop.permute.xlu1 %4080 }
 0xb51   : > { %9240 = vst [vmem:[#allocation117_spill] sm:$0xff] %v6957_v42  ;;  %v8965_v13 = vmul.bf16 0, %v6957_v42  ;;  %v6988_v42 = vpop.permute.xlu0 %2144 }
 0xb53   : > { %2234 = vrot.lane.b32.xlu1 %v8963_v1, %s9138_s23  ;;  %v808_v1 = vadd.f32 %v6786_v8, %v708_v46 }
 0xb54   : > { %v6978_v54 = vpop.permute.xlu1 %3524 }
 0xb55   : > { %9243 = vst [vmem:[#allocation120_spill] sm:$0xff] %v6978_v54 }
 0xb57   : > { %4102 = vrot.lane.b32.xlu1 %v8965_v13, %s9141_s21 }
 0xb58   : > { %v6986_v13 = vpop.permute.xlu1 %2288 }
 0xb59   : > { %9245 = vst [vmem:[#allocation122_spill] sm:$0xff] %v6986_v13 }
 0xb5b   : > { %813 = vperm.xlu1 %5619, %v793_v10   ;;  %v6992_v10 = vpop.permute.xlu0 %4006 }
 0xb5c   : > { %v6990_v27 = vpop.permute.xlu1 %4154  ;;  %9247 = vst [vmem:[#allocation124_spill] sm:$0xff] %v6992_v10 }
 0xb5d   : > { %9246 = vst [vmem:[#allocation123_spill] sm:$0xff] %v6990_v27 }
 0xb5f   : > { %828 = vperm.xlu1 %5619, %v808_v1   ;;  %v6996_v46 = vpop.permute.xlu0 %3518 }
 0xb60   : > { %v6994_v8 = vpop.permute.xlu1 %3598  ;;  %9249 = vst [vmem:[#allocation126_spill] sm:$0xff] %v6996_v46 }
 0xb61   : > { %9248 = vst [vmem:[#allocation125_spill] sm:$0xff] %v6994_v8 }
 0xb63   : > { %823 = vperm.xlu1 %5619, %v803_v29   ;;  %v7000_v1 = vpop.permute.xlu0 %2216 }
 0xb64   : > { %v6998_v54 = vpop.permute.xlu1 %2360  ;;  %9251 = vst [vmem:[#allocation128_spill] sm:$0xff] %v7000_v1 }
 0xb65   : > { %9250 = vst [vmem:[#allocation127_spill] sm:$0xff] %v6998_v54 }
 0xb67   : > { %v7004_v30 = vpop.permute.xlu0 %4078 }
 0xb68   : > { %v7002_v3 = vpop.permute.xlu1 %4226  ;;  %9253 = vst [vmem:[#allocation130_spill] sm:$0xff] %v7004_v30 }
 0xb69   : > { %9252 = vst [vmem:[#allocation129_spill] sm:$0xff] %v7002_v3 }
 0xb6b   : > { %v7008_v29 = vpop.permute.xlu0 %3592 }
 0xb6c   : > { %v7006_v26 = vpop.permute.xlu1 %3670  ;;  %9255 = vst [vmem:[#allocation132_spill] sm:$0xff] %v7008_v29 }
 0xb6d   : > { %9254 = vst [vmem:[#allocation131_spill] sm:$0xff] %v7006_v26 }
 0xb6f   : > { %v7012_v27 = vpop.permute.xlu0 %2290 }
 0xb70   : > { %v7010_v14 = vpop.permute.xlu1 %2434  ;;  %9257 = vst [vmem:[#allocation134_spill] sm:$0xff] %v7012_v27 }
 0xb71   : > { %9256 = vst [vmem:[#allocation133_spill] sm:$0xff] %v7010_v14 }
 0xb73   : > { %v7016_v8 = vpop.permute.xlu0 %4152 }
 0xb74   : > { %v7014_v10 = vpop.permute.xlu1 %4300  ;;  %9259 = vst [vmem:[#allocation136_spill] sm:$0xff] %v7016_v8 }
 0xb75   : > { %9258 = vst [vmem:[#allocation135_spill] sm:$0xff] %v7014_v10 }
 0xb77   : > { %v7020_v38 = vpop.permute.xlu0 %3664 }
 0xb78   : > { %v7018_v46 = vpop.permute.xlu1 %3744  ;;  %9261 = vst [vmem:[#allocation138_spill] sm:$0xff] %v7020_v38 }
 0xb79   : > { %9260 = vst [vmem:[#allocation137_spill] sm:$0xff] %v7018_v46 }
 0xb7b   : > { %v7024_v3 = vpop.permute.xlu0 %2362 }
 0xb7c   : > { %v7022_v61 = vpop.permute.xlu1 %2508  ;;  %9263 = vst [vmem:[#allocation140_spill] sm:$0xff] %v7024_v3 }
 0xb7d   : > { %9262 = vst [vmem:[#allocation139_spill] sm:$0xff] %v7022_v61 }
 0xb7f   : > { %v7028_v26 = vpop.permute.xlu0 %4224 }
 0xb80   : > { %9265 = vst [vmem:[#allocation142_spill] sm:$0xff] %v7028_v26 }
 0xb83   : > { %v7032_v11 = vpop.permute.xlu0 %3738 }
 0xb84   : > { %9267 = vst [vmem:[#allocation144_spill] sm:$0xff] %v7032_v11 }
 0xb87   : > { %v7036_v10 = vpop.permute.xlu0 %2436 }
 0xb88   : > { %9269 = vst [vmem:[#allocation146_spill] sm:$0xff] %v7036_v10 }
 0xb8b   : > { %v7040_v46 = vpop.permute.xlu0 %4298 }
 0xb8c   : > { %9271 = vst [vmem:[#allocation148_spill] sm:$0xff] %v7040_v46 }
 0xb9d   : > { %v7026_v30 = vpop.permute.xlu1 %3816  ;;  %v7044_v61 = vpop.permute.xlu0 %3810 }
 0xb9e   : > { %9264 = vst [vmem:[#allocation141_spill] sm:$0xff] %v7026_v30  ;;  %9273 = vst [vmem:[#allocation150_spill] sm:$0xff] %v7044_v61 }
 0xba1   : > { %v7030_v29 = vpop.permute.xlu1 %2584  ;;  %v7048_v26 = vpop.permute.xlu0 %2510 }
 0xba2   : > { %9266 = vst [vmem:[#allocation143_spill] sm:$0xff] %v7030_v29  ;;  %9275 = vst [vmem:[#allocation152_spill] sm:$0xff] %v7048_v26 }
 0xba5   : > { %v7034_v41 = vpop.permute.xlu1 %4372  ;;  %v7052_v11 = vpop.permute.xlu0 %3884 }
 0xba6   : > { %9268 = vst [vmem:[#allocation145_spill] sm:$0xff] %v7034_v41  ;;  %9277 = vst [vmem:[#allocation154_spill] sm:$0xff] %v7052_v11 }
 0xba9   : > { %v7038_v8 = vpop.permute.xlu1 %3890 }
 0xbaa   : > { %9270 = vst [vmem:[#allocation147_spill] sm:$0xff] %v7038_v8  ;;  %v7056_v8 = vpop.permute.xlu0 %2586 }
 0xbab   : > { %9279 = vst [vmem:[#allocation156_spill] sm:$0xff] %v7056_v8  ;;  %v5767_v8 = vld [vmem:[%s6155_s14 + $0x8] sm:$0xff] }
 0xbad   : > { %v7042_v38 = vpop.permute.xlu1 %3962 }
 0xbae   : > { %9272 = vst [vmem:[#allocation149_spill] sm:$0xff] %v7042_v38  ;;  %v7060_v38 = vpop.permute.xlu0 %4370 }
 0xbaf   : > { %9281 = vst [vmem:[#allocation158_spill] sm:$0xff] %v7060_v38 }
 0xbb5   : > { %v7046_v30 = vpop.permute.xlu1 %2162 }
 0xbb6   : > { %9274 = vst [vmem:[#allocation151_spill] sm:$0xff] %v7046_v30  ;;  %v7064_v30 = vpop.permute.xlu0 %3956 }
 0xbb7   : > { %9283 = vst [vmem:[#allocation160_spill] sm:$0xff] %v7064_v30  ;;  %v7192_v30 = vsel %vm8997_vm1, %v6368_v49, %v6658_v16  ;;  %vm9002_vm1 = vcmask 769024  }
 0xbb8   : > { %9296 = vst [vmem:[#allocation173_spill] sm:$0xff] %v7192_v30 }
 0xbb9   : > { %v7050_v29 = vpop.permute.xlu1 %4030 }
 0xbba   : > { %9276 = vst [vmem:[#allocation153_spill] sm:$0xff] %v7050_v29 }
 0xbbd   : > { %v7054_v41 = vpop.permute.xlu1 %2168 }
 0xbbe   : > { %9278 = vst [vmem:[#allocation155_spill] sm:$0xff] %v7054_v41 }
 0xbc1   : > { %v7058_v46 = vpop.permute.xlu1 %4036 }
 0xbc2   : > { %9280 = vst [vmem:[#allocation157_spill] sm:$0xff] %v7058_v46  ;;  %v819_v26 = vpop.permute.xlu0 %818 }
 0xbc3   : > { %v833_v11 = vadd.f32 %v5764_v28, %v819_v26  ;;  %v834_v41 = vadd.f32 %v5765_v53, %v819_v26 }
 0xbc5   : > { %v7062_v61 = vpop.permute.xlu1 %2234 }
 0xbc6   : > { %9282 = vst [vmem:[#allocation159_spill] sm:$0xff] %v7062_v61  ;;  %v7079_v61 = vsel %vm883_vm6, %v6203_v21, %v6212_v25 }
 0xbc7   : > { %9285 = vst [vmem:[#allocation162_spill] sm:$0xff] %v7079_v61 }
 0xbc9   : > { %v7066_v31 = vpop.permute.xlu1 %4102 }
 0xbca   : > { %9284 = vst [vmem:[#allocation161_spill] sm:$0xff] %v7066_v31 }
 0xbda   : > { %v814_v29 = vpop.permute.xlu1 %813 }
 0xbdb   : > { %v831_v0 = vadd.f32 %v5766_v52, %v814_v29  ;;  %v832_v55 = vadd.f32 %v5767_v8, %v814_v29  ;;  %v7101_v52 = vsel %vm9027_vm8, %v6236_v45, %v6538_v57  ;;  %v7126_v29 = vsel %vm9038_vm9, %v6267_v6, %v6571_v24 }
 0xbdc   : > { %9287 = vst [vmem:[#allocation164_spill] sm:$0xff] %v7101_v52  ;;  %9289 = vst [vmem:[#allocation166_spill] sm:$0xff] %v7126_v29 }
 0xbdd   : > { %v7072_v46 = vpack.c.bf16 %v833_v11, %v831_v0  ;;  %v7074_v38 = vpack.c.bf16 %v834_v41, %v832_v55  ;;  %v7090_v55 = vsel %vm959_vm7, %v6222_v33, %v6530_v48  ;;  %v2634_v11 = vld [vmem:[%s8856_s1 + $0x18] sm:$0x11] }
 0xbde   : > { %9286 = vst [vmem:[#allocation163_spill] sm:$0xff] %v7090_v55  ;;  %v5340_v41 = vcombine.low %v2634_v11, %v2634_v11  ;;  %v5341_v26 = vcombine.high %v2634_v11, %v2634_v11 }
 0xbdf   : > { %v889_v31 = vmul.bf16 %v7079_v61, %v7072_v46  ;;  %v890_v28 = vmul.bf16 %v6212_v25, %v7074_v38  ;;  %v966_v21 = vmul.bf16 %v6530_v48, %v7074_v38  ;;  %v965_v0 = vmul.bf16 %v7090_v55, %v7072_v46  ;;  %v9318_v55 = vld [vmem:[#allocation92_spill] sm:$0xff] }
 0xbe0   : > { %v1040_v33 = vmul.bf16 %v6538_v57, %v7074_v38  ;;  %v1039_v53 = vmul.bf16 %v7101_v52, %v7072_v46  ;;  %v1116_v45 = vmul.bf16 %v6553_v15, %v7074_v38  ;;  %v1266_v6 = vmul.bf16 %v6585_v36, %v7074_v38  ;;  %v9317_v52 = vld [vmem:[#allocation71_spill] sm:$0xff] }
 0xbe1   : > { %904 = vrot.lane.b32.xlu1 %v890_v28, %s9158_s4  ;;  %902 = vrot.lane.b32.xlu0 %v889_v31, %s9158_s4  ;;  %v7115_v31 = vsel %vm9030_vm0, %v6253_v56, %v6553_v15  ;;  %v1190_v56 = vmul.bf16 %v6571_v24, %v7074_v38  ;;  %v7130_v28 = vpop.permute.xlu1 %828 }
 0xbe2   : > { %9288 = vst [vmem:[#allocation165_spill] sm:$0xff] %v7115_v31  ;;  %v1115_v8 = vmul.bf16 %v7115_v31, %v7072_v46  ;;  %v9315_v31 = vld [vmem:[#allocation68_spill] sm:$0xff] }
 0xbe5   : > { %980 = vrot.lane.b32.xlu1 %v966_v21, %s9161_s17  ;;  %978 = vrot.lane.b32.xlu0 %v965_v0, %s9161_s17  ;;  %v2641_v21 = vpack.i.b16 %v5340_v41, %v5340_v41  ;;  %v2648_v0 = vpack.i.b16 %v5341_v26, %v5341_v26  ;;  %v7159_v26 = vsel %vm1409_vm12, %v6312_v47, %v6617_v9 }
 0xbe6   : > { %9292 = vst [vmem:[#allocation169_spill] sm:$0xff] %v7159_v26  ;;  %v1340_v47 = vmul.bf16 %v6605_v22, %v7074_v38 }
 0xbe7   : > { %v7144_v11 = vrot.slane %v2648_v0, %v6183_v19 }
 0xbe9   : > { %1054 = vrot.lane.b32.xlu1 %v1040_v33, %s9165_s5  ;;  %1052 = vrot.lane.b32.xlu0 %v1039_v53, %s9165_s5  ;;  %v1189_v33 = vmul.bf16 %v7126_v29, %v7072_v46  ;;  %v7138_v53 = vsel %vm1259_vm10, %v6284_v17, %v6585_v36  ;;  %v7154_v17 = vsel %vm1333_vm11, %v6298_v35, %v6605_v22  ;;  %v9312_v29 = vld [vmem:[#allocation80_spill] sm:$0xff] }
 0xbea   : > { %9290 = vst [vmem:[#allocation167_spill] sm:$0xff] %v7138_v53  ;;  %v1265_v41 = vmul.bf16 %v7138_v53, %v7072_v46  ;;  %9291 = vst [vmem:[#allocation168_spill] sm:$0xff] %v7154_v17  ;;  %v7170_v35 = vsel %vm8996_vm14, %v6340_v12, %v6647_v44  ;;  %v1339_v12 = vmul.bf16 %v7154_v17, %v7072_v46  ;;  %vm9000_vm14 = vcmask 31744   ;;  %v9310_v17 = vld [vmem:[#allocation77_spill] sm:$0xff] }
 0xbeb   : > { %9294 = vst [vmem:[#allocation171_spill] sm:$0xff] %v7170_v35  ;;  %v7197_v22 = vsel %vm1512_vm2, %v6382_v5, %v6662_v23  ;;  %v7216_v5 = vsel %vm8999_vm5, %v6682_v43, %v6461_v32  ;;  %vm1138_vm5 = vcmask 785408  }
 0xbec   : > { %9297 = vst [vmem:[#allocation174_spill] sm:$0xff] %v7197_v22 }
 0xbed   : > { %1130 = vrot.lane.b32.xlu1 %v1116_v45, %s9182_s7  ;;  %1128 = vrot.lane.b32.xlu0 %v1115_v8, %s9182_s7  ;;  %v7147_v45 = vrot.slane %v2641_v21, %v6183_v19  ;;  %v7164_v8 = vsel %vm8994_vm13, %v6326_v62, %v6639_v63  ;;  %v824_v19 = vpop.permute.xlu1 %823  ;;  %v2655_v62 = vmul.bf16 %v7144_v11, %v7074_v38  ;;  %vm9001_vm13 = vcmask 752640   ;;  %v5768_v21 = vld [vmem:[%s6155_s14 + $0x30] sm:$0xff] }
 0xbee   : > { %9293 = vst [vmem:[#allocation170_spill] sm:$0xff] %v7164_v8  ;;  %v837_v0 = vadd.f32 %v5768_v21, %v7130_v28  ;;  %v7203_v21 = vsel %vm8998_vm3, %v6396_v18, %v6666_v39  ;;  %v7221_v18 = vsel %vm9001_vm13, %v6470_v50, %v6703_v20  ;;  %vm2467_vm3 = vcmask 48128  }
 0xbef   : > { %4957 = vmatprep.subr.bf16.mxu1 %v2655_v62  ;;  %v1415_v62 = vmul.bf16 %v7159_v26, %v7072_v46  ;;  %v7239_v50 = vsel %vm9002_vm1, %v6555_v60, %v6776_v7  ;;  %vm988_vm13 = vcmask 818176   ;;  %vm912_vm1 = vcmask 834560  }
 0xbf0   : > { %v1490_v60 = vmul.bf16 %v6639_v63, %v7074_v38  ;;  %v7308_v32 = vsel %vm912_vm1, %v6998_v54, %v7024_v3  ;;  %v9306_v54 = vld [vmem:[#allocation72_spill] sm:$0xff] }
 0xbf1   : > { %1204 = vrot.lane.b32.xlu1 %v1190_v56, %s9139_s29  ;;  %1202 = vrot.lane.b32.xlu0 %v1189_v33, %s9139_s29  ;;  %v2654_v56 = vmul.bf16 %v7147_v45, %v7072_v46  ;;  %v5769_v33 = vld [vmem:[%s6155_s14 + $0x20] sm:$0xff]  ;;  %9301 = vst [vmem:[#allocation178_spill] sm:$0xff] %v7308_v32 }
 0xbf2   : > { %v9320_v32 = vld [vmem:[#allocation94_spill] sm:$0xff] }
 0xbf3   : > { %4958 = vmatpush1.bf16.msra.mxu1 %v2654_v56  ;;  %v7267_v56 = vsel %vm1138_vm5, %v6936_v59, %v6988_v42  ;;  %v9304_v59 = vld [vmem:[#allocation70_spill] sm:$0xff] }
 0xbf4   : > { %9298 = vst [vmem:[#allocation175_spill] sm:$0xff] %v7267_v56 }
 0xbf5   : > { %1280 = vrot.lane.b32.xlu1 %v1266_v6, %s9191_s25  ;;  %1278 = vrot.lane.b32.xlu0 %v1265_v41, %s9191_s25  ;;  %v835_v6 = vadd.f32 %v5769_v33, %v824_v19  ;;  %v7187_v41 = vsel %vm1633_vm15, %v6354_v34, %v6654_v40  ;;  %v7208_v34 = vsel %vm9003_vm4, %v6421_v58, %v6670_v37  ;;  %vm2438_vm4 = vcmask 998400  }
 0xbf6   : > { %9295 = vst [vmem:[#allocation172_spill] sm:$0xff] %v7187_v41  ;;  %v1416_v58 = vmul.bf16 %v6617_v9, %v7074_v38 }
 0xbf7   : > { %v7210_v49 = vpack.c.bf16 %v837_v0, %v835_v6  ;;  %v5770_v0 = vld [vmem:[%s6155_s14 + $0x28] sm:$0xff]  ;;  %v1566_v6 = vmul.bf16 %v6647_v44, %v7074_v38 }
 0xbf8   : > { %v9332_v44 = vld [vmem:[#allocation107_spill] sm:$0xff] }
 0xbf9   : > { %1354 = vrot.lane.b32.xlu1 %v1340_v47, %s9192_s24  ;;  %1352 = vrot.lane.b32.xlu0 %v1339_v12, %s9192_s24  ;;  %v7228_v47 = vsel %vm9000_vm14, %v6687_v2, %v6532_v51  ;;  %vm1062_vm14 = vcmask 801792   ;;  %v1489_v12 = vmul.bf16 %v7164_v8, %v7072_v46  ;;  %v836_v51 = vadd.f32 %v5770_v0, %v824_v19  ;;  %v5771_v0 = vld [vmem:[%s6155_s14 + $0x38] sm:$0xff]  ;;  %s9367_s14 = smov 26  }
 0xbfa   : > { %v7277_v19 = vsel %vm1062_vm14, %v6951_v4, %v7000_v1  ;;  %v7371_v4 = vsel %vm1333_vm11, %v9318_v55, %v9317_v52  ;;  %v9328_v52 = vld [vmem:[#allocation87_spill] sm:$0xff] }
 0xbfb   : > { %9299 = vst [vmem:[#allocation176_spill] sm:$0xff] %v7277_v19  ;;  %v9322_v19 = vld [vmem:[#allocation96_spill] sm:$0xff] }
 0xbfd   : > { %1430 = vrot.lane.b32.xlu1 %v1416_v58, %s9188_s10  ;;  %1428 = vrot.lane.b32.xlu0 %v1415_v62, %s9188_s10  ;;  %v838_v62 = vadd.f32 %v5771_v0, %v7130_v28  ;;  %v1565_v0 = vmul.bf16 %v7170_v35, %v7072_v46  ;;  %v7313_v28 = vsel %vm2438_vm4, %v7010_v14, %v7036_v10  ;;  %v9303_v58 = vld [vmem:[#allocation42_spill] sm:$0xff]  ;;  %v9305_v35 = vld [vmem:[#allocation44_spill] sm:$0xff]  ;;  %v9313_v14 = vld [vmem:[#allocation67_spill] sm:$0xff] }
 0xbfe   : > { %9302 = vst [vmem:[#allocation179_spill] sm:$0xff] %v7313_v28  ;;  %v7328_v8 = vsel %vm883_vm6, %v9306_v54, %v9305_v35  ;;  %v9311_v35 = vld [vmem:[#allocation66_spill] sm:$0xff] }
 0xbff   : > { %v7299_v33 = vpack.c.bf16 %v838_v62, %v836_v51  ;;  %v9307_v62 = vld [vmem:[#allocation45_spill] sm:$0xff]  ;;  %v1640_v51 = vmul.bf16 %v6654_v40, %v7074_v38  ;;  %v9329_v40 = vld [vmem:[#allocation102_spill] sm:$0xff] }
 0xc01   : > { %1504 = vrot.lane.b32.xlu1 %v1490_v60, %s9184_s8  ;;  %1502 = vrot.lane.b32.xlu0 %v1489_v12, %s9184_s8  ;;  %v7289_v60 = vsel %vm988_vm13, %v6986_v13, %v7012_v27  ;;  %v7323_v12 = vsel %vm2467_vm3, %v9304_v59, %v9303_v58  ;;  %v9309_v58 = vld [vmem:[#allocation51_spill] sm:$0xff]  ;;  %v7348_v13 = vsel %vm9030_vm0, %v9312_v29, %v9311_v35  ;;  %v9316_v35 = vld [vmem:[#allocation88_spill] sm:$0xff]  ;;  %vm9326_vm0 = vcmask 506880  }
 0xc02   : > { %9300 = vst [vmem:[#allocation177_spill] sm:$0xff] %v7289_v60  ;;  %v7343_v53 = vsel %vm9027_vm8, %v9310_v17, %v9309_v58  ;;  %v7366_v60 = vsel %vm1259_vm10, %v9316_v35, %v9315_v31  ;;  %v9319_v58 = vld [vmem:[#allocation76_spill] sm:$0xff]  ;;  %v9321_v31 = vld [vmem:[#allocation79_spill] sm:$0xff]  ;;  %vm9323_vm8 = vcmask 490496  }
 0xc03   : > { %v7381_v61 = vsel %vm1409_vm12, %v9320_v32, %v9319_v58  ;;  %v7386_v56 = vsel %vm9323_vm8, %v9322_v19, %v9321_v31  ;;  %v1714_v58 = vmul.bf16 %v6658_v16, %v7074_v38  ;;  %v9331_v16 = vld [vmem:[#allocation91_spill] sm:$0xff]  ;;  %v9335_v19 = vld [vmem:[#allocation101_spill] sm:$0xff]  ;;  %vm9340_vm8 = vcmask 572416  }
 0xc04   : > { %v9336_v32 = vld [vmem:[#allocation111_spill] sm:$0xff] }
 0xc05   : > { %1580 = vrot.lane.b32.xlu1 %v1566_v6, %s9171_s15  ;;  %1578 = vrot.lane.b32.xlu0 %v1565_v0, %s9171_s15  ;;  %v9308_v6 = vld [vmem:[#allocation75_spill] sm:$0xff]  ;;  %v9314_v0 = vld [vmem:[#allocation82_spill] sm:$0xff]  ;;  %v7423_v63 = vsel %vm1512_vm2, %v9336_v32, %v9335_v19  ;;  %v9348_v19 = vld [vmem:[#allocation117_spill] sm:$0xff] }
 0xc06   : > { %v7338_v26 = vsel %vm959_vm7, %v9308_v6, %v9307_v62  ;;  %v7355_v28 = vsel %vm9038_vm9, %v9314_v0, %v9313_v14  ;;  %v1639_v62 = vmul.bf16 %v7187_v41, %v7072_v46  ;;  %v9324_v41 = vld [vmem:[#allocation83_spill] sm:$0xff]  ;;  %v7407_v14 = vsel %vm1633_vm15, %v9329_v40, %v9328_v52  ;;  %9337 = vst [vmem:[#allocation72_spill] sm:$0xff] %v7423_v63  ;;  %v9356_v63 = vld [vmem:[#allocation142_spill] sm:$0xff] }
 0xc07   : > { %9330 = vst [vmem:[#allocation70_spill] sm:$0xff] %v7407_v14  ;;  %vm9347_vm9 = vcmask 752640   ;;  %v9359_v14 = vld [vmem:[#allocation148_spill] sm:$0xff] }
 0xc09   : > { %1654 = vrot.lane.b32.xlu1 %v1640_v51, %s9167_s6  ;;  %1652 = vrot.lane.b32.xlu0 %v1639_v62, %s9167_s6  ;;  %v9325_v51 = vld [vmem:[#allocation98_spill] sm:$0xff]  ;;  %v1713_v62 = vmul.bf16 %v7192_v30, %v7072_v46  ;;  %v9345_v30 = vld [vmem:[#allocation112_spill] sm:$0xff] }
 0xc0a   : > { %v7396_v10 = vsel %vm9326_vm0, %v9325_v51, %v9324_v41  ;;  %vm9333_vm0 = vcmask 539648   ;;  %v9338_v41 = vld [vmem:[#allocation105_spill] sm:$0xff]  ;;  %v9339_v51 = vld [vmem:[#allocation116_spill] sm:$0xff] }
 0xc0b   : > { %9327 = vst [vmem:[#allocation42_spill] sm:$0xff] %v7396_v10  ;;  %v7418_v31 = vsel %vm9333_vm0, %v9332_v44, %v9331_v16  ;;  %v7433_v40 = vsel %vm9340_vm8, %v9339_v51, %v9338_v41  ;;  %v9341_v16 = vld [vmem:[#allocation108_spill] sm:$0xff]  ;;  %v9342_v44 = vld [vmem:[#allocation119_spill] sm:$0xff]  ;;  %vm9343_vm0 = vcmask 736256   ;;  %v1786_v41 = vmul.bf16 %v6662_v23, %v7074_v38  ;;  %v9349_v51 = vld [vmem:[#allocation130_spill] sm:$0xff] }
 0xc0c   : > { %9334 = vst [vmem:[#allocation44_spill] sm:$0xff] %v7418_v31  ;;  %v7438_v55 = vsel %vm9343_vm0, %v9342_v44, %v9341_v16  ;;  %vm9350_vm8 = vcmask 769024   ;;  %v9352_v23 = vld [vmem:[#allocation123_spill] sm:$0xff]  ;;  %v9353_v10 = vld [vmem:[#allocation136_spill] sm:$0xff]  ;;  %v9355_v44 = vld [vmem:[#allocation129_spill] sm:$0xff]  ;;  %vm2512_vm0 = vcmask 1014784  }
 0xc0d   : > { %1728 = vrot.lane.b32.xlu1 %v1714_v58, %s9164_s20  ;;  %9344 = vst [vmem:[#allocation45_spill] sm:$0xff] %v7438_v55  ;;  %1726 = vrot.lane.b32.xlu0 %v1713_v62, %s9164_s20  ;;  %v9346_v58 = vld [vmem:[#allocation124_spill] sm:$0xff]  ;;  %v7459_v52 = vsel %vm9350_vm8, %v9349_v51, %v9348_v19  ;;  %v1785_v62 = vmul.bf16 %v7197_v22, %v7072_v46 }
 0xc0e   : > { %v7448_v32 = vsel %vm9347_vm9, %v9346_v58, %v9345_v30  ;;  %9351 = vst [vmem:[#allocation75_spill] sm:$0xff] %v7459_v52  ;;  %v7470_v16 = vsel %vm1138_vm5, %v9353_v10, %v9352_v23  ;;  %v7475_v31 = vsel %vm1062_vm14, %v9356_v63, %v9355_v44  ;;  %v9358_v30 = vld [vmem:[#allocation135_spill] sm:$0xff]  ;;  %v1860_v19 = vmul.bf16 %v6666_v39, %v7074_v38 }
 0xc0f   : > { %9354 = vst [vmem:[#allocation51_spill] sm:$0xff] %v7470_v16  ;;  %9357 = vst [vmem:[#allocation77_spill] sm:$0xff] %v7475_v31  ;;  %v7485_v55 = vsel %vm988_vm13, %v9359_v14, %v9358_v30  ;;  %v2657_v30 = vmul.bf16 %v7144_v11, %v7299_v33  ;;  %v2656_v23 = vmul.bf16 %v7147_v45, %v7210_v49  ;;  %vm2588_vm9 = vcmask 1031168  }
 0xc10   : > { %9360 = vst [vmem:[#allocation66_spill] sm:$0xff] %v7485_v55  ;;  %v1931_v22 = vmul.bf16 %v7208_v34, %v7072_v46  ;;  %v2006_v11 = vmul.bf16 %v6703_v20, %v7074_v38  ;;  %v2005_v45 = vmul.bf16 %v7221_v18, %v7072_v46  ;;  %v3357_v44 = vmul.bf16 %v7371_v4, %v7074_v38 }
 0xc11   : > { %1800 = vrot.lane.b32.xlu1 %v1786_v41, %s9160_s18  ;;  %1798 = vrot.lane.b32.xlu0 %v1785_v62, %s9160_s18  ;;  %v1859_v41 = vmul.bf16 %v7203_v21, %v7072_v46  ;;  %v1932_v62 = vmul.bf16 %v6670_v37, %v7074_v38 }
 0xc12   : > { %4959 = vmatprep.subr.bf16.mxu1 %v2657_v30  ;;  %v2152_v30 = vmul.bf16 %v6988_v42, %v7074_v38 }
 0xc13   : > { %4960 = vmatpush1.bf16.msra.mxu1 %v2656_v23  ;;  %v2078_v23 = vmul.bf16 %v6776_v7, %v7074_v38 }
 0xc15   : > { %1874 = vrot.lane.b32.xlu1 %v1860_v19, %s9156_s2  ;;  %1872 = vrot.lane.b32.xlu0 %v1859_v41, %s9156_s2  ;;  %v2077_v19 = vmul.bf16 %v7239_v50, %v7072_v46  ;;  %v2700_v41 = vmul.bf16 %v6682_v43, %v7072_v46 }
 0xc19   : > { %1946 = vrot.lane.b32.xlu1 %v1932_v62, %s9154_s0  ;;  %1944 = vrot.lane.b32.xlu0 %v1931_v22, %s9154_s0  ;;  %v2701_v22 = vmul.bf16 %v7216_v5, %v7074_v38  ;;  %v4015_v62 = vmul.bf16 %v7448_v32, %v7074_v38 }
 0xc1d   : > { %2020 = vrot.lane.b32.xlu1 %v2006_v11, %s9136_s12  ;;  %2018 = vrot.lane.b32.xlu0 %v2005_v45, %s9136_s12  ;;  %v2773_v11 = vmul.bf16 %v7228_v47, %v7074_v38  ;;  %v4014_v45 = vmul.bf16 %v9346_v58, %v7072_v46 }
 0xc21   : > { %2092 = vrot.lane.b32.xlu1 %v2078_v23, %s9141_s21  ;;  %2090 = vrot.lane.b32.xlu0 %v2077_v19, %s9141_s21  ;;  %v2772_v23 = vmul.bf16 %v6687_v2, %v7072_v46  ;;  %v2224_v19 = vmul.bf16 %v7000_v1, %v7074_v38 }
 0xc25   : > { %2714 = vrot.lane.b32.xlu1 %v2701_v22, %s9226_s3  ;;  %2166 = vrot.lane.b32.xlu0 %v2152_v30, %s9140_s27  ;;  %v2847_v22 = vmul.bf16 %v7323_v12, %v7074_v38  ;;  %v4087_v30 = vmul.bf16 %v7459_v52, %v7074_v38 }
 0xc29   : > { %2712 = vrot.lane.b32.xlu1 %v2700_v41, %s9226_s3  ;;  %4028 = vrot.lane.b32.xlu0 %v4015_v62, %s9136_s12  ;;  %v2846_v41 = vmul.bf16 %v9304_v59, %v7072_v46  ;;  %v4086_v62 = vmul.bf16 %v9349_v51, %v7072_v46 }
 0xc2d   : > { %2786 = vrot.lane.b32.xlu1 %v2773_v11, %s9215_s22  ;;  %4026 = vrot.lane.b32.xlu0 %v4014_v45, %s9136_s12  ;;  %v2919_v11 = vmul.bf16 %v7328_v8, %v7074_v38  ;;  %v893_v45 = vmul.bf16 %v6212_v25, %v7299_v33  ;;  %v2298_v25 = vmul.bf16 %v7012_v27, %v7074_v38 }
 0xc31   : > { %2784 = vrot.lane.b32.xlu1 %v2772_v23, %s9215_s22  ;;  %2238 = vrot.lane.b32.xlu0 %v2224_v19, %s9138_s23  ;;  %v2918_v23 = vmul.bf16 %v9306_v54, %v7072_v46  ;;  %v969_v19 = vmul.bf16 %v6530_v48, %v7299_v33  ;;  %v1043_v48 = vmul.bf16 %v6538_v57, %v7299_v33 }
 0xc32   : > { %v1119_v57 = vmul.bf16 %v6553_v15, %v7299_v33  ;;  %v3138_v15 = vmul.bf16 %v9312_v29, %v7072_v46 }
 0xc35   : > { %2860 = vrot.lane.b32.xlu1 %v2847_v22, %s9212_s26  ;;  %4100 = vrot.lane.b32.xlu0 %v4087_v30, %s9141_s21  ;;  %v2993_v22 = vmul.bf16 %v7338_v26, %v7074_v38  ;;  %v2992_v30 = vmul.bf16 %v9308_v6, %v7072_v46 }
 0xc39   : > { %2858 = vrot.lane.b32.xlu1 %v2846_v41, %s9212_s26  ;;  %4098 = vrot.lane.b32.xlu0 %v4086_v62, %s9141_s21  ;;  %v3065_v41 = vmul.bf16 %v7343_v53, %v7074_v38  ;;  %v4161_v62 = vmul.bf16 %v7470_v16, %v7074_v38 }
 0xc3d   : > { %2932 = vrot.lane.b32.xlu1 %v2919_v11, %s9158_s4  ;;  %910 = vrot.lane.b32.xlu0 %v893_v45, %s9158_s4  ;;  %v3064_v11 = vmul.bf16 %v9310_v17, %v7072_v46  ;;  %v3139_v45 = vmul.bf16 %v7348_v13, %v7074_v38 }
 0xc41   : > { %2930 = vrot.lane.b32.xlu1 %v2918_v23, %s9158_s4  ;;  %986 = vrot.lane.b32.xlu0 %v969_v19, %s9161_s17  ;;  %v4160_v19 = vmul.bf16 %v9353_v10, %v7072_v46 }
 0xc45   : > { %3006 = vrot.lane.b32.xlu1 %v2993_v22, %s9161_s17  ;;  %2312 = vrot.lane.b32.xlu0 %v2298_v25, %s9137_s19 }
 0xc49   : > { %3004 = vrot.lane.b32.xlu1 %v2992_v30, %s9161_s17  ;;  %1060 = vrot.lane.b32.xlu0 %v1043_v48, %s9165_s5  ;;  %v9361_v30 = vld [vmem:[#allocation24_spill] sm:$0xff] }
 0xc4d   : > { %3078 = vrot.lane.b32.xlu1 %v3065_v41, %s9165_s5  ;;  %4174 = vrot.lane.b32.xlu0 %v4161_v62, %s9140_s27  ;;  %v1193_v62 = vmul.bf16 %v6571_v24, %v7299_v33  ;;  %v3210_v24 = vmul.bf16 %v9314_v0, %v7072_v46 }
 0xc51   : > { %3076 = vrot.lane.b32.xlu1 %v3064_v11, %s9165_s5  ;;  %1136 = vrot.lane.b32.xlu0 %v1119_v57, %s9182_s7  ;;  %v3211_v57 = vmul.bf16 %v7355_v28, %v7074_v38 }
 0xc53   : > { %v905_v23 = vpop.permute.xlu1 %904  ;;  %v903_v22 = vpop.permute.xlu0 %902 }
 0xc54   : > { %v914_v25 = vsel %vm912_vm1, %v903_v22, %v905_v23  ;;  %v913_v48 = vsel %vm912_vm1, %v9361_v30, %v903_v22  ;;  %v1269_v23 = vmul.bf16 %v6585_v36, %v7299_v33  ;;  %v3285_v36 = vmul.bf16 %v7366_v60, %v7074_v38 }
 0xc55   : > { %3152 = vrot.lane.b32.xlu1 %v3139_v45, %s9182_s7  ;;  %4798 = vmatprep.subr.bf16.mxu0 %v914_v25  ;;  %v9363_v25 = vld [vmem:[#allocation49_spill] sm:$0xff] }
 0xc56   : > { %4172 = vrot.lane.b32.xlu0 %v4160_v19, %s9140_s27  ;;  %4799 = vmatpush1.bf16.msra.mxu0 %v913_v48  ;;  %v1343_v30 = vmul.bf16 %v9363_v25, %v7299_v33  ;;  %v1419_v25 = vmul.bf16 %v6617_v9, %v7299_v33  ;;  %v9372_v9 = vld [vmem:[#allocation92_spill] sm:$0xff] }
 0xc57   : > { %v7605_v41 = vpop.permute.xlu1 %980  ;;  %v7609_v11 = vpop.permute.xlu0 %978  ;;  %v3356_v10 = vmul.bf16 %v9372_v9, %v7072_v46 }
 0xc59   : > { %3150 = vrot.lane.b32.xlu1 %v3138_v15, %s9182_s7 }
 0xc5a   : > { %1210 = vrot.lane.b32.xlu0 %v1193_v62, %s9139_s29  ;;  %v2370_v62 = vmul.bf16 %v7024_v3, %v7074_v38 }
 0xc5b   : > { %v7615_v45 = vpop.permute.xlu1 %1054  ;;  %v7619_v19 = vpop.permute.xlu0 %1052 }
 0xc5d   : > { %3224 = vrot.lane.b32.xlu1 %v3211_v57, %s9139_s29 }
 0xc5e   : > { %1286 = vrot.lane.b32.xlu0 %v1269_v23, %s9191_s25  ;;  %v3284_v23 = vmul.bf16 %v9316_v35, %v7072_v46 }
 0xc5f   : > { %v7625_v22 = vpop.permute.xlu1 %1130  ;;  %v7629_v48 = vpop.permute.xlu0 %1128 }
 0xc60   : > { %9362 = vst [vmem:[#allocation80_spill] sm:$0xff] %v7625_v22  ;;  %9364 = vst [vmem:[#allocation67_spill] sm:$0xff] %v7629_v48 }
 0xc61   : > { %3222 = vrot.lane.b32.xlu1 %v3210_v24, %s9139_s29 }
 0xc62   : > { %1360 = vrot.lane.b32.xlu0 %v1343_v30, %s9192_s24 }
 0xc63   : > { %v7635_v15 = vpop.permute.xlu1 %1204  ;;  %v7639_v57 = vpop.permute.xlu0 %1202 }
 0xc64   : > { %9365 = vst [vmem:[#allocation82_spill] sm:$0xff] %v7635_v15  ;;  %9366 = vst [vmem:[#allocation68_spill] sm:$0xff] %v7639_v57 }
 0xc65   : > { %3298 = vrot.lane.b32.xlu1 %v3285_v36, %s9191_s25 }
 0xc66   : > { %2384 = vrot.lane.b32.xlu0 %v2370_v62, %s9367_s14  ;;  %v4233_v62 = vmul.bf16 %v7475_v31, %v7074_v38  ;;  %v3431_v31 = vmul.bf16 %v7381_v61, %v7074_v38 }
 0xc67   : > { %v7645_v24 = vpop.permute.xlu1 %1280  ;;  %v7649_v30 = vpop.permute.xlu0 %1278 }
 0xc68   : > { %9368 = vst [vmem:[#allocation88_spill] sm:$0xff] %v7645_v24  ;;  %9369 = vst [vmem:[#allocation71_spill] sm:$0xff] %v7649_v30 }
 0xc69   : > { %3296 = vrot.lane.b32.xlu1 %v3284_v23, %s9191_s25 }
 0xc6a   : > { %1436 = vrot.lane.b32.xlu0 %v1419_v25, %s9188_s10  ;;  %v9374_v25 = vld [vmem:[#allocation53_spill] sm:$0xff] }
 0xc6b   : > { %v7655_v36 = vpop.permute.xlu1 %1354  ;;  %v7659_v3 = vpop.permute.xlu0 %1352  ;;  %v1493_v16 = vmul.bf16 %v9374_v25, %v7299_v33  ;;  %v9378_v25 = vld [vmem:[#allocation94_spill] sm:$0xff] }
 0xc6c   : > { %9370 = vst [vmem:[#allocation76_spill] sm:$0xff] %v7655_v36  ;;  %9371 = vst [vmem:[#allocation79_spill] sm:$0xff] %v7659_v3 }
 0xc6d   : > { %3370 = vrot.lane.b32.xlu1 %v3357_v44, %s9192_s24 }
 0xc6e   : > { %4246 = vrot.lane.b32.xlu0 %v4233_v62, %s9138_s23  ;;  %v4232_v62 = vmul.bf16 %v9356_v63, %v7072_v46  ;;  %v3503_v63 = vmul.bf16 %v7386_v56, %v7074_v38 }
 0xc6f   : > { %v7665_v23 = vpop.permute.xlu1 %1430  ;;  %v7669_v27 = vpop.permute.xlu0 %1428 }
 0xc70   : > { %9373 = vst [vmem:[#allocation83_spill] sm:$0xff] %v7665_v23  ;;  %9375 = vst [vmem:[#allocation87_spill] sm:$0xff] %v7669_v27  ;;  %v3430_v27 = vmul.bf16 %v9378_v25, %v7072_v46 }
 0xc71   : > { %3368 = vrot.lane.b32.xlu1 %v3356_v10, %s9192_s24 }
 0xc72   : > { %1510 = vrot.lane.b32.xlu0 %v1493_v16, %s9184_s8  ;;  %v9380_v16 = vld [vmem:[#allocation55_spill] sm:$0xff] }
 0xc73   : > { %v7675_v44 = vpop.permute.xlu1 %1504  ;;  %v7679_v3 = vpop.permute.xlu0 %1502  ;;  %v1569_v23 = vmul.bf16 %v9380_v16, %v7299_v33  ;;  %v9385_v16 = vld [vmem:[#allocation96_spill] sm:$0xff] }
 0xc74   : > { %9376 = vst [vmem:[#allocation91_spill] sm:$0xff] %v7675_v44  ;;  %9377 = vst [vmem:[#allocation101_spill] sm:$0xff] %v7679_v3 }
 0xc75   : > { %3444 = vrot.lane.b32.xlu1 %v3431_v31, %s9188_s10 }
 0xc76   : > { %4244 = vrot.lane.b32.xlu0 %v4232_v62, %s9138_s23  ;;  %v9383_v62 = vld [vmem:[#allocation57_spill] sm:$0xff] }
 0xc77   : > { %v7685_v10 = vpop.permute.xlu1 %1580  ;;  %v7689_v36 = vpop.permute.xlu0 %1578  ;;  %v1643_v3 = vmul.bf16 %v9383_v62, %v7299_v33  ;;  %v9389_v62 = vld [vmem:[#allocation42_spill] sm:$0xff] }
 0xc78   : > { %9379 = vst [vmem:[#allocation105_spill] sm:$0xff] %v7685_v10  ;;  %9381 = vst [vmem:[#allocation108_spill] sm:$0xff] %v7689_v36  ;;  %v3502_v36 = vmul.bf16 %v9385_v16, %v7072_v46 }
 0xc79   : > { %3442 = vrot.lane.b32.xlu1 %v3430_v27, %s9188_s10 }
 0xc7a   : > { %1586 = vrot.lane.b32.xlu0 %v1569_v23, %s9171_s15  ;;  %v9387_v23 = vld [vmem:[#allocation59_spill] sm:$0xff] }
 0xc7b   : > { %v7695_v31 = vpop.permute.xlu1 %1654  ;;  %v7699_v44 = vpop.permute.xlu0 %1652  ;;  %v1717_v10 = vmul.bf16 %v9387_v23, %v7299_v33  ;;  %v9394_v23 = vld [vmem:[#allocation98_spill] sm:$0xff] }
 0xc7c   : > { %9382 = vst [vmem:[#allocation112_spill] sm:$0xff] %v7695_v31  ;;  %9384 = vst [vmem:[#allocation124_spill] sm:$0xff] %v7699_v44  ;;  %v3577_v44 = vmul.bf16 %v9389_v62, %v7074_v38 }
 0xc7d   : > { %3516 = vrot.lane.b32.xlu1 %v3503_v63, %s9184_s8 }
 0xc7e   : > { %1660 = vrot.lane.b32.xlu0 %v1643_v3, %s9167_s6  ;;  %v9391_v3 = vld [vmem:[#allocation146_spill] sm:$0xff] }
 0xc7f   : > { %v7705_v27 = vpop.permute.xlu1 %1728  ;;  %v7709_v30 = vpop.permute.xlu0 %1726  ;;  %v2445_v31 = vmul.bf16 %v9391_v3, %v7074_v38 }
 0xc80   : > { %9386 = vst [vmem:[#allocation24_spill] sm:$0xff] %v7705_v27  ;;  %9388 = vst [vmem:[#allocation49_spill] sm:$0xff] %v7709_v30  ;;  %v3576_v30 = vmul.bf16 %v9394_v23, %v7072_v46 }
 0xc81   : > { %3514 = vrot.lane.b32.xlu1 %v3502_v36, %s9184_s8 }
 0xc82   : > { %1734 = vrot.lane.b32.xlu0 %v1717_v10, %s9164_s20  ;;  %v9396_v10 = vld [vmem:[#allocation61_spill] sm:$0xff] }
 0xc83   : > { %v7715_v63 = vpop.permute.xlu1 %1800  ;;  %v7719_v24 = vpop.permute.xlu0 %1798  ;;  %v1789_v27 = vmul.bf16 %v9396_v10, %v7299_v33  ;;  %v9401_v10 = vld [vmem:[#allocation102_spill] sm:$0xff] }
 0xc84   : > { %9390 = vst [vmem:[#allocation92_spill] sm:$0xff] %v7715_v63  ;;  %9392 = vst [vmem:[#allocation53_spill] sm:$0xff] %v7719_v24  ;;  %v9398_v24 = vld [vmem:[#allocation70_spill] sm:$0xff] }
 0xc85   : > { %3590 = vrot.lane.b32.xlu1 %v3577_v44, %s9171_s15  ;;  %v3649_v63 = vmul.bf16 %v9398_v24, %v7074_v38 }
 0xc86   : > { %2459 = vrot.lane.b32.xlu0 %v2445_v31, %s9393_s13  ;;  %v4307_v31 = vmul.bf16 %v7485_v55, %v7074_v38 }
 0xc87   : > { %v7725_v36 = vpop.permute.xlu1 %1874  ;;  %v7729_v51 = vpop.permute.xlu0 %1872 }
 0xc88   : > { %9395 = vst [vmem:[#allocation94_spill] sm:$0xff] %v7725_v36  ;;  %9397 = vst [vmem:[#allocation55_spill] sm:$0xff] %v7729_v51  ;;  %v3648_v51 = vmul.bf16 %v9401_v10, %v7072_v46 }
 0xc89   : > { %3588 = vrot.lane.b32.xlu1 %v3576_v30, %s9171_s15 }
 0xc8a   : > { %1806 = vrot.lane.b32.xlu0 %v1789_v27, %s9160_s18  ;;  %v1863_v27 = vmul.bf16 %v6666_v39, %v7299_v33  ;;  %v9407_v39 = vld [vmem:[#allocation107_spill] sm:$0xff] }
 0xc8b   : > { %v7735_v44 = vpop.permute.xlu1 %1946  ;;  %v7739_v3 = vpop.permute.xlu0 %1944 }
 0xc8c   : > { %9399 = vst [vmem:[#allocation57_spill] sm:$0xff] %v7735_v44  ;;  %9400 = vst [vmem:[#allocation96_spill] sm:$0xff] %v7739_v3  ;;  %v9404_v3 = vld [vmem:[#allocation44_spill] sm:$0xff] }
 0xc8d   : > { %3662 = vrot.lane.b32.xlu1 %v3649_v63, %s9167_s6  ;;  %v3723_v44 = vmul.bf16 %v9404_v3, %v7074_v38 }
 0xc8e   : > { %4320 = vrot.lane.b32.xlu0 %v4307_v31, %s9137_s19  ;;  %v4306_v31 = vmul.bf16 %v9359_v14, %v7072_v46  ;;  %v2009_v14 = vmul.bf16 %v6703_v20, %v7299_v33  ;;  %v9414_v20 = vmul.bf16 %v7216_v5, %v7299_v33 }
 0xc8f   : > { %v7745_v30 = vpop.permute.xlu1 %2020  ;;  %v7749_v36 = vpop.permute.xlu0 %2018 }
 0xc90   : > { %9402 = vst [vmem:[#allocation59_spill] sm:$0xff] %v7745_v30  ;;  %9403 = vst [vmem:[#allocation42_spill] sm:$0xff] %v7749_v36 }
 0xc91   : > { %3660 = vrot.lane.b32.xlu1 %v3648_v51, %s9167_s6  ;;  %v3722_v51 = vmul.bf16 %v9407_v39, %v7072_v46 }
 0xc92   : > { %1880 = vrot.lane.b32.xlu0 %v1863_v27, %s9156_s2  ;;  %v1935_v27 = vmul.bf16 %v6670_v37, %v7299_v33 }
 0xc93   : > { %v7755_v63 = vpop.permute.xlu1 %2092  ;;  %v7759_v55 = vpop.permute.xlu0 %2090 }
 0xc94   : > { %9405 = vst [vmem:[#allocation98_spill] sm:$0xff] %v7755_v63  ;;  %9406 = vst [vmem:[#allocation61_spill] sm:$0xff] %v7759_v55  ;;  %v9409_v63 = vld [vmem:[#allocation86_spill] sm:$0xff] }
 0xc95   : > { %3736 = vrot.lane.b32.xlu1 %v3723_v44, %s9164_s20  ;;  %v9410_v44 = vld [vmem:[#allocation72_spill] sm:$0xff] }
 0xc96   : > { %4318 = vrot.lane.b32.xlu0 %v4306_v31, %s9137_s19  ;;  %v3795_v31 = vmul.bf16 %v9410_v44, %v7074_v38 }
 0xc97   : > { %v2715_v36 = vpop.permute.xlu1 %2714  ;;  %v7767_v30 = vpop.permute.xlu0 %2166 }
 0xc98   : > { %9408 = vst [vmem:[#allocation70_spill] sm:$0xff] %v7767_v30  ;;  %v2725_v52 = vsel %vm2588_vm9, %v2715_v36, %v9409_v63 }
 0xc99   : > { %3734 = vrot.lane.b32.xlu1 %v3722_v51, %s9164_s20  ;;  %4961 = vmatprep.subr.bf16.mxu1 %v2725_v52  ;;  %v9412_v52 = vld [vmem:[#allocation111_spill] sm:$0xff] }
 0xc9a   : > { %1952 = vrot.lane.b32.xlu0 %v1935_v27, %s9154_s0  ;;  %v3794_v63 = vmul.bf16 %v9412_v52, %v7072_v46 }
 0xc9b   : > { %v2713_v55 = vpop.permute.xlu1 %2712  ;;  %v7778_v37 = vpop.permute.xlu0 %4028 }
 0xc9c   : > { %v2724_v57 = vsel %vm2588_vm9, %v2713_v55, %v2715_v36  ;;  %9411 = vst [vmem:[#allocation102_spill] sm:$0xff] %v7778_v37  ;;  %v3869_v55 = vmul.bf16 %v7433_v40, %v7074_v38 }
 0xc9d   : > { %3808 = vrot.lane.b32.xlu1 %v3795_v31, %s9160_s18  ;;  %4962 = vmatpush1.bf16.msra.mxu1 %v2724_v57  ;;  %v9416_v31 = vld [vmem:[#allocation116_spill] sm:$0xff] }
 0xc9e   : > { %2026 = vrot.lane.b32.xlu0 %v2009_v14, %s9136_s12  ;;  %v2703_v14 = vmul.bf16 %v6682_v43, %v7210_v49  ;;  %v9419_v43 = vld [vmem:[#allocation45_spill] sm:$0xff] }
 0xc9f   : > { %v7784_v51 = vpop.permute.xlu1 %2786  ;;  %v7786_v27 = vpop.permute.xlu0 %4026 }
 0xca0   : > { %9413 = vst [vmem:[#allocation44_spill] sm:$0xff] %v7786_v27 }
 0xca1   : > { %3806 = vrot.lane.b32.xlu1 %v3794_v63, %s9160_s18  ;;  %v3868_v63 = vmul.bf16 %v9416_v31, %v7072_v46 }
 0xca2   : > { %2720 = vrot.lane.b32.xlu0 %v9414_v20, %s9226_s3  ;;  %v9418_v20 = vmul.bf16 %v7228_v47, %v7299_v33 }
 0xca3   : > { %v7795_v57 = vpop.permute.xlu1 %2784  ;;  %v7799_v36 = vpop.permute.xlu0 %2238 }
 0xca4   : > { %9415 = vst [vmem:[#allocation107_spill] sm:$0xff] %v7799_v36  ;;  %v3941_v36 = vmul.bf16 %v9419_v43, %v7074_v38 }
 0xca5   : > { %3882 = vrot.lane.b32.xlu1 %v3869_v55, %s9156_s2 }
 0xca6   : > { %2718 = vrot.lane.b32.xlu0 %v2703_v14, %s9226_s3  ;;  %v2775_v14 = vmul.bf16 %v6687_v2, %v7210_v49  ;;  %v9423_v2 = vld [vmem:[#allocation175_spill] sm:$0xff] }
 0xca7   : > { %v7805_v30 = vpop.permute.xlu1 %2860  ;;  %v7807_v5 = vpop.permute.xlu0 %4100 }
 0xca8   : > { %9417 = vst [vmem:[#allocation86_spill] sm:$0xff] %v7807_v5 }
 0xca9   : > { %3880 = vrot.lane.b32.xlu1 %v3868_v63, %s9156_s2  ;;  %v9421_v63 = vld [vmem:[#allocation119_spill] sm:$0xff] }
 0xcaa   : > { %2792 = vrot.lane.b32.xlu0 %v9418_v20, %s9215_s22  ;;  %v3940_v5 = vmul.bf16 %v9421_v63, %v7072_v46  ;;  %v9422_v20 = vmul.bf16 %v7323_v12, %v7299_v33 }
 0xcab   : > { %v7816_v55 = vpop.permute.xlu1 %2858  ;;  %v7820_v27 = vpop.permute.xlu0 %4098 }
 0xcac   : > { %9420 = vst [vmem:[#allocation72_spill] sm:$0xff] %v7820_v27  ;;  %v2151_v27 = vmul.bf16 %v9423_v2, %v7072_v46 }
 0xcad   : > { %3954 = vrot.lane.b32.xlu1 %v3941_v36, %s9154_s0 }
 0xcae   : > { %2790 = vrot.lane.b32.xlu0 %v2775_v14, %s9215_s22  ;;  %v2849_v14 = vmul.bf16 %v9304_v59, %v7210_v49 }
 0xcaf   : > { %v7826_v37 = vpop.permute.xlu1 %2932  ;;  %v7828_v47 = vpop.permute.xlu0 %910 }
 0xcb1   : > { %3952 = vrot.lane.b32.xlu1 %v3940_v5, %s9154_s0  ;;  %v9424_v5 = vld [vmem:[#allocation176_spill] sm:$0xff] }
 0xcb2   : > { %2866 = vrot.lane.b32.xlu0 %v9422_v20, %s9212_s26  ;;  %v2223_v1 = vmul.bf16 %v9424_v5, %v7072_v46  ;;  %v9426_v20 = vmul.bf16 %v7328_v8, %v7299_v33  ;;  %v9427_v5 = vld [vmem:[#allocation162_spill] sm:$0xff]  ;;  %v9430_v8 = vld [vmem:[#allocation115_spill] sm:$0xff] }
 0xcb3   : > { %v7837_v36 = vpop.permute.xlu1 %2930  ;;  %v7841_v15 = vpop.permute.xlu0 %986  ;;  %v9428_v2 = vmul.bf16 %v9427_v5, %v7210_v49 }
 0xcb5   : > { %2164 = vrot.lane.b32.xlu1 %v2151_v27, %s9140_s27  ;;  %v2921_v27 = vmul.bf16 %v9306_v54, %v7210_v49  ;;  %v9432_v54 = vmul.bf16 %v7338_v26, %v7299_v33  ;;  %v9438_v26 = vld [vmem:[#allocation117_spill] sm:$0xff] }
 0xcb6   : > { %2864 = vrot.lane.b32.xlu0 %v2849_v14, %s9212_s26  ;;  %s9768_s26 = sld [smem:[#allocation192_spill]] }
 0xcb7   : > { %v7847_v48 = vpop.permute.xlu1 %3006  ;;  %v7849_v12 = vpop.permute.xlu0 %2312 }
 0xcb8   : > { %9425 = vst [vmem:[#allocation111_spill] sm:$0xff] %v7849_v12 }
 0xcb9   : > { %2236 = vrot.lane.b32.xlu1 %v2223_v1, %s9138_s23 }
 0xcba   : > { %2938 = vrot.lane.b32.xlu0 %v9426_v20, %s9158_s4  ;;  %v9431_v20 = vmul.bf16 0, %v9430_v8 }
 0xcbb   : > { %v7856_v59 = vpop.permute.xlu1 %3004  ;;  %v7860_v14 = vpop.permute.xlu0 %1060 }
 0xcbc   : > { %s9769_s22 = smov %s9768_s26 }
 0xcbd   : > { %908 = vrot.lane.b32.xlu1 %v9428_v2, %s9158_s4  ;;  %v2995_v2 = vmul.bf16 %v9308_v6, %v7210_v49  ;;  %v9440_v6 = vmul.bf16 %v7343_v53, %v7299_v33 }
 0xcbe   : > { %2936 = vrot.lane.b32.xlu0 %v2921_v27, %s9158_s4  ;;  %v9434_v27 = vld [vmem:[#allocation163_spill] sm:$0xff] }
 0xcbf   : > { %v7867_v1 = vpop.permute.xlu1 %3078  ;;  %v7869_v12 = vpop.permute.xlu0 %4174 }
 0xcc0   : > { %9429 = vst [vmem:[#allocation116_spill] sm:$0xff] %v7869_v12  ;;  %v9435_v12 = vmul.bf16 %v9434_v27, %v7210_v49 }
 0xcc1   : > { %2240 = vrot.lane.b32.xlu1 %v9431_v20, %s9138_s23 }
 0xcc2   : > { %3012 = vrot.lane.b32.xlu0 %v9432_v54, %s9161_s17  ;;  %v9439_v54 = vmul.bf16 0, %v9438_v26  ;;  %v9444_v26 = vld [vmem:[#allocation177_spill] sm:$0xff] }
 0xcc3   : > { %v7878_v22 = vpop.permute.xlu1 %3076  ;;  %v7882_v5 = vpop.permute.xlu0 %1136  ;;  %v2297_v53 = vmul.bf16 %v9444_v26, %v7072_v46 }
 0xcc4   : > { %9433 = vst [vmem:[#allocation45_spill] sm:$0xff] %v7882_v5 }
 0xcc5   : > { %984 = vrot.lane.b32.xlu1 %v9435_v12, %s9161_s17  ;;  %v3067_v12 = vmul.bf16 %v9310_v17, %v7210_v49  ;;  %v9446_v17 = vmul.bf16 %v7348_v13, %v7299_v33 }
 0xcc6   : > { %3010 = vrot.lane.b32.xlu0 %v2995_v2, %s9161_s17  ;;  %v5720_v2 = vld [vmem:[#allocation8 + $0x1c] ss:$52 sps:$4 sm:$0xff]  }
 0xcc7   : > { %v7889_v8 = vpop.permute.xlu1 %3152  ;;  %4989 = vmatprep.mubr.bf16.mxu1 %v5720_v2 }
 0xcc8   : > { %9436 = vst [vmem:[#allocation119_spill] sm:$0xff] %v7889_v8  ;;  %v7891_v20 = vpop.permute.xlu0 %4172  ;;  %v9442_v8 = vld [vmem:[#allocation164_spill] sm:$0xff] }
 0xcc9   : > { %9437 = vst [vmem:[#allocation162_spill] sm:$0xff] %v7891_v20  ;;  %4108 = vrot.lane.b32.xlu1 %v9439_v54, %s9141_s21  ;;  %v9443_v20 = vmul.bf16 %v9442_v8, %v7210_v49  ;;  %v3141_v8 = vmul.bf16 %v9312_v29, %v7210_v49  ;;  %v9453_v29 = vmul.bf16 %v7355_v28, %v7299_v33 }
 0xcca   : > { %3084 = vrot.lane.b32.xlu0 %v9440_v6, %s9165_s5 }
 0xccb   : > { %v7900_v5 = vpop.permute.xlu1 %3150 }
 0xccc   : > { %v7904_v27 = vpop.permute.xlu0 %1210 }
 0xccd   : > { %9441 = vst [vmem:[#allocation115_spill] sm:$0xff] %v7904_v27  ;;  %1058 = vrot.lane.b32.xlu1 %v9443_v20, %s9165_s5 }
 0xcce   : > { %3082 = vrot.lane.b32.xlu0 %v3067_v12, %s9165_s5  ;;  %v9448_v12 = vld [vmem:[#allocation165_spill] sm:$0xff]  ;;  %s9519_s5 = smov 4  }
 0xccf   : > { %v7913_v54 = vpop.permute.xlu1 %3224  ;;  %v9449_v2 = vmul.bf16 %v9448_v12, %v7210_v49  ;;  %v3213_v12 = vmul.bf16 %v9314_v0, %v7210_v49  ;;  %v9459_v0 = vmul.bf16 %v7366_v60, %v7299_v33  ;;  %v9464_v60 = vmul.bf16 %v7371_v4, %v7299_v33 }
 0xcd0   : > { %v7915_v6 = vpop.permute.xlu0 %1286 }
 0xcd1   : > { %9445 = vst [vmem:[#allocation163_spill] sm:$0xff] %v7915_v6  ;;  %2310 = vrot.lane.b32.xlu1 %v2297_v53, %s9137_s19  ;;  %v9450_v53 = vld [vmem:[#allocation122_spill] sm:$0xff] }
 0xcd2   : > { %3158 = vrot.lane.b32.xlu0 %v9446_v17, %s9182_s7  ;;  %v2296_v6 = vmul.bf16 0, %v9450_v53 }
 0xcd3   : > { %v7922_v27 = vpop.permute.xlu1 %3222 }
 0xcd4   : > { %v7926_v20 = vpop.permute.xlu0 %1360 }
 0xcd5   : > { %9447 = vst [vmem:[#allocation117_spill] sm:$0xff] %v7926_v20  ;;  %1134 = vrot.lane.b32.xlu1 %v9449_v2, %s9182_s7 }
 0xcd6   : > { %3156 = vrot.lane.b32.xlu0 %v3141_v8, %s9182_s7  ;;  %v9455_v8 = vld [vmem:[#allocation166_spill] sm:$0xff] }
 0xcd7   : > { %v7934_v26 = vpop.permute.xlu1 %3298  ;;  %v9456_v53 = vmul.bf16 %v9455_v8, %v7210_v49  ;;  %v3287_v8 = vmul.bf16 %v9316_v35, %v7210_v49 }
 0xcd8   : > { %9451 = vst [vmem:[#allocation164_spill] sm:$0xff] %v7934_v26  ;;  %v7936_v13 = vpop.permute.xlu0 %2384 }
 0xcd9   : > { %9452 = vst [vmem:[#allocation165_spill] sm:$0xff] %v7936_v13  ;;  %2308 = vrot.lane.b32.xlu1 %v2296_v6, %s9137_s19  ;;  %v9457_v13 = vld [vmem:[#allocation123_spill] sm:$0xff] }
 0xcda   : > { %3230 = vrot.lane.b32.xlu0 %v9453_v29, %s9139_s29  ;;  %v4162_v20 = vmul.bf16 0, %v9457_v13  ;;  %v9461_v13 = vld [vmem:[#allocation167_spill] sm:$0xff] }
 0xcdb   : > { %v7943_v17 = vpop.permute.xlu1 %3296 }
 0xcdc   : > { %v7947_v2 = vpop.permute.xlu0 %1436 }
 0xcdd   : > { %9454 = vst [vmem:[#allocation122_spill] sm:$0xff] %v7947_v2  ;;  %1208 = vrot.lane.b32.xlu1 %v9456_v53, %s9139_s29 }
 0xcde   : > { %3228 = vrot.lane.b32.xlu0 %v3213_v12, %s9139_s29  ;;  %v9462_v12 = vmul.bf16 %v9461_v13, %v7210_v49  ;;  %s9647_s29 = sld [smem:[#allocation191_spill]] }
 0xcdf   : > { %v7955_v26 = vpop.permute.xlu1 %3370 }
 0xce0   : > { %v7957_v28 = vpop.permute.xlu0 %4246 }
 0xce1   : > { %9458 = vst [vmem:[#allocation166_spill] sm:$0xff] %v7957_v28  ;;  %4176 = vrot.lane.b32.xlu1 %v4162_v20, %s9140_s27 }
 0xce2   : > { %3304 = vrot.lane.b32.xlu0 %v9459_v0, %s9191_s25  ;;  %v3359_v0 = vmul.bf16 %v9372_v9, %v7210_v49  ;;  %v9469_v9 = vmul.bf16 %v7381_v61, %v7299_v33 }
 0xce3   : > { %v7964_v29 = vpop.permute.xlu1 %3368 }
 0xce4   : > { %v7968_v53 = vpop.permute.xlu0 %1510 }
 0xce5   : > { %9460 = vst [vmem:[#allocation123_spill] sm:$0xff] %v7968_v53  ;;  %1284 = vrot.lane.b32.xlu1 %v9462_v12, %s9191_s25  ;;  %v5723_v12 = vld [vmem:[#allocation8 + $0x4] ss:$52 sps:$4 sm:$0xff]  }
 0xce6   : > { %3302 = vrot.lane.b32.xlu0 %v3287_v8, %s9191_s25  ;;  %v9466_v8 = vld [vmem:[#allocation168_spill] sm:$0xff]  ;;  %4830 = vmatprep.mubr.bf16.mxu0 %v5723_v12 }
 0xce7   : > { %v7975_v28 = vpop.permute.xlu1 %3444  ;;  %v9467_v53 = vmul.bf16 %v9466_v8, %v7210_v49  ;;  %v3433_v8 = vmul.bf16 %v9378_v25, %v7210_v49  ;;  %v9475_v25 = vmul.bf16 %v7386_v56, %v7299_v33 }
 0xce8   : > { %v7977_v2 = vpop.permute.xlu0 %4244 }
 0xce9   : > { %9463 = vst [vmem:[#allocation167_spill] sm:$0xff] %v7977_v2  ;;  %2314 = vrot.lane.b32.xlu1 %v2296_v6, %s9137_s19 }
 0xcea   : > { %3376 = vrot.lane.b32.xlu0 %v9464_v60, %s9192_s24 }
 0xceb   : > { %v7984_v35 = vpop.permute.xlu1 %3442 }
 0xcec   : > { %v7988_v13 = vpop.permute.xlu0 %1586 }
 0xced   : > { %9465 = vst [vmem:[#allocation180_spill] sm:$0xff] %v7988_v13  ;;  %1358 = vrot.lane.b32.xlu1 %v9467_v53, %s9192_s24 }
 0xcee   : > { %3374 = vrot.lane.b32.xlu0 %v3359_v0, %s9192_s24  ;;  %v9471_v0 = vld [vmem:[#allocation169_spill] sm:$0xff] }
 0xcef   : > { %v7995_v6 = vpop.permute.xlu1 %3516  ;;  %v9472_v12 = vmul.bf16 %v9471_v0, %v7210_v49  ;;  %v3505_v0 = vmul.bf16 %v9385_v16, %v7210_v49  ;;  %v9482_v16 = vmul.bf16 %v9389_v62, %v7299_v33 }
 0xcf0   : > { %v7997_v4 = vpop.permute.xlu0 %1660 }
 0xcf1   : > { %9468 = vst [vmem:[#allocation168_spill] sm:$0xff] %v7997_v4  ;;  %4182 = vrot.lane.b32.xlu1 %v4162_v20, %s9140_s27  ;;  %v9473_v20 = vld [vmem:[#allocation178_spill] sm:$0xff] }
 0xcf2   : > { %3450 = vrot.lane.b32.xlu0 %v9469_v9, %s9188_s10  ;;  %v2369_v2 = vmul.bf16 %v9473_v20, %v7072_v46 }
 0xcf3   : > { %v8004_v60 = vpop.permute.xlu1 %3514 }
 0xcf4   : > { %v8008_v53 = vpop.permute.xlu0 %1734 }
 0xcf5   : > { %9470 = vst [vmem:[#allocation181_spill] sm:$0xff] %v8008_v53  ;;  %1434 = vrot.lane.b32.xlu1 %v9472_v12, %s9188_s10  ;;  %v9477_v12 = vld [vmem:[#allocation170_spill] sm:$0xff] }
 0xcf6   : > { %3448 = vrot.lane.b32.xlu0 %v3433_v8, %s9188_s10  ;;  %v9478_v53 = vmul.bf16 %v9477_v12, %v7210_v49 }
 0xcf7   : > { %v8017_v4 = vpop.permute.xlu1 %3590 }
 0xcf8   : > { %v8019_v61 = vpop.permute.xlu0 %2459 }
 0xcf9   : > { %9474 = vst [vmem:[#allocation169_spill] sm:$0xff] %v8019_v61  ;;  %2382 = vrot.lane.b32.xlu1 %v2369_v2, %s9367_s14  ;;  %v9479_v2 = vld [vmem:[#allocation127_spill] sm:$0xff] }
 0xcfa   : > { %3522 = vrot.lane.b32.xlu0 %v9475_v25, %s9184_s8  ;;  %v2368_v61 = vmul.bf16 0, %v9479_v2 }
 0xcfb   : > { %v8026_v9 = vpop.permute.xlu1 %3588 }
 0xcfc   : > { %v8030_v8 = vpop.permute.xlu0 %1806 }
 0xcfd   : > { %9476 = vst [vmem:[#allocation178_spill] sm:$0xff] %v8030_v8  ;;  %1508 = vrot.lane.b32.xlu1 %v9478_v53, %s9184_s8  ;;  %v3579_v53 = vmul.bf16 %v9394_v23, %v7210_v49  ;;  %v9488_v23 = vmul.bf16 %v9398_v24, %v7299_v33  ;;  %v9493_v24 = vmul.bf16 %v9404_v3, %v7299_v33 }
 0xcfe   : > { %3520 = vrot.lane.b32.xlu0 %v3505_v0, %s9184_s8  ;;  %v9484_v0 = vld [vmem:[#allocation171_spill] sm:$0xff] }
 0xcff   : > { %v8038_v13 = vpop.permute.xlu1 %3662  ;;  %v9485_v2 = vmul.bf16 %v9484_v0, %v7210_v49  ;;  %v3651_v0 = vmul.bf16 %v9401_v10, %v7210_v49 }
 0xd00   : > { %9480 = vst [vmem:[#allocation170_spill] sm:$0xff] %v8038_v13  ;;  %v8040_v56 = vpop.permute.xlu0 %4320 }
 0xd01   : > { %9481 = vst [vmem:[#allocation127_spill] sm:$0xff] %v8040_v56  ;;  %2380 = vrot.lane.b32.xlu1 %v2368_v61, %s9367_s14  ;;  %v9486_v56 = vld [vmem:[#allocation129_spill] sm:$0xff] }
 0xd02   : > { %3596 = vrot.lane.b32.xlu0 %v9482_v16, %s9171_s15  ;;  %v4234_v8 = vmul.bf16 0, %v9486_v56  ;;  %v9490_v56 = vld [vmem:[#allocation172_spill] sm:$0xff] }
 0xd03   : > { %v8047_v25 = vpop.permute.xlu1 %3660 }
 0xd04   : > { %v8051_v12 = vpop.permute.xlu0 %1880 }
 0xd05   : > { %9483 = vst [vmem:[#allocation182_spill] sm:$0xff] %v8051_v12  ;;  %1584 = vrot.lane.b32.xlu1 %v9485_v2, %s9171_s15 }
 0xd06   : > { %3594 = vrot.lane.b32.xlu0 %v3579_v53, %s9171_s15  ;;  %v9491_v53 = vmul.bf16 %v9490_v56, %v7210_v49  ;;  %s9766_s15 = sld [smem:[#allocation18_spill]] }
 0xd07   : > { %v8059_v13 = vpop.permute.xlu1 %3736 }
 0xd08   : > { %v8061_v62 = vpop.permute.xlu0 %4318 }
 0xd09   : > { %9487 = vst [vmem:[#allocation171_spill] sm:$0xff] %v8061_v62  ;;  %4248 = vrot.lane.b32.xlu1 %v4234_v8, %s9138_s23 }
 0xd0a   : > { %3668 = vrot.lane.b32.xlu0 %v9488_v23, %s9167_s6  ;;  %v3725_v23 = vmul.bf16 %v9407_v39, %v7210_v49  ;;  %v9497_v39 = vmul.bf16 %v9410_v44, %v7299_v33 }
 0xd0b   : > { %v8068_v16 = vpop.permute.xlu1 %3734 }
 0xd0c   : > { %v8072_v2 = vpop.permute.xlu0 %1952  ;;  %s5424_s8 = sshll.u32 %s9766_s15, 10 }
 0xd0d   : > { %9489 = vst [vmem:[#allocation129_spill] sm:$0xff] %v8072_v2  ;;  %1658 = vrot.lane.b32.xlu1 %v9491_v53, %s9167_s6  ;;  %v9494_v53 = vld [vmem:[#allocation173_spill] sm:$0xff]  ;;  %s8808_s3 = scalar_lea.hbm %s9768_s26, %s5424_s8 }
 0xd0e   : > { %3666 = vrot.lane.b32.xlu0 %v3651_v0, %s9167_s6  ;;  %v9495_v0 = vmul.bf16 %v9494_v53, %v7210_v49  ;;  %v9496_v2 = vld [vmem:[#allocation69_spill] sm:$0xff]  ;;  %v9498_v53 = vld [vmem:[#allocation90_spill] sm:$0xff]  ;;  %s9572_s6 = smov 2  }
 0xd0f   : > { %v8079_v62 = vpop.permute.xlu1 %3808 }
 0xd10   : > { %v8081_v12 = vpop.permute.xlu0 %2026 }
 0xd11   : > { %9492 = vst [vmem:[#allocation172_spill] sm:$0xff] %v8081_v12  ;;  %2386 = vrot.lane.b32.xlu1 %v2368_v61, %s9367_s14 }
 0xd12   : > { %3742 = vrot.lane.b32.xlu0 %v9493_v24, %s9164_s20 }
 0xd13   : > { %v8088_v10 = vpop.permute.xlu1 %3806 }
 0xd14   : > { %v2721_v56 = vpop.permute.xlu0 %2720 }
 0xd15   : > { %1732 = vrot.lane.b32.xlu1 %v9495_v0, %s9164_s20  ;;  %v2727_v12 = vsel %vm2588_vm9, %v2721_v56, %v9496_v2  ;;  %v2797_v2 = vsel %vm2512_vm0, %v7784_v51, %v9498_v53 }
 0xd16   : > { %3740 = vrot.lane.b32.xlu0 %v3725_v23, %s9164_s20  ;;  %4963 = vmatprep.subr.bf16.mxu1 %v2727_v12  ;;  %v3797_v23 = vmul.bf16 %v9412_v52, %v7210_v49 }
 0xd17   : > { %v8099_v61 = vpop.permute.xlu1 %3882 }
 0xd18   : > { %v2719_v3 = vpop.permute.xlu0 %2718 }
 0xd19   : > { %v2726_v24 = vsel %vm2588_vm9, %v2719_v3, %v2721_v56  ;;  %4254 = vrot.lane.b32.xlu1 %v4234_v8, %s9138_s23  ;;  %v2796_v8 = vsel %vm2512_vm0, %v7795_v57, %v7784_v51  ;;  %v9499_v56 = vld [vmem:[#allocation174_spill] sm:$0xff]  ;;  %v9501_v3 = vld [vmem:[#allocation73_spill] sm:$0xff]  ;;  %v9503_v57 = vmul.bf16 %v7433_v40, %v7299_v33  ;;  %v9505_v40 = vmul.bf16 %v7203_v21, %v7210_v49 }
 0xd1a   : > { %3814 = vrot.lane.b32.xlu0 %v9497_v39, %s9160_s18  ;;  %4964 = vmatpush1.bf16.msra.mxu1 %v2726_v24  ;;  %v9500_v44 = vmul.bf16 %v9499_v56, %v7210_v49  ;;  %v9502_v39 = vld [vmem:[#allocation179_spill] sm:$0xff]  ;;  %v9504_v56 = vld [vmem:[#allocation93_spill] sm:$0xff]  ;;  %v9508_v21 = vmul.bf16 %v7239_v50, %v7210_v49 }
 0xd1b   : > { %4965 = vmatprep.subr.bf16.mxu1 %v2797_v2  ;;  %v8110_v12 = vpop.permute.xlu1 %3880  ;;  %v2444_v53 = vmul.bf16 %v9502_v39, %v7072_v46  ;;  %v9511_v50 = vld [vmem:[#allocation81_spill] sm:$0xff] }
 0xd1c   : > { %v2793_v0 = vpop.permute.xlu0 %2792 }
 0xd1d   : > { %1804 = vrot.lane.b32.xlu1 %v9500_v44, %s9160_s18  ;;  %v2799_v24 = vsel %vm2512_vm0, %v2793_v0, %v9501_v3  ;;  %v3871_v44 = vmul.bf16 %v9416_v31, %v7210_v49 }
 0xd1e   : > { %3812 = vrot.lane.b32.xlu0 %v3797_v23, %s9160_s18  ;;  %4966 = vmatpush1.bf16.msra.mxu1 %v2796_v8  ;;  %v2871_v23 = vsel %vm2438_vm4, %v7805_v30, %v9504_v56 }
 0xd1f   : > { %4967 = vmatprep.subr.bf16.mxu1 %v2799_v24  ;;  %v8126_v52 = vpop.permute.xlu1 %3954  ;;  %v9506_v24 = vld [vmem:[#allocation78_spill] sm:$0xff] }
 0xd20   : > { %v2791_v2 = vpop.permute.xlu0 %2790 }
 0xd21   : > { %v2798_v51 = vsel %vm2512_vm0, %v2791_v2, %v2793_v0  ;;  %2457 = vrot.lane.b32.xlu1 %v2444_v53, %s9393_s13  ;;  %v2870_v0 = vsel %vm2438_vm4, %v7816_v55, %v7805_v30  ;;  %v9507_v2 = vld [vmem:[#allocation133_spill] sm:$0xff]  ;;  %v9509_v30 = vld [vmem:[#allocation95_spill] sm:$0xff] }
 0xd22   : > { %3888 = vrot.lane.b32.xlu0 %v9503_v57, %s9156_s2  ;;  %4968 = vmatpush1.bf16.msra.mxu1 %v2798_v51  ;;  %v2443_v51 = vmul.bf16 0, %v9507_v2  ;;  %v2943_v55 = vsel %vm912_vm1, %v7826_v37, %v9509_v30 }
 0xd23   : > { %4969 = vmatprep.subr.bf16.mxu1 %v2871_v23  ;;  %v8137_v8 = vpop.permute.xlu1 %3952 }
 0xd24   : > { %v2867_v3 = vpop.permute.xlu0 %2866 }
 0xd25   : > { %1878 = vrot.lane.b32.xlu1 %v9505_v40, %s9156_s2  ;;  %v2873_v53 = vsel %vm2438_vm4, %v2867_v3, %v9506_v24  ;;  %v9512_v24 = vmul.bf16 %v9419_v43, %v7299_v33  ;;  %v9515_v43 = vld [vmem:[#allocation97_spill] sm:$0xff] }
 0xd26   : > { %3886 = vrot.lane.b32.xlu0 %v3871_v44, %s9156_s2  ;;  %4970 = vmatpush1.bf16.msra.mxu1 %v2870_v0  ;;  %v9510_v0 = vmul.bf16 %v7208_v34, %v7210_v49  ;;  %s9764_s2 = sld [smem:[#allocation23_spill]] }
 0xd27   : > { %4971 = vmatprep.subr.bf16.mxu1 %v2873_v53  ;;  %v8152_v31 = vpop.permute.xlu1 %2164  ;;  %v9513_v53 = vld [vmem:[#allocation135_spill] sm:$0xff] }
 0xd28   : > { %v2865_v57 = vpop.permute.xlu0 %2864  ;;  %v4308_v2 = vmul.bf16 0, %v9513_v53 }
 0xd29   : > { %v2872_v56 = vsel %vm2438_vm4, %v2865_v57, %v2867_v3  ;;  %2455 = vrot.lane.b32.xlu1 %v2443_v51, %s9393_s13  ;;  %v2942_v3 = vsel %vm912_vm1, %v7837_v36, %v7826_v37  ;;  %v3943_v37 = vmul.bf16 %v9421_v63, %v7210_v49 }
 0xd2a   : > { %2096 = vrot.lane.b32.xlu0 %v9508_v21, %s9141_s21  ;;  %4972 = vmatpush1.bf16.msra.mxu1 %v2872_v56  ;;  %v9514_v56 = vld [vmem:[#allocation39_spill] sm:$0xff] }
 0xd2b   : > { %4973 = vmatprep.subr.bf16.mxu1 %v2943_v55  ;;  %v8163_v23 = vpop.permute.xlu1 %2236  ;;  %v3017_v55 = vsel %vm988_vm13, %v7847_v48, %v9515_v43  ;;  %v3088_v43 = vsel %vm1062_vm14, %v7878_v22, %v7867_v1  ;;  %v4017_v22 = vmul.bf16 %v9346_v58, %v7210_v49 }
 0xd2c   : > { %v2939_v44 = vpop.permute.xlu0 %2938  ;;  %s9765_s4 = sshll.u32 %s9764_s2, 6  ;;  %s5178_s16 = scalar_lea.sflag [#allocation7], %s9764_s2 }
 0xd2d   : > { %1950 = vrot.lane.b32.xlu1 %v9510_v0, %s9154_s0  ;;  %v2945_v40 = vsel %vm912_vm1, %v2939_v44, %v9511_v50  ;;  %v3016_v50 = vsel %vm988_vm13, %v7856_v59, %v7847_v48  ;;  %v2155_v48 = vmul.bf16 %v6988_v42, %v7299_v33  ;;  %v9521_v59 = vld [vmem:[#allocation40_spill] sm:$0xff]  ;;  %v2081_v42 = vmul.bf16 %v6776_v7, %v7299_v33  ;;  %s8794_s18 = scalar_lea.vmem [#allocation10], %s9765_s4 }
 0xd2e   : > { %3960 = vrot.lane.b32.xlu0 %v9512_v24, %s9154_s0  ;;  %4974 = vmatpush1.bf16.msra.mxu1 %v2942_v3  ;;  %v9518_v24 = vld [vmem:[#allocation85_spill] sm:$0xff]  ;;  %v9524_v7 = vmul.bf16 %v7448_v32, %v7299_v33  ;;  %s5191_s7 = sshll.u32 %s8794_s18, 4  ;;  %s8802_s7 = int_to_ptr.vmem [resolvable:$true] %s5191_s7 }
 0xd2f   : > { %4975 = vmatprep.subr.bf16.mxu1 %v2945_v40  ;;  %v909_v57 = vpop.permute.xlu1 %908  ;;  %v9517_v40 = vmul.bf16 %v7221_v18, %v7210_v49  ;;  %s5830_s28 = scalar_lea.vmem %s8802_s7, 1024  ;;  %p5837_p10 = scmp.lt.s32.totalorder %s8802_s7, %s5835_s30 }
 0xd30   : > { %v2937_v36 = vpop.permute.xlu0 %2936  ;;  %v916_v34 = vsel %vm912_vm1, %v909_v57, %v7828_v47  ;;  %v915_v21 = vsel %vm912_vm1, %v9514_v56, %v909_v57  ;;  %v990_v47 = vsel %vm988_vm13, %v7609_v11, %v7605_v41  ;;  %v9520_v41 = vld [vmem:[#allocation25_spill] sm:$0xff]  ;;  %p5831_p4 = scmp.ne.s32.totalorder %s8802_s7, %s5830_s28 }
 0xd31   : > { %v2944_v30 = vsel %vm912_vm1, %v2937_v36, %v2939_v44  ;;  %4322 = vrot.lane.b32.xlu1 %v4308_v2, %s9137_s19  ;;  %4800 = vmatprep.subr.bf16.mxu0 %v916_v34  ;;  %v9516_v44 = vld [vmem:[#allocation152_spill] sm:$0xff]  ;;  %v989_v57 = vsel %vm988_vm13, %v9520_v41, %v7609_v11 }
 0xd32   : > { %3958 = vrot.lane.b32.xlu0 %v3943_v37, %s9154_s0  ;;  %4976 = vmatpush1.bf16.msra.mxu1 %v2944_v30  ;;  %v2519_v3 = vmul.bf16 %v9516_v44, %v7074_v38  ;;  %v9522_v11 = vld [vmem:[#allocation100_spill] sm:$0xff]  ;;  %p5832_p6 = pnand %p5831_p4, %p6101_p12 }
 0xd33   : > { %4801 = vmatpush1.bf16.msra.mxu0 %v915_v21  ;;  %4977 = vmatprep.subr.bf16.mxu1 %v3017_v55  ;;  %v8191_v63 = vpop.permute.xlu1 %2240  ;;  %v3089_v21 = vsel %vm1062_vm14, %v7867_v1, %v9522_v11  ;;  %v9523_v55 = vld [vmem:[#allocation89_spill] sm:$0xff]  ;;  %v9526_v1 = vld [vmem:[#allocation43_spill] sm:$0xff] }
 0xd34   : > { %4802 = vmatprep.subr.bf16.mxu0 %v990_v47  ;;  %v3013_v0 = vpop.permute.xlu0 %3012  ;;  %p5833_p8 = pneg %p5832_p6 }
 0xd35   : > { %2024 = vrot.lane.b32.xlu1 %v9517_v40, %s9136_s12  ;;  %v3019_v53 = vsel %vm988_vm13, %v3013_v0, %v9518_v24 }
 0xd36   : > { %2533 = vrot.lane.b32.xlu0 %v2519_v3, %s9519_s5  ;;  %4978 = vmatpush1.bf16.msra.mxu1 %v3016_v50  ;;  %v9525_v3 = vld [vmem:[#allocation26_spill] sm:$0xff] }
 0xd37   : > { %4803 = vmatpush1.bf16.msra.mxu0 %v989_v57  ;;  %4979 = vmatprep.subr.bf16.mxu1 %v3019_v53  ;;  %v985_v37 = vpop.permute.xlu1 %984  ;;  %v9528_v53 = vld [vmem:[#allocation119_spill] sm:$0xff]  ;;  %v9529_v57 = vld [vmem:[#allocation80_spill] sm:$0xff] }
 0xd38   : > { %v991_v18 = vsel %vm988_vm13, %v9521_v59, %v985_v37  ;;  %v3011_v36 = vpop.permute.xlu0 %3010  ;;  %v992_v34 = vsel %vm988_vm13, %v985_v37, %v7841_v15  ;;  %v1064_v15 = vsel %vm1062_vm14, %v7619_v19, %v7615_v45  ;;  %v1063_v45 = vsel %vm1062_vm14, %v9525_v3, %v7619_v19  ;;  %v9527_v19 = vld [vmem:[#allocation104_spill] sm:$0xff]  ;;  %v9530_v37 = vld [vmem:[#allocation67_spill] sm:$0xff] }
 0xd39   : > { %v3018_v56 = vsel %vm988_vm13, %v3011_v36, %v3013_v0  ;;  %2461 = vrot.lane.b32.xlu1 %v2443_v51, %s9393_s13  ;;  %4804 = vmatprep.subr.bf16.mxu0 %v992_v34  ;;  %v3163_v41 = vsel %vm1138_vm5, %v9528_v53, %v9527_v19  ;;  %v9532_v36 = vld [vmem:[#allocation175_spill] sm:$0xff]  ;;  %vm9540_vm13 = vmmov %vm9350_vm8  ;;  %v9542_v19 = vld [vmem:[#allocation68_spill] sm:$0xff] }
 0xd3a   : > { %2172 = vrot.lane.b32.xlu0 %v2155_v48, %s9140_s27  ;;  %4980 = vmatpush1.bf16.msra.mxu1 %v3018_v56  ;;  %v9531_v48 = vld [vmem:[#allocation139_spill] sm:$0xff]  ;;  %v9533_v34 = vmul.bf16 %v9532_v36, %v7210_v49 }
 0xd3b   : > { %4805 = vmatpush1.bf16.msra.mxu0 %v991_v18  ;;  %4981 = vmatprep.subr.bf16.mxu1 %v3089_v21  ;;  %v8225_v30 = vpop.permute.xlu1 %4108  ;;  %v2517_v59 = vmul.bf16 0, %v9531_v48  ;;  %v3162_v18 = vsel %vm1138_vm5, %v7900_v5, %v9528_v53  ;;  %v9534_v56 = vld [vmem:[#allocation99_spill] sm:$0xff]  ;;  %v8273_v21 = vsel %vm2512_vm0, %v9531_v48, %v9516_v44  ;;  %v9545_v48 = vld [vmem:[#allocation176_spill] sm:$0xff] }
 0xd3c   : > { %4806 = vmatprep.subr.bf16.mxu0 %v1064_v15  ;;  %v3085_v51 = vpop.permute.xlu0 %3084  ;;  %v2518_v15 = vmul.bf16 %v8273_v21, %v7072_v46 }
 0xd3d   : > { %2098 = vrot.lane.b32.xlu1 %v2081_v42, %s9141_s21  ;;  %v3091_v47 = vsel %vm1062_vm14, %v3085_v51, %v9523_v55  ;;  %v9535_v42 = vld [vmem:[#allocation27_spill] sm:$0xff] }
 0xd3e   : > { %4034 = vrot.lane.b32.xlu0 %v9524_v7, %s9136_s12  ;;  %4982 = vmatpush1.bf16.msra.mxu1 %v3088_v43  ;;  %v1139_v5 = vsel %vm1138_vm5, %v9535_v42, %v9530_v37  ;;  %v9536_v43 = vld [vmem:[#allocation128_spill] sm:$0xff] }
 0xd3f   : > { %4807 = vmatpush1.bf16.msra.mxu0 %v1063_v45  ;;  %4983 = vmatprep.subr.bf16.mxu1 %v3091_v47  ;;  %v1059_v0 = vpop.permute.xlu1 %1058  ;;  %v2227_v55 = vmul.bf16 %v9536_v43, %v7299_v33  ;;  %v9537_v47 = vld [vmem:[#allocation46_spill] sm:$0xff]  ;;  %v9538_v45 = vld [vmem:[#allocation45_spill] sm:$0xff] }
 0xd40   : > { %v1065_v50 = vsel %vm1062_vm14, %v9526_v1, %v1059_v0  ;;  %v3083_v40 = vpop.permute.xlu0 %3082  ;;  %v1066_v24 = vsel %vm1062_vm14, %v1059_v0, %v7860_v14  ;;  %v1140_v14 = vsel %vm1138_vm5, %v9530_v37, %v9529_v57  ;;  %v5718_v1 = vld [vmem:[#allocation8 + $0x18] ss:$52 sps:$4 sm:$0xff]  }
 0xd41   : > { %v3090_v32 = vsel %vm1062_vm14, %v3083_v40, %v3085_v51  ;;  %4328 = vrot.lane.b32.xlu1 %v4308_v2, %s9137_s19  ;;  %4808 = vmatprep.subr.bf16.mxu0 %v1066_v24  ;;  %vm9543_vm14 = vmmov %vm9350_vm8  ;;  %v5724_v37 = vld [vmem:[#allocation8 + $0x84] ss:$52 sps:$4 sm:$0xff]  }
 0xd42   : > { %4032 = vrot.lane.b32.xlu0 %v4017_v22, %s9136_s12  ;;  %4984 = vmatpush1.bf16.msra.mxu1 %v3090_v32  ;;  %v9541_v32 = vld [vmem:[#allocation82_spill] sm:$0xff] }
 0xd43   : > { %4809 = vmatpush1.bf16.msra.mxu0 %v1065_v50  ;;  %4985 = vmatprep.subr.bf16.mxu1 %v3163_v41  ;;  %v8255_v58 = vpop.permute.xlu1 %2310  ;;  %v9539_v50 = vld [vmem:[#allocation109_spill] sm:$0xff]  ;;  %v1214_v53 = vsel %vm9543_vm14, %v9542_v19, %v9541_v32  ;;  %v9565_v32 = vld [vmem:[#allocation156_spill] sm:$0xff] }
 0xd44   : > { %4810 = vmatprep.subr.bf16.mxu0 %v1140_v14  ;;  %v3159_v2 = vpop.permute.xlu0 %3158  ;;  %v3235_v40 = vsel %vm9540_vm13, %v7913_v54, %v9539_v50  ;;  %v9562_v50 = vld [vmem:[#allocation88_spill] sm:$0xff] }
 0xd45   : > { %2170 = vrot.lane.b32.xlu1 %v9533_v34, %s9140_s27  ;;  %v3165_v11 = vsel %vm1138_vm5, %v3159_v2, %v9534_v56  ;;  %v9549_v34 = vld [vmem:[#allocation75_spill] sm:$0xff] }
 0xd46   : > { %2535 = vrot.lane.b32.xlu0 %v2517_v59, %s9519_s5  ;;  %4986 = vmatpush1.bf16.msra.mxu1 %v3162_v18  ;;  %v9547_v18 = vld [vmem:[#allocation103_spill] sm:$0xff]  ;;  %v9550_v56 = vmul.bf16 %v9549_v34, %v7299_v33  ;;  %v9573_v34 = vld [vmem:[#allocation29_spill] sm:$0xff] }
 0xd47   : > { %4811 = vmatpush1.bf16.msra.mxu0 %v1139_v5  ;;  %4987 = vmatprep.subr.bf16.mxu1 %v3165_v11  ;;  %v1135_v51 = vpop.permute.xlu1 %1134  ;;  %v9551_v11 = vld [vmem:[#allocation28_spill] sm:$0xff] }
 0xd48   : > { %v1141_v7 = vsel %vm1138_vm5, %v9537_v47, %v1135_v51  ;;  %v3157_v3 = vpop.permute.xlu0 %3156  ;;  %v1142_v0 = vsel %vm1138_vm5, %v1135_v51, %v9538_v45  ;;  %v9559_v45 = vld [vmem:[#allocation113_spill] sm:$0xff] }
 0xd49   : > { %v3164_v22 = vsel %vm1138_vm5, %v3157_v3, %v3159_v2  ;;  %2531 = vrot.lane.b32.xlu1 %v2518_v15, %s9519_s5  ;;  %4812 = vmatprep.subr.bf16.mxu0 %v1142_v0  ;;  %vm9544_vm5 = vmmov %vm9350_vm8  ;;  %v9546_v2 = vmul.bf16 %v9545_v48, %v7210_v49  ;;  %v9554_v15 = vld [vmem:[#allocation47_spill] sm:$0xff]  ;;  %v5726_v3 = vld [vmem:[#allocation8 + $0x80] ss:$52 sps:$4 sm:$0xff]  }
 0xd4a   : > { %2244 = vrot.lane.b32.xlu0 %v2227_v55, %s9138_s23  ;;  %4988 = vmatpush1.bf16.msra.mxu1 %v3164_v22  ;;  %v3234_v14 = vsel %vm9544_vm5, %v7922_v27, %v7913_v54  ;;  %vm9548_vm4 = vmmov %vm9544_vm5  ;;  %v9553_v54 = vld [vmem:[#allocation130_spill] sm:$0xff]  ;;  %v9556_v55 = vld [vmem:[#allocation115_spill] sm:$0xff]  ;;  %vm9561_vm5 = vcmask 752640  }
 0xd4b   : > { %4813 = vmatpush1.bf16.msra.mxu0 %v1141_v7  ;;  %5010 = vmatprep.subr.bf16.mxu1 %v3235_v40  ;;  %v2309_v24 = vpop.permute.xlu1 %2308  ;;  %vm9552_vm8 = vmmov %vm9548_vm4  ;;  %v4089_v5 = vmul.bf16 %v9553_v54, %v7210_v49  ;;  %v9560_v0 = vld [vmem:[#allocation164_spill] sm:$0xff]  ;;  %v9563_v40 = vld [vmem:[#allocation71_spill] sm:$0xff] }
 0xd4c   : > { %v8298_v41 = vsel %vm959_vm7, %v2309_v24, %v8255_v58  ;;  %4814 = vmatprep.subr.bf16.mxu0 %v1214_v53  ;;  %v3231_v57 = vpop.permute.xlu0 %3230  ;;  %v1213_v42 = vsel %vm9552_vm8, %v9551_v11, %v9542_v19  ;;  %vm9555_vm0 = vmmov %vm9548_vm4  ;;  %v3309_v22 = vsel %vm9561_vm5, %v9560_v0, %v9559_v45  ;;  %v5729_v53 = vld [vmem:[#allocation8 + $0x24] ss:$52 sps:$4 sm:$0xff]   ;;  %v9576_v54 = vld [vmem:[#allocation48_spill] sm:$0xff] }
 0xd4d   : > { %2242 = vrot.lane.b32.xlu1 %v9546_v2, %s9138_s23  ;;  %4990 = vmatmul.mubr.bf16.vlgmr.msra.gmra.mrb[4].mxu1 %v5718_v1  ;;  %v3237_v36 = vsel %vm9548_vm4, %v3231_v57, %v9547_v18  ;;  %vm9557_vm13 = vmmov %vm9555_vm0  ;;  %v9569_v48 = vld [vmem:[#allocation106_spill] sm:$0xff]  ;;  %v9571_v18 = vld [vmem:[#allocation143_spill] sm:$0xff] }
 0xd4e   : > { %4106 = vrot.lane.b32.xlu0 %v9550_v56, %s9141_s21  ;;  %5011 = vmatpush1.bf16.msra.mxu1 %v3234_v14  ;;  %vm9558_vm14 = vmmov %vm9555_vm0  ;;  %v9583_v45 = vld [vmem:[#allocation76_spill] sm:$0xff] }
 0xd4f   : > { %4815 = vmatpush1.bf16.msra.mxu0 %v1213_v42  ;;  %5012 = vmatprep.subr.bf16.mxu1 %v3237_v36  ;;  %v1209_v27 = vpop.permute.xlu1 %1208  ;;  %vm9564_vm4 = vmmov %vm9561_vm5  ;;  %v8347_v36 = vsel %vm2588_vm9, %v9571_v18, %v9565_v32  ;;  %v9575_v42 = vld [vmem:[#allocation134_spill] sm:$0xff] }
 0xd50   : > { %v1215_v51 = vsel %vm9555_vm0, %v9554_v15, %v1209_v27  ;;  %v3229_v43 = vpop.permute.xlu0 %3228  ;;  %v1216_v47 = vsel %vm9557_vm13, %v1209_v27, %v9556_v55  ;;  %4999 = vmatprep.mubr.bf16.mxu1 %v5724_v37  ;;  %v1290_v24 = vsel %vm9564_vm4, %v9563_v40, %v9562_v50  ;;  %vm9566_vm8 = vmmov %vm9564_vm4  ;;  %v9567_v37 = vld [vmem:[#allocation177_spill] sm:$0xff]  ;;  %v2594_v56 = vmul.bf16 %v8347_v36, %v7072_v46 }
 0xd51   : > { %v3236_v7 = vsel %vm9558_vm14, %v3229_v43, %v3231_v57  ;;  %2529 = vrot.lane.b32.xlu1 %v2517_v59, %s9519_s5  ;;  %4816 = vmatprep.subr.bf16.mxu0 %v1216_v47  ;;  %v2595_v59 = vmul.bf16 %v9565_v32, %v7074_v38  ;;  %v3308_v57 = vsel %vm9566_vm8, %v7943_v17, %v9560_v0  ;;  %vm9570_vm0 = vmmov %vm9564_vm4  ;;  %v9581_v47 = vld [vmem:[#allocation118_spill] sm:$0xff]  ;;  %vm9582_vm4 = vcmask 736256   ;;  %v9584_v0 = vld [vmem:[#allocation79_spill] sm:$0xff] }
 0xd52   : > { %4104 = vrot.lane.b32.xlu0 %v4089_v5, %s9141_s21  ;;  %5013 = vmatpush1.bf16.msra.mxu1 %v3236_v7  ;;  %v9568_v14 = vmul.bf16 %v9567_v37, %v7210_v49  ;;  %vm9574_vm13 = vmmov %vm9570_vm0  ;;  %v2301_v27 = vmul.bf16 %v9575_v42, %v7299_v33  ;;  %v3381_v7 = vsel %vm9582_vm4, %v7955_v26, %v9581_v47  ;;  %v9592_v37 = vld [vmem:[#allocation30_spill] sm:$0xff]  ;;  %v9605_v47 = vld [vmem:[#allocation87_spill] sm:$0xff] }
 0xd53   : > { %4817 = vmatpush1.bf16.msra.mxu0 %v1215_v51  ;;  %5014 = vmatprep.subr.bf16.mxu1 %v3309_v22  ;;  %v8328_v1 = vpop.permute.xlu1 %4176  ;;  %v1289_v17 = vsel %vm9574_vm13, %v9573_v34, %v9563_v40  ;;  %vm9577_vm14 = vmmov %vm9570_vm0  ;;  %v9578_v51 = vld [vmem:[#allocation163_spill] sm:$0xff] }
 0xd54   : > { %4818 = vmatprep.subr.bf16.mxu0 %v1290_v24  ;;  %v3305_v19 = vpop.permute.xlu0 %3304  ;;  %vm9579_vm9 = vmmov %vm9570_vm0  ;;  %v9587_v24 = vmul.bf16 %v9473_v20, %v7210_v49  ;;  %v9594_v20 = vld [vmem:[#allocation136_spill] sm:$0xff] }
 0xd55   : > { %2316 = vrot.lane.b32.xlu1 %v9568_v14, %s9137_s19  ;;  %v3311_v2 = vsel %vm9570_vm0, %v3305_v19, %v9569_v48  ;;  %5000 = vmatmul.mubr.bf16.gmra.mrb[8].mxu1 %v5726_v3  ;;  %vm9580_vm5 = vmmov %vm9570_vm0  ;;  %v4163_v48 = vmul.bf16 %v9594_v20, %v7210_v49 }
 0xd56   : > { %2609 = vrot.lane.b32.xlu0 %v2595_v59, %s9572_s6  ;;  %5015 = vmatpush1.bf16.msra.mxu1 %v3308_v57  ;;  %vm9585_vm8 = vmmov %vm9582_vm4  ;;  %v9588_v59 = vld [vmem:[#allocation110_spill] sm:$0xff] }
 0xd57   : > { %4819 = vmatpush1.bf16.msra.mxu0 %v1289_v17  ;;  %5016 = vmatprep.subr.bf16.mxu1 %v3311_v2  ;;  %v1285_v11 = vpop.permute.xlu1 %1284  ;;  %v1364_v22 = vsel %vm9585_vm8, %v9584_v0, %v9583_v45  ;;  %vm9586_vm0 = vmmov %vm9582_vm4  ;;  %v9595_v2 = vld [vmem:[#allocation50_spill] sm:$0xff]  ;;  %vm9601_vm8 = vcmask 572416  }
 0xd58   : > { %v1291_v5 = vsel %vm9577_vm14, %v9576_v54, %v1285_v11  ;;  %v3303_v15 = vpop.permute.xlu0 %3302  ;;  %v1292_v43 = vsel %vm9579_vm9, %v1285_v11, %v9578_v51  ;;  %5042 = vmatprep.mubr.bf16.mxu1 %v5729_v53  ;;  %v3380_v40 = vsel %vm9586_vm0, %v7964_v29, %v7955_v26  ;;  %vm9589_vm13 = vmmov %vm9586_vm0  ;;  %v9590_v53 = vld [vmem:[#allocation51_spill] sm:$0xff]  ;;  %v2593_v26 = vmul.bf16 0, %v9571_v18 }
 0xd59   : > { %v3310_v55 = vsel %vm9580_vm5, %v3303_v15, %v3305_v19  ;;  %2607 = vrot.lane.b32.xlu1 %v2594_v56, %s9572_s6  ;;  %4820 = vmatprep.subr.bf16.mxu0 %v1292_v43  ;;  %v9591_v57 = vmul.bf16 %v9590_v53, %v7299_v33  ;;  %vm9593_vm14 = vmmov %vm9586_vm0  ;;  %v9597_v56 = vld [vmem:[#allocation117_spill] sm:$0xff]  ;;  %v9603_v15 = vld [vmem:[#allocation158_spill] sm:$0xff] }
 0xd5a   : > { %2318 = vrot.lane.b32.xlu0 %v2301_v27, %s9137_s19  ;;  %5017 = vmatpush1.bf16.msra.mxu1 %v3310_v55  ;;  %v1363_v14 = vsel %vm9593_vm14, %v9592_v37, %v9584_v0  ;;  %vm9596_vm9 = vmmov %vm9586_vm0  ;;  %v9600_v27 = vld [vmem:[#allocation121_spill] sm:$0xff]  ;;  %v9604_v55 = vld [vmem:[#allocation83_spill] sm:$0xff] }
 0xd5b   : > { %4821 = vmatpush1.bf16.msra.mxu0 %v1291_v5  ;;  %5018 = vmatprep.subr.bf16.mxu1 %v3381_v7  ;;  %v8367_v3 = vpop.permute.xlu1 %2314  ;;  %vm9598_vm5 = vmmov %vm9586_vm0  ;;  %v3455_v54 = vsel %vm9601_vm8, %v7975_v28, %v9600_v27  ;;  %v9602_v5 = vld [vmem:[#allocation145_spill] sm:$0xff]  ;;  %v5721_v27 = vld [vmem:[#allocation8] ss:$52 sps:$4 sm:$0xff]  }
 0xd5c   : > { %4822 = vmatprep.subr.bf16.mxu0 %v1364_v22  ;;  %v3377_v50 = vpop.permute.xlu0 %3376  ;;  %vm9599_vm4 = vmmov %vm9586_vm0  ;;  %v8406_v51 = vsel %vm912_vm1, %v9603_v15, %v9602_v5 }
 0xd5d   : > { %2388 = vrot.lane.b32.xlu1 %v9587_v24, %s9367_s14  ;;  %v3383_v19 = vsel %vm9589_vm13, %v3377_v50, %v9588_v59  ;;  %vm9606_vm0 = vmmov %vm9601_vm8  ;;  %v4379_v45 = vmul.bf16 %v8406_v51, %v7074_v38  ;;  %v9611_v59 = vld [vmem:[#allocation31_spill] sm:$0xff]  ;;  %vm9630_vm8 = vcmask 539648  }
 0xd5e   : > { %4180 = vrot.lane.b32.xlu0 %v9591_v57, %s9140_s27  ;;  %5019 = vmatpush1.bf16.msra.mxu1 %v3380_v40  ;;  %v1440_v7 = vsel %vm9606_vm0, %v9605_v47, %v9604_v55  ;;  %vm9607_vm13 = vmmov %vm9606_vm0  ;;  %v9609_v40 = vld [vmem:[#allocation114_spill] sm:$0xff] }
 0xd5f   : > { %4823 = vmatpush1.bf16.msra.mxu0 %v1363_v14  ;;  %5020 = vmatprep.subr.bf16.mxu1 %v3383_v19  ;;  %v1359_v29 = vpop.permute.xlu1 %1358  ;;  %v3454_v22 = vsel %vm9607_vm13, %v7984_v35, %v7975_v28  ;;  %vm9610_vm1 = vmmov %vm9606_vm0  ;;  %v4380_v19 = vmul.bf16 0, %v9602_v5  ;;  %v9613_v35 = vld [vmem:[#allocation140_spill] sm:$0xff]  ;;  %v9616_v14 = vld [vmem:[#allocation122_spill] sm:$0xff] }
 0xd60   : > { %v1365_v34 = vsel %vm9596_vm9, %v9595_v2, %v1359_v29  ;;  %v3375_v17 = vpop.permute.xlu0 %3374  ;;  %v1366_v11 = vsel %vm9598_vm5, %v1359_v29, %v9597_v56  ;;  %vm9612_vm14 = vmmov %vm9606_vm0  ;;  %v2373_v53 = vmul.bf16 %v9613_v35, %v7299_v33  ;;  %v9620_v56 = vld [vmem:[#allocation91_spill] sm:$0xff] }
 0xd61   : > { %v3382_v42 = vsel %vm9599_vm4, %v3375_v17, %v3377_v50  ;;  %2605 = vrot.lane.b32.xlu1 %v2593_v26, %s9572_s6  ;;  %4824 = vmatprep.subr.bf16.mxu0 %v1366_v11  ;;  %v9608_v50 = vmul.bf16 %v9502_v39, %v7210_v49  ;;  %v1439_v38 = vsel %vm9612_vm14, %v9611_v59, %v9605_v47  ;;  %v9614_v39 = vld [vmem:[#allocation52_spill] sm:$0xff]  ;;  %vm9615_vm9 = vmmov %vm9606_vm0  ;;  %v9621_v11 = vld [vmem:[#allocation101_spill] sm:$0xff] }
 0xd62   : > { %4178 = vrot.lane.b32.xlu0 %v4163_v48, %s9140_s27  ;;  %5021 = vmatpush1.bf16.msra.mxu1 %v3382_v42  ;;  %vm9617_vm5 = vmmov %vm9606_vm0  ;;  %v9619_v48 = vld [vmem:[#allocation126_spill] sm:$0xff]  ;;  %v1514_v42 = vsel %vm1512_vm2, %v9621_v11, %v9620_v56  ;;  %v3526_v47 = vsel %vm1512_vm2, %v8004_v60, %v7995_v6  ;;  %v9627_v59 = vld [vmem:[#allocation123_spill] sm:$0xff] }
 0xd63   : > { %4825 = vmatpush1.bf16.msra.mxu0 %v1365_v34  ;;  %5022 = vmatprep.subr.bf16.mxu1 %v3455_v54  ;;  %v8408_v43 = vpop.permute.xlu1 %4182  ;;  %vm9618_vm4 = vmmov %vm9606_vm0  ;;  %v3527_v2 = vsel %vm1512_vm2, %v7995_v6, %v9619_v48  ;;  %v2522_v34 = vmul.bf16 %v9516_v44, %v7299_v33  ;;  %v5730_v55 = vld [vmem:[#allocation8 + $0x6c] ss:$52 sps:$4 sm:$0xff]   ;;  %v9632_v48 = vld [vmem:[#allocation108_spill] sm:$0xff] }
 0xd64   : > { %4826 = vmatprep.subr.bf16.mxu0 %v1440_v7  ;;  %v3451_v0 = vpop.permute.xlu0 %3450  ;;  %v9622_v7 = vld [vmem:[#allocation120_spill] sm:$0xff]  ;;  %v9626_v6 = vld [vmem:[#allocation142_spill] sm:$0xff] }
 0xd65   : > { %2463 = vrot.lane.b32.xlu1 %v9608_v50, %s9393_s13  ;;  %v3457_v24 = vsel %vm9610_vm1, %v3451_v0, %v9609_v40  ;;  %v4235_v60 = vmul.bf16 %v9626_v6, %v7210_v49  ;;  %v5735_v56 = vld [vmem:[#allocation8 + $0xc] ss:$52 sps:$4 sm:$0xff]  }
 0xd66   : > { %4392 = vrot.lane.b32.xlu0 %v4379_v45, %s9367_s14  ;;  %5023 = vmatpush1.bf16.msra.mxu1 %v3454_v22  ;;  %v9623_v45 = vld [vmem:[#allocation77_spill] sm:$0xff]  ;;  %v9625_v22 = vld [vmem:[#allocation32_spill] sm:$0xff] }
 0xd67   : > { %4827 = vmatpush1.bf16.msra.mxu0 %v1439_v38  ;;  %5024 = vmatprep.subr.bf16.mxu1 %v3457_v24  ;;  %v1435_v28 = vpop.permute.xlu1 %1434  ;;  %v1513_v50 = vsel %vm1512_vm2, %v9625_v22, %v9621_v11  ;;  %v9635_v11 = vld [vmem:[#allocation125_spill] sm:$0xff]  ;;  %v9645_v22 = vld [vmem:[#allocation138_spill] sm:$0xff] }
 0xd68   : > { %v1441_v57 = vsel %vm9615_vm9, %v9614_v39, %v1435_v28  ;;  %v3449_v37 = vpop.permute.xlu0 %3448  ;;  %v1442_v29 = vsel %vm9617_vm5, %v1435_v28, %v9616_v14  ;;  %v9628_v28 = vld [vmem:[#allocation54_spill] sm:$0xff]  ;;  %v9629_v39 = vld [vmem:[#allocation132_spill] sm:$0xff] }
 0xd69   : > { %v3456_v20 = vsel %vm9618_vm4, %v3449_v37, %v3451_v0  ;;  %4394 = vrot.lane.b32.xlu1 %v4380_v19, %s9367_s14  ;;  %4828 = vmatprep.subr.bf16.mxu0 %v1442_v29  ;;  %v9624_v0 = vmul.bf16 %v9623_v45, %v7299_v33  ;;  %v2597_v37 = vmul.bf16 %v8347_v36, %v7210_v49  ;;  %v5732_v29 = vld [vmem:[#allocation8 + $0x68] ss:$52 sps:$4 sm:$0xff]   ;;  %vm9658_vm4 = vcmask 506880  }
 0xd6a   : > { %2390 = vrot.lane.b32.xlu0 %v2373_v53, %s9367_s14  ;;  %5025 = vmatpush1.bf16.msra.mxu1 %v3456_v20  ;;  %v4378_v20 = vmul.bf16 %v9603_v15, %v7072_v46  ;;  %v4638_v6 = vld [vmem:[%s9647_s29] sm:$0xff] }
 0xd6b   : > { %4829 = vmatpush1.bf16.msra.mxu0 %v1441_v57  ;;  %5026 = vmatprep.subr.bf16.mxu1 %v3527_v2  ;;  %v8445_v17 = vpop.permute.xlu1 %2382  ;;  %v3601_v57 = vsel %vm9630_vm8, %v8017_v4, %v9629_v39 }
 0xd6c   : > { %4851 = vmatprep.subr.bf16.mxu0 %v1514_v42  ;;  %v3523_v54 = vpop.permute.xlu0 %3522  ;;  %v9637_v42 = vld [vmem:[#allocation33_spill] sm:$0xff] }
 0xd6d   : > { %2539 = vrot.lane.b32.xlu1 %v2522_v34, %s9519_s5  ;;  %v3529_v44 = vsel %vm1512_vm2, %v3523_v54, %v9622_v7 }
 0xd6e   : > { %4252 = vrot.lane.b32.xlu0 %v9624_v0, %s9138_s23  ;;  %5027 = vmatpush1.bf16.msra.mxu1 %v3526_v47 }
 0xd6f   : > { %4831 = vmatmul.mubr.bf16.vlgmr.msra.gmra.mrb[4].mxu0 %v5721_v27  ;;  %5028 = vmatprep.subr.bf16.mxu1 %v3529_v44  ;;  %v1509_v40 = vpop.permute.xlu1 %1508  ;;  %v9642_v44 = vld [vmem:[#allocation56_spill] sm:$0xff] }
 0xd70   : > { %4852 = vmatpush1.bf16.msra.mxu0 %v1513_v50  ;;  %v3521_v24 = vpop.permute.xlu0 %3520  ;;  %v1516_v38 = vsel %vm1512_vm2, %v1509_v40, %v9627_v59  ;;  %4840 = vmatprep.mubr.bf16.mxu0 %v5730_v55  ;;  %v1515_v35 = vsel %vm1512_vm2, %v9628_v28, %v1509_v40  ;;  %v9639_v55 = vld [vmem:[#allocation146_spill] sm:$0xff]  ;;  %v9649_v59 = vld [vmem:[#allocation124_spill] sm:$0xff]  ;;  %v9650_v28 = vld [vmem:[#allocation131_spill] sm:$0xff] }
 0xd71   : > { %v3528_v53 = vsel %vm1512_vm2, %v3521_v24, %v3523_v54  ;;  %2611 = vrot.lane.b32.xlu1 %v2593_v26, %s9572_s6  ;;  %4853 = vmatprep.subr.bf16.mxu0 %v1516_v38  ;;  %v9631_v26 = vld [vmem:[#allocation105_spill] sm:$0xff]  ;;  %vm9633_vm2 = vmmov %vm9630_vm8  ;;  %v2448_v47 = vmul.bf16 %v9639_v55, %v7299_v33  ;;  %v9646_v50 = vld [vmem:[#allocation170_spill] sm:$0xff] }
 0xd72   : > { %4250 = vrot.lane.b32.xlu0 %v4235_v60, %s9138_s23  ;;  %5029 = vmatpush1.bf16.msra.mxu1 %v3528_v53  ;;  %v1590_v2 = vsel %vm9633_vm2, %v9632_v48, %v9631_v26  ;;  %vm9634_vm0 = vmmov %vm9633_vm2  ;;  %v3673_v40 = vsel %vm1633_vm15, %v9646_v50, %v9645_v22  ;;  %v9648_v24 = vld [vmem:[#allocation112_spill] sm:$0xff]  ;;  %v3672_v38 = vsel %vm1633_vm15, %v8047_v25, %v9646_v50  ;;  %v9651_v53 = vld [vmem:[#allocation66_spill] sm:$0xff] }
 0xd73   : > { %5030 = vmatprep.subr.bf16.mxu1 %v3601_v57  ;;  %v2381_v14 = vpop.permute.xlu1 %2380  ;;  %v3600_v36 = vsel %vm9634_vm0, %v8026_v9, %v8017_v4  ;;  %vm9636_vm13 = vmmov %vm9634_vm0  ;;  %v9640_v9 = vld [vmem:[#allocation180_spill] sm:$0xff]  ;;  %v1663_v5 = vsel %vm1633_vm15, %v9649_v59, %v9648_v24  ;;  %v9652_v39 = vmul.bf16 %v9651_v53, %v7299_v33  ;;  %v9660_v55 = vld [vmem:[#allocation49_spill] sm:$0xff]  ;;  %v2598_v22 = vmul.bf16 %v9565_v32, %v7299_v33 }
 0xd74   : > { %4854 = vmatpush1.bf16.msra.mxu0 %v1515_v35  ;;  %v8483_v18 = vsel %vm883_vm6, %v2381_v14, %v8445_v17  ;;  %v3597_v34 = vpop.permute.xlu0 %3596  ;;  %vm9638_vm1 = vmmov %vm9634_vm0  ;;  %v4640_v57 = vld [vmem:[%s9647_s29 + $0x10] sm:$0xff]  ;;  %v9675_v53 = vld [vmem:[#allocation53_spill] sm:$0xff] }
 0xd75   : > { %4855 = vmatprep.subr.bf16.mxu0 %v1590_v2  ;;  %2613 = vrot.lane.b32.xlu1 %v2597_v37, %s9572_s6  ;;  %v3603_v46 = vsel %vm9636_vm13, %v3597_v34, %v9635_v11  ;;  %v1589_v27 = vsel %vm9638_vm1, %v9637_v42, %v9632_v48  ;;  %vm9641_vm14 = vmmov %vm9634_vm0  ;;  %v9653_v37 = vld [vmem:[#allocation34_spill] sm:$0xff]  ;;  %v9655_v48 = vld [vmem:[#allocation168_spill] sm:$0xff] }
 0xd76   : > { %4390 = vrot.lane.b32.xlu0 %v4378_v20, %s9367_s14  ;;  %5031 = vmatpush1.bf16.msra.mxu1 %v3600_v36  ;;  %vm9643_vm9 = vmmov %vm9634_vm0  ;;  %v1662_v14 = vsel %vm1633_vm15, %v9653_v37, %v9649_v59  ;;  %v9657_v11 = vld [vmem:[#allocation144_spill] sm:$0xff] }
 0xd77   : > { %5032 = vmatprep.subr.bf16.mxu1 %v3603_v46  ;;  %v1585_v54 = vpop.permute.xlu1 %1584  ;;  %4841 = vmatmul.mubr.bf16.gmra.mrb[8].mxu0 %v5732_v29  ;;  %vm9644_vm5 = vmmov %vm9634_vm0  ;;  %v9654_v29 = vld [vmem:[#allocation148_spill] sm:$0xff]  ;;  %v3747_v46 = vsel %vm9658_vm4, %v8059_v13, %v9657_v11 }
 0xd78   : > { %4856 = vmatpush1.bf16.msra.mxu0 %v1589_v27  ;;  %v3595_v4 = vpop.permute.xlu0 %3594  ;;  %v1592_v7 = vsel %vm9641_vm14, %v1585_v54, %v9640_v9  ;;  %4883 = vmatprep.mubr.bf16.mxu0 %v5735_v56  ;;  %v1591_v45 = vsel %vm9643_vm9, %v9642_v44, %v1585_v54  ;;  %v4309_v20 = vmul.bf16 %v9654_v29, %v7210_v49  ;;  %v9659_v54 = vld [vmem:[#allocation24_spill] sm:$0xff]  ;;  %vm9661_vm8 = vmmov %vm9658_vm4  ;;  %vm9673_vm9 = vcmask 490496  }
 0xd79   : > { %v3602_v0 = vsel %vm9644_vm5, %v3595_v4, %v3597_v34  ;;  %4400 = vrot.lane.b32.xlu1 %v4380_v19, %s9367_s14  ;;  %4857 = vmatprep.subr.bf16.mxu0 %v1592_v7  ;;  %v9656_v34 = vld [vmem:[#allocation58_spill] sm:$0xff]  ;;  %v2521_v27 = vmul.bf16 %v8273_v21, %v7210_v49  ;;  %v9663_v7 = vld [vmem:[#allocation137_spill] sm:$0xff]  ;;  %vm9664_vm2 = vmmov %vm9658_vm4 }
 0xd7a   : > { %2465 = vrot.lane.b32.xlu0 %v2448_v47, %s9393_s13  ;;  %5033 = vmatpush1.bf16.msra.mxu1 %v3602_v0  ;;  %v1737_v47 = vsel %vm9661_vm8, %v9660_v55, %v9659_v54  ;;  %vm9666_vm0 = vmmov %vm9664_vm2  ;;  %v5727_v59 = vld [vmem:[#allocation8 + $0x20] ss:$52 sps:$4 sm:$0xff]   ;;  %v9689_v54 = vld [vmem:[#allocation55_spill] sm:$0xff] }
 0xd7b   : > { %5034 = vmatprep.subr.bf16.mxu1 %v3673_v40  ;;  %v8515_v60 = vpop.permute.xlu1 %4248  ;;  %v9667_v40 = vld [vmem:[#allocation181_spill] sm:$0xff]  ;;  %vm9668_vm13 = vmmov %vm9666_vm0 }
 0xd7c   : > { %4858 = vmatpush1.bf16.msra.mxu0 %v1591_v45  ;;  %v3669_v19 = vpop.permute.xlu0 %3668  ;;  %v9665_v45 = vld [vmem:[#allocation35_spill] sm:$0xff]  ;;  %vm9670_vm1 = vmmov %vm9666_vm0 }
 0xd7d   : > { %4859 = vmatprep.subr.bf16.mxu0 %v1663_v5  ;;  %4644 = vperm.xlu1 %5619, %v4638_v6   ;;  %v3675_v35 = vsel %vm1633_vm15, %v3669_v19, %v9650_v28  ;;  %v1736_v21 = vsel %vm9666_vm0, %v9665_v45, %v9660_v55  ;;  %vm9671_vm14 = vmmov %vm9666_vm0  ;;  %v9672_v5 = vld [vmem:[#allocation150_spill] sm:$0xff]  ;;  %v4382_v28 = vmul.bf16 %v8406_v51, %v7299_v33  ;;  %v9680_v33 = vld [vmem:[#allocation36_spill] sm:$0xff] }
 0xd7e   : > { %4326 = vrot.lane.b32.xlu0 %v9652_v39, %s9137_s19  ;;  %5035 = vmatpush1.bf16.msra.mxu1 %v3672_v38  ;;  %v5736_v38 = vld [vmem:[#allocation8 + $0x8c] ss:$52 sps:$4 sm:$0xff]   ;;  %vm9676_vm5 = vmmov %vm9673_vm9 }
 0xd7f   : > { %5036 = vmatprep.subr.bf16.mxu1 %v3675_v35  ;;  %v1659_v25 = vpop.permute.xlu1 %1658  ;;  %v9674_v35 = vld [vmem:[#allocation92_spill] sm:$0xff] }
 0xd80   : > { %4860 = vmatpush1.bf16.msra.mxu0 %v1662_v14  ;;  %v3667_v26 = vpop.permute.xlu0 %3666  ;;  %v1665_v2 = vsel %vm1633_vm15, %v1659_v25, %v9655_v48  ;;  %v1664_v56 = vsel %vm1633_vm15, %v9656_v34, %v1659_v25  ;;  %v1809_v39 = vsel %vm9676_vm5, %v9675_v53, %v9674_v35  ;;  %v9678_v14 = vld [vmem:[#allocation141_spill] sm:$0xff]  ;;  %v9684_v48 = vld [vmem:[#allocation62_spill] sm:$0xff]  ;;  %v3964_v35 = vsel %vm1333_vm11, %v8137_v8, %v8126_v52  ;;  %v9701_v8 = vld [vmem:[#allocation59_spill] sm:$0xff] }
 0xd81   : > { %v3674_v36 = vsel %vm1633_vm15, %v3667_v26, %v3669_v19  ;;  %4654 = vperm.xlu1 %5619, %v4640_v57   ;;  %4861 = vmatprep.subr.bf16.mxu0 %v1665_v2  ;;  %vm9662_vm15 = vmmov %vm9658_vm4  ;;  %v3819_v19 = vsel %vm9673_vm9, %v8079_v62, %v9672_v5  ;;  %v9695_v5 = vld [vmem:[#allocation57_spill] sm:$0xff]  ;;  %vm9719_vm9 = vcmask 261120  }
 0xd82   : > { %4324 = vrot.lane.b32.xlu0 %v4309_v20, %s9137_s19  ;;  %5037 = vmatpush1.bf16.msra.mxu1 %v3674_v36  ;;  %v3746_v9 = vsel %vm9662_vm15, %v8068_v16, %v8059_v13  ;;  %v9669_v16 = vld [vmem:[#allocation60_spill] sm:$0xff]  ;;  %vm9677_vm4 = vmmov %vm9676_vm5  ;;  %v4381_v20 = vmul.bf16 %v9603_v15, %v7210_v49  ;;  %v9687_v36 = vld [vmem:[#allocation154_spill] sm:$0xff] }
 0xd83   : > { %5038 = vmatprep.subr.bf16.mxu1 %v3747_v46  ;;  %v8546_v42 = vpop.permute.xlu1 %2386  ;;  %v3818_v37 = vsel %vm9677_vm4, %v8088_v10, %v8079_v62  ;;  %vm9679_vm8 = vmmov %vm9677_vm4  ;;  %v9682_v10 = vld [vmem:[#allocation178_spill] sm:$0xff]  ;;  %v3893_v11 = vsel %vm1409_vm12, %v8099_v61, %v9687_v36  ;;  %v9705_v36 = vld [vmem:[#allocation41_spill] sm:$0xff] }
 0xd84   : > { %4862 = vmatpush1.bf16.msra.mxu0 %v1664_v56  ;;  %v3743_v4 = vpop.permute.xlu0 %3742  ;;  %vm9681_vm15 = vmmov %vm9677_vm4  ;;  %v5738_v56 = vld [vmem:[#allocation8 + $0x88] ss:$52 sps:$4 sm:$0xff]   ;;  %v5741_v46 = vld [vmem:[#allocation8 + $0x2c] ss:$52 sps:$4 sm:$0xff]  }
 0xd85   : > { %4863 = vmatprep.subr.bf16.mxu0 %v1737_v47  ;;  %v3749_v44 = vsel %vm9664_vm2, %v3743_v4, %v9663_v7  ;;  %v1808_v51 = vsel %vm9681_vm15, %v9680_v33, %v9675_v53  ;;  %vm9683_vm2 = vmmov %vm9677_vm4  ;;  %v4639_v15 = vld [vmem:[%s9647_s29 + $0x8] sm:$0xff]  ;;  %v9699_v33 = vld [vmem:[#allocation64_spill] sm:$0xff] }
 0xd86   : > { %2537 = vrot.lane.b32.xlu0 %v2521_v27, %s9519_s5  ;;  %5039 = vmatpush1.bf16.msra.mxu1 %v3746_v9  ;;  %vm9685_vm0 = vmmov %vm9683_vm2  ;;  %v9688_v27 = vld [vmem:[#allocation94_spill] sm:$0xff]  ;;  %v9690_v9 = vld [vmem:[#allocation147_spill] sm:$0xff] }
 0xd87   : > { %5040 = vmatprep.subr.bf16.mxu1 %v3749_v44  ;;  %v1733_v0 = vpop.permute.xlu1 %1732  ;;  %v1883_v55 = vsel %vm1409_vm12, %v9689_v54, %v9688_v27  ;;  %v9691_v44 = vld [vmem:[#allocation37_spill] sm:$0xff]  ;;  %v9697_v53 = vld [vmem:[#allocation38_spill] sm:$0xff]  ;;  %v9706_v27 = vld [vmem:[#allocation172_spill] sm:$0xff] }
 0xd88   : > { %4864 = vmatpush1.bf16.msra.mxu0 %v1736_v21  ;;  %v3741_v50 = vpop.permute.xlu0 %3740  ;;  %v1739_v13 = vsel %vm9668_vm13, %v1733_v0, %v9667_v40  ;;  %v1738_v6 = vsel %vm9670_vm1, %v9669_v16, %v1733_v0  ;;  %vm9686_vm13 = vmmov %vm9685_vm0  ;;  %v1882_v45 = vsel %vm1409_vm12, %v9691_v44, %v9689_v54  ;;  %v4641_v0 = vld [vmem:[%s9647_s29 + $0x18] sm:$0xff] }
 0xd89   : > { %v3748_v24 = vsel %vm9671_vm14, %v3741_v50, %v3743_v4  ;;  %4865 = vmatprep.subr.bf16.mxu0 %v1739_v13  ;;  %v3892_v4 = vsel %vm1409_vm12, %v8110_v12, %v8099_v61  ;;  %v9692_v12 = vld [vmem:[#allocation182_spill] sm:$0xff]  ;;  %v9693_v50 = vld [vmem:[#allocation63_spill] sm:$0xff]  ;;  %v9694_v16 = vld [vmem:[#allocation160_spill] sm:$0xff] }
 0xd8a   : > { %2615 = vrot.lane.b32.xlu0 %v2598_v22, %s9572_s6  ;;  %5041 = vmatpush1.bf16.msra.mxu1 %v3748_v24  ;;  %v5733_v44 = vld [vmem:[#allocation8 + $0x8] ss:$52 sps:$4 sm:$0xff]   ;;  %vm9724_vm4 = vmmov %vm9719_vm9 }
 0xd8b   : > { %5063 = vmatprep.subr.bf16.mxu1 %v3819_v19  ;;  %v8573_v32 = vpop.permute.xlu1 %4254  ;;  %v9696_v19 = vld [vmem:[#allocation96_spill] sm:$0xff]  ;;  %vm9729_vm15 = vmmov %vm9724_vm4 }
 0xd8c   : > { %4866 = vmatpush1.bf16.msra.mxu0 %v1738_v6  ;;  %v3815_v57 = vpop.permute.xlu0 %3814  ;;  %v3965_v6 = vsel %vm1333_vm11, %v8126_v52, %v9694_v16 }
 0xd8d   : > { %4867 = vmatprep.subr.bf16.mxu0 %v1809_v39  ;;  %5043 = vmatmul.mubr.bf16.vlgmr.msra.gmra.mrb[4].mxu1 %v5727_v59  ;;  %v3821_v25 = vsel %vm9679_vm8, %v3815_v57, %v9678_v14  ;;  %v1954_v39 = vsel %vm1333_vm11, %v9697_v53, %v9696_v19  ;;  %v9698_v14 = vld [vmem:[#allocation129_spill] sm:$0xff]  ;;  %v9718_v53 = vld [vmem:[#allocation70_spill] sm:$0xff]  ;;  %vm9725_vm8 = vmmov %vm9724_vm4 }
 0xd8e   : > { %4398 = vrot.lane.b32.xlu0 %v4382_v28, %s9367_s14  ;;  %5064 = vmatpush1.bf16.msra.mxu1 %v3818_v37 }
 0xd8f   : > { %5065 = vmatprep.subr.bf16.mxu1 %v3821_v25  ;;  %v1805_v29 = vpop.permute.xlu1 %1804  ;;  %5052 = vmatprep.mubr.bf16.mxu1 %v5736_v38  ;;  %v1955_v38 = vsel %vm1333_vm11, %v9696_v19, %v9695_v5  ;;  %v9716_v5 = vld [vmem:[#allocation84_spill] sm:$0xff] }
 0xd90   : > { %4868 = vmatpush1.bf16.msra.mxu0 %v1808_v51  ;;  %v3813_v62 = vpop.permute.xlu0 %3812  ;;  %v1811_v26 = vsel %vm9683_vm2, %v1805_v29, %v9682_v10  ;;  %v1810_v2 = vsel %vm9685_vm0, %v9684_v48, %v1805_v29  ;;  %v9700_v29 = vld [vmem:[#allocation149_spill] sm:$0xff]  ;;  %vm9731_vm2 = vcmask 244736  }
 0xd91   : > { %v3820_v34 = vsel %vm9686_vm13, %v3813_v62, %v3815_v57  ;;  %4869 = vmatprep.subr.bf16.mxu0 %v1811_v26  ;;  %v9702_v62 = vld [vmem:[#allocation42_spill] sm:$0xff]  ;;  %vm9733_vm0 = vmmov %vm9731_vm2 }
 0xd92   : > { %4396 = vrot.lane.b32.xlu0 %v4381_v20, %s9367_s14  ;;  %5066 = vmatpush1.bf16.msra.mxu1 %v3820_v34  ;;  %v2029_v10 = vsel %vm1259_vm10, %v9702_v62, %v9701_v8  ;;  %v9704_v34 = vld [vmem:[#allocation102_spill] sm:$0xff]  ;;  %vm9734_vm13 = vmmov %vm9733_vm0  ;;  %s5836_s14 = scalar_lea.vmem %s5835_s30, 2048 }
 0xd93   : > { %5067 = vmatprep.subr.bf16.mxu1 %v3893_v11  ;;  %v8600_v49 = vpop.permute.xlu1 %2457  ;;  %v2028_v11 = vsel %vm1259_vm10, %v9705_v36, %v9702_v62  ;;  %p5838_p13 = scmp.lt.s32.totalorder %s5836_s14, %s5830_s28 }
 0xd94   : > { %4870 = vmatpush1.bf16.msra.mxu0 %v1810_v2  ;;  %v3889_v47 = vpop.permute.xlu0 %3888  ;;  %v9703_v2 = vld [vmem:[#allocation153_spill] sm:$0xff] }
 0xd95   : > { %4871 = vmatprep.subr.bf16.mxu0 %v1883_v55  ;;  %v3895_v7 = vsel %vm1409_vm12, %v3889_v47, %v9690_v9  ;;  %5053 = vmatmul.mubr.bf16.gmra.mrb[8].mxu1 %v5738_v56  ;;  %v4039_v56 = vsel %vm1259_vm10, %v9704_v34, %v9703_v2  ;;  %v9707_v55 = vld [vmem:[#allocation44_spill] sm:$0xff]  ;;  %p5839_p3 = por %p5838_p13, %p5837_p10 }
 0xd96   : > { %4649 = vperm.xlu0 %5618, %v4639_v15   ;;  %5068 = vmatpush1.bf16.msra.mxu1 %v3892_v4  ;;  %v9708_v4 = vld [vmem:[#allocation74_spill] sm:$0xff] }
 0xd97   : > { %5069 = vmatprep.subr.bf16.mxu1 %v3895_v7  ;;  %v1879_v21 = vpop.permute.xlu1 %1878  ;;  %5095 = vmatprep.mubr.bf16.mxu1 %v5741_v46  ;;  %p5840_p7 = pnand %p5839_p3, %p5833_p8 }
 0xd98   : > { %4872 = vmatpush1.bf16.msra.mxu0 %v1882_v45  ;;  %v3887_v61 = vpop.permute.xlu0 %3886  ;;  %v1885_v22 = vsel %vm1409_vm12, %v1879_v21, %v9692_v12  ;;  %v1884_v40 = vsel %vm1409_vm12, %v9693_v50, %v1879_v21  ;;  %v9709_v45 = vld [vmem:[#allocation98_spill] sm:$0xff]  ;;  %v9710_v21 = vld [vmem:[#allocation61_spill] sm:$0xff]  ;;  %v5742_v12 = vld [vmem:[#allocation8 + $0x74] ss:$52 sps:$4 sm:$0xff]  }
 0xd99   : > { %v3894_v13 = vsel %vm1409_vm12, %v3887_v61, %v3889_v47  ;;  %4873 = vmatprep.subr.bf16.mxu0 %v1885_v22  ;;  %v4038_v47 = vsel %vm1259_vm10, %v9707_v55, %v9704_v34  ;;  %v9712_v22 = vld [vmem:[#allocation65_spill] sm:$0xff] }
 0xd9a   : > { %4659 = vperm.xlu0 %5618, %v4641_v0   ;;  %5070 = vmatpush1.bf16.msra.mxu1 %v3894_v13 }
 0xd9b   : > { %5071 = vmatprep.subr.bf16.mxu1 %v3965_v6  ;;  %v2456_v24 = vpop.permute.xlu1 %2455  ;;  %v9715_v6 = vld [vmem:[#allocation157_spill] sm:$0xff] }
 0xd9c   : > { %4874 = vmatpush1.bf16.msra.mxu0 %v1884_v40  ;;  %v8629_v59 = vsel %vm2467_vm3, %v2456_v24, %v8600_v49  ;;  %v2097_v28 = vpop.permute.xlu0 %2096 }
 0xd9d   : > { %4875 = vmatprep.subr.bf16.mxu0 %v1955_v38 }
 0xd9e   : > { %5072 = vmatpush1.bf16.msra.mxu1 %v3964_v35  ;;  %v5744_v35 = vld [vmem:[#allocation8 + $0x70] ss:$52 sps:$4 sm:$0xff]  }
 0xd9f   : > { %v1951_v57 = vpop.permute.xlu1 %1950 }
 0xda0   : > { %4876 = vmatpush1.bf16.msra.mxu0 %v1954_v39  ;;  %v3961_v37 = vpop.permute.xlu0 %3960  ;;  %v1957_v25 = vsel %vm1333_vm11, %v1951_v57, %v9698_v14  ;;  %v1956_v51 = vsel %vm1333_vm11, %v9699_v33, %v1951_v57  ;;  %v2175_v39 = vsel %vm9719_vm9, %v8152_v31, %v9718_v53  ;;  %v9721_v33 = vld [vmem:[#allocation86_spill] sm:$0xff]  ;;  %vm9741_vm9 = vmmov %vm9724_vm4  ;;  %v9746_v53 = vld [vmem:[#allocation167_spill] sm:$0xff] }
 0xda1   : > { %4877 = vmatprep.subr.bf16.mxu0 %v1957_v25  ;;  %v3967_v20 = vsel %vm1333_vm11, %v3961_v37, %v9700_v29  ;;  %v9720_v25 = vld [vmem:[#allocation161_spill] sm:$0xff] }
 0xda2   : > { %5073 = vmatprep.subr.bf16.mxu1 %v3967_v20 }
 0xda3   : > { %v8646_v52 = vpop.permute.xlu1 %4322 }
 0xda4   : > { %4878 = vmatpush1.bf16.msra.mxu0 %v1956_v51  ;;  %v3959_v26 = vpop.permute.xlu0 %3958 }
 0xda5   : > { %4879 = vmatprep.subr.bf16.mxu0 %v2029_v10  ;;  %v3966_v48 = vsel %vm1333_vm11, %v3959_v26, %v3961_v37  ;;  %vm9711_vm11 = vcmask 277504   ;;  %v5750_v37 = vld [vmem:[#allocation8 + $0x14] ss:$52 sps:$4 sm:$0xff]  }
 0xda6   : > { %5074 = vmatpush1.bf16.msra.mxu1 %v3966_v48  ;;  %v2101_v0 = vsel %vm9711_vm11, %v9710_v21, %v9709_v45  ;;  %vm9713_vm12 = vmmov %vm9711_vm11  ;;  %v9726_v10 = vld [vmem:[#allocation72_spill] sm:$0xff]  ;;  %v9728_v48 = vld [vmem:[#allocation155_spill] sm:$0xff] }
 0xda7   : > { %5075 = vmatprep.subr.bf16.mxu1 %v4039_v56  ;;  %v2025_v15 = vpop.permute.xlu1 %2024  ;;  %v2100_v50 = vsel %vm9713_vm12, %v9712_v22, %v9710_v21  ;;  %vm9714_vm1 = vmmov %vm9711_vm11 }
 0xda8   : > { %4880 = vmatpush1.bf16.msra.mxu0 %v2028_v11  ;;  %v8658_v46 = vpop.permute.xlu0 %2533  ;;  %v2031_v54 = vsel %vm1259_vm10, %v2025_v15, %v9706_v27  ;;  %v2030_v9 = vsel %vm1259_vm10, %v9708_v4, %v2025_v15  ;;  %vm9717_vm14 = vmmov %vm9714_vm1  ;;  %v9732_v11 = vld [vmem:[#allocation159_spill] sm:$0xff] }
 0xda9   : > { %4881 = vmatprep.subr.bf16.mxu0 %v2031_v54  ;;  %v2102_v19 = vsel %vm9717_vm14, %v9716_v5, %v2097_v28  ;;  %vm9722_vm5 = vmmov %vm9714_vm1  ;;  %v2246_v15 = vsel %vm9733_vm0, %v9732_v11, %v8163_v23 }
 0xdaa   : > { %5076 = vmatpush1.bf16.msra.mxu1 %v4038_v47  ;;  %v4111_v51 = vsel %vm9722_vm5, %v9721_v33, %v9720_v25  ;;  %vm9735_vm11 = vmmov %vm9733_vm0 }
 0xdab   : > { %v8667_v7 = vpop.permute.xlu1 %2461  ;;  %vm9736_vm12 = vmmov %vm9714_vm1 }
 0xdac   : > { %4882 = vmatpush1.bf16.msra.mxu0 %v2030_v9  ;;  %v2173_v61 = vpop.permute.xlu0 %2172  ;;  %vm9739_vm14 = vmmov %vm9724_vm4 }
 0xdad   : > { %4904 = vmatprep.subr.bf16.mxu0 %v2101_v0  ;;  %v9738_v0 = vld [vmem:[#allocation116_spill] sm:$0xff]  ;;  %vm9743_vm5 = vmmov %vm9724_vm4 }
 0xdaf   : > { %4884 = vmatmul.mubr.bf16.vlgmr.msra.gmra.mrb[4].mxu0 %v5733_v44  ;;  %v2099_v40 = vpop.permute.xlu1 %2098  ;;  %v9737_v44 = vld [vmem:[#allocation111_spill] sm:$0xff] }
 0xdb0   : > { %4905 = vmatpush1.bf16.msra.mxu0 %v2100_v50  ;;  %v4035_v13 = vpop.permute.xlu0 %4034  ;;  %v2103_v16 = vsel %vm9714_vm1, %v2097_v28, %v2099_v40  ;;  %4893 = vmatprep.mubr.bf16.mxu0 %v5742_v12  ;;  %v9723_v28 = vld [vmem:[#allocation151_spill] sm:$0xff] }
 0xdb1   : > { %4906 = vmatprep.subr.bf16.mxu0 %v2103_v16  ;;  %v4041_v24 = vsel %vm1259_vm10, %v4035_v13, %v9715_v6  ;;  %v2174_v29 = vsel %vm9724_vm4, %v9723_v28, %v8152_v31  ;;  %v9730_v31 = vld [vmem:[#allocation107_spill] sm:$0xff] }
 0xdb2   : > { %5077 = vmatprep.subr.bf16.mxu1 %v4041_v24  ;;  %v2247_v56 = vsel %vm9731_vm2, %v8163_v23, %v9730_v31  ;;  %v2321_v23 = vsel %vm959_vm7, %v8255_v58, %v9737_v44  ;;  %vm9750_vm2 = vmmov %vm9733_vm0 }
 0xdb3   : > { %v8680_v38 = vpop.permute.xlu1 %4328 }
 0xdb4   : > { %4907 = vmatpush1.bf16.msra.mxu0 %v2102_v19  ;;  %v4033_v57 = vpop.permute.xlu0 %4032  ;;  %v9744_v19 = vld [vmem:[#allocation166_spill] sm:$0xff] }
 0xdb5   : > { %4908 = vmatprep.subr.bf16.mxu0 %v2175_v39  ;;  %v4040_v14 = vsel %vm1259_vm10, %v4033_v57, %v4035_v13  ;;  %vm9727_vm10 = vmmov %vm9714_vm1 }
 0xdb6   : > { %5078 = vmatpush1.bf16.msra.mxu1 %v4040_v14  ;;  %v4110_v26 = vsel %vm9727_vm10, %v9726_v10, %v9721_v33  ;;  %vm9747_vm10 = vmmov %vm9733_vm0  ;;  %v9748_v14 = vld [vmem:[#allocation169_spill] sm:$0xff]  ;;  %v9752_v10 = vld [vmem:[#allocation171_spill] sm:$0xff] }
 0xdb7   : > { %5079 = vmatprep.subr.bf16.mxu1 %v4111_v51  ;;  %v2171_v20 = vpop.permute.xlu1 %2170  ;;  %4894 = vmatmul.mubr.bf16.gmra.mrb[8].mxu0 %v5744_v35  ;;  %v4256_v39 = vsel %vm9747_vm10, %v9746_v53, %v9744_v19 }
 0xdb8   : > { %4909 = vmatpush1.bf16.msra.mxu0 %v2174_v29  ;;  %v8692_v8 = vpop.permute.xlu0 %2535  ;;  %v2177_v62 = vsel %vm9725_vm8, %v2171_v20, %v2173_v61  ;;  %4936 = vmatprep.mubr.bf16.mxu0 %v5750_v37  ;;  %v2176_v2 = vsel %vm9729_vm15, %v9728_v48, %v2171_v20  ;;  %v9740_v61 = vld [vmem:[#allocation162_spill] sm:$0xff]  ;;  %vm9745_vm8 = vmmov %vm9733_vm0 }
 0xdb9   : > { %4910 = vmatprep.subr.bf16.mxu0 %v2177_v62  ;;  %v4184_v12 = vsel %vm9741_vm9, %v9740_v61, %v9738_v0  ;;  %v4257_v35 = vsel %vm9745_vm8, %v9744_v19, %v8515_v60  ;;  %v2469_v60 = vsel %vm2467_vm3, %v8600_v49, %v9748_v14  ;;  %vm9749_vm15 = vmmov %vm9733_vm0  ;;  %vm9753_vm0 = vcmask 31744  }
 0xdba   : > { %5080 = vmatpush1.bf16.msra.mxu1 %v4110_v26  ;;  %vm9762_vm9 = vmmov %vm9724_vm4 }
 0xdbb   : > { %v8700_v34 = vpop.permute.xlu1 %2531 }
 0xdbc   : > { %4911 = vmatpush1.bf16.msra.mxu0 %v2176_v2  ;;  %v2245_v36 = vpop.permute.xlu0 %2244 }
 0xdbd   : > { %4912 = vmatprep.subr.bf16.mxu0 %v2247_v56 }
 0xdbf   : > { %v2243_v27 = vpop.permute.xlu1 %2242 }
 0xdc0   : > { %4913 = vmatpush1.bf16.msra.mxu0 %v2246_v15  ;;  %v4107_v54 = vpop.permute.xlu0 %4106  ;;  %v2249_v55 = vsel %vm9734_vm13, %v2243_v27, %v2245_v36  ;;  %v2248_v47 = vsel %vm9735_vm11, %v8191_v63, %v2243_v27  ;;  %v4185_v63 = vsel %vm9739_vm14, %v9738_v0, %v8328_v1  ;;  %v9742_v1 = vld [vmem:[#allocation165_spill] sm:$0xff]  ;;  %vm9754_vm13 = vmmov %vm9753_vm0 }
 0xdc1   : > { %4914 = vmatprep.subr.bf16.mxu0 %v2249_v55  ;;  %v4113_v4 = vsel %vm9736_vm12, %v4107_v54, %v8225_v30  ;;  %v5739_v27 = vld [vmem:[#allocation8 + $0x28] ss:$52 sps:$4 sm:$0xff]   ;;  %vm9756_vm11 = vmmov %vm9753_vm0 }
 0xdc2   : > { %5081 = vmatprep.subr.bf16.mxu1 %v4113_v4 }
 0xdc3   : > { %v8713_v9 = vpop.permute.xlu1 %2529 }
 0xdc4   : > { %4915 = vmatpush1.bf16.msra.mxu0 %v2248_v47  ;;  %v4105_v45 = vpop.permute.xlu0 %4104  ;;  %v2542_v36 = vsel %vm9754_vm13, %v8713_v9, %v8700_v34 }
 0xdc5   : > { %4916 = vmatprep.subr.bf16.mxu0 %v2321_v23  ;;  %v4112_v21 = vsel %vm9714_vm1, %v4105_v45, %v4107_v54  ;;  %v5747_v23 = vld [vmem:[#allocation8 + $0x90] ss:$52 sps:$4 sm:$0xff]  }
 0xdc6   : > { %5082 = vmatpush1.bf16.msra.mxu1 %v4112_v21 }
 0xdc7   : > { %5083 = vmatprep.subr.bf16.mxu1 %v4185_v63  ;;  %v2317_v22 = vpop.permute.xlu1 %2316 }
 0xdc8   : > { %4917 = vmatpush1.bf16.msra.mxu0 %v8298_v41  ;;  %v8723_v30 = vpop.permute.xlu0 %2609  ;;  %v2322_v40 = vsel %vm959_vm7, %v8367_v3, %v2317_v22  ;;  %v2393_v41 = vsel %vm883_vm6, %v8445_v17, %v9742_v1  ;;  %v5754_v1 = vld [vmem:[#allocation8 + $0x78] ss:$52 sps:$4 sm:$0xff]  }
 0xdca   : > { %5084 = vmatpush1.bf16.msra.mxu1 %v4184_v12  ;;  %v9761_v12 = vmov 0  }
 0xdcb   : > { %v8734_v13 = vpop.permute.xlu1 %2607 }
 0xdcc   : > { %v2319_v58 = vpop.permute.xlu0 %2318 }
 0xdcd   : > { %v2323_v50 = vsel %vm959_vm7, %v2317_v22, %v2319_v58  ;;  %v5752_v22 = vld [vmem:[#allocation8 + $0x7c] ss:$52 sps:$4 sm:$0xff]  }
 0xdce   : > { %4918 = vmatprep.subr.bf16.mxu0 %v2323_v50 }
 0xdcf   : > { %4919 = vmatpush1.bf16.msra.mxu0 %v2322_v40  ;;  %v2389_v3 = vpop.permute.xlu1 %2388  ;;  %v5751_v40 = vld [vmem:[#allocation8 + $0x30] ss:$52 sps:$4 sm:$0xff]  }
 0xdd0   : > { %4920 = vmatprep.subr.bf16.mxu0 %v2393_v41  ;;  %v4181_v16 = vpop.permute.xlu0 %4180  ;;  %v2394_v37 = vsel %vm883_vm6, %v8546_v42, %v2389_v3  ;;  %v9751_v42 = vld [vmem:[#allocation127_spill] sm:$0xff] }
 0xdd1   : > { %v4187_v6 = vsel %vm9743_vm5, %v4181_v16, %v8408_v43  ;;  %v4331_v20 = vsel %vm959_vm7, %v9751_v42, %v8646_v52  ;;  %v4330_v26 = vsel %vm959_vm7, %v9752_v10, %v9751_v42  ;;  %v2543_v52 = vsel %vm9753_vm0, %v8700_v34, %v8658_v46  ;;  %v5745_v46 = vld [vmem:[#allocation8 + $0x94] ss:$52 sps:$4 sm:$0xff]   ;;  %v5755_v41 = vld [vmem:[#allocation8 + $0x98] ss:$52 sps:$4 sm:$0xff]   ;;  %vm9763_vm5 = vmmov %vm9724_vm4 }
 0xdd2   : > { %5085 = vmatprep.subr.bf16.mxu1 %v4187_v6 }
 0xdd3   : > { %4921 = vmatpush1.bf16.msra.mxu0 %v8483_v18  ;;  %v2606_v43 = vpop.permute.xlu1 %2605 }
 0xdd4   : > { %v4179_v24 = vpop.permute.xlu0 %4178 }
 0xdd5   : > { %v4186_v5 = vsel %vm9724_vm4, %v4179_v24, %v4181_v16 }
 0xdd6   : > { %5086 = vmatpush1.bf16.msra.mxu1 %v4186_v5 }
 0xdd7   : > { %5087 = vmatprep.subr.bf16.mxu1 %v4257_v35  ;;  %v2464_v51 = vpop.permute.xlu1 %2463 }
 0xdd8   : > { %v4393_v17 = vpop.permute.xlu0 %4392 }
 0xdda   : > { %5088 = vmatpush1.bf16.msra.mxu1 %v4256_v39 }
 0xddb   : > { %v4395_v62 = vpop.permute.xlu1 %4394 }
 0xddc   : > { %v2391_v57 = vpop.permute.xlu0 %2390  ;;  %v4403_v54 = vsel %vm883_vm6, %v4393_v17, %v4395_v62 }
 0xddd   : > { %v2395_v18 = vsel %vm883_vm6, %v2389_v3, %v2391_v57 }
 0xdde   : > { %4922 = vmatprep.subr.bf16.mxu0 %v2395_v18 }
 0xddf   : > { %4923 = vmatpush1.bf16.msra.mxu0 %v2394_v37  ;;  %v2540_v2 = vpop.permute.xlu1 %2539 }
 0xde0   : > { %4924 = vmatprep.subr.bf16.mxu0 %v2469_v60  ;;  %v4253_v25 = vpop.permute.xlu0 %4252 }
 0xde1   : > { %v4259_v33 = vsel %vm9749_vm15, %v4253_v25, %v8573_v32 }
 0xde2   : > { %5089 = vmatprep.subr.bf16.mxu1 %v4259_v33 }
 0xde3   : > { %4925 = vmatpush1.bf16.msra.mxu0 %v8629_v59  ;;  %v2470_v59 = vsel %vm2467_vm3, %v8667_v7, %v2464_v51  ;;  %v2612_v11 = vpop.permute.xlu1 %2611 }
 0xde4   : > { %v4251_v28 = vpop.permute.xlu0 %4250 }
 0xde5   : > { %v4258_v29 = vsel %vm9750_vm2, %v4251_v28, %v4253_v25 }
 0xde6   : > { %5090 = vmatpush1.bf16.msra.mxu1 %v4258_v29 }
 0xde7   : > { %5091 = vmatprep.subr.bf16.mxu1 %v4331_v20  ;;  %v2614_v4 = vpop.permute.xlu1 %2613 }
 0xde8   : > { %v4391_v49 = vpop.permute.xlu0 %4390 }
 0xde9   : > { %v4402_v47 = vsel %vm883_vm6, %v4391_v49, %v4393_v17 }
 0xdea   : > { %5092 = vmatpush1.bf16.msra.mxu1 %v4330_v26 }
 0xdeb   : > { %v4401_v21 = vpop.permute.xlu1 %4400 }
 0xdec   : > { %v2466_v32 = vpop.permute.xlu0 %2465 }
 0xded   : > { %v2471_v48 = vsel %vm2467_vm3, %v2464_v51, %v2466_v32  ;;  %vm9755_vm3 = vmmov %vm9753_vm0 }
 0xdee   : > { %4926 = vmatprep.subr.bf16.mxu0 %v2471_v48 }
 0xdef   : > { %4927 = vmatpush1.bf16.msra.mxu0 %v2470_v59 }
 0xdf0   : > { %4928 = vmatprep.subr.bf16.mxu0 %v2543_v52  ;;  %v4327_v31 = vpop.permute.xlu0 %4326 }
 0xdf1   : > { %v4333_v56 = vsel %vm959_vm7, %v4327_v31, %v8680_v38 }
 0xdf2   : > { %5093 = vmatprep.subr.bf16.mxu1 %v4333_v56 }
 0xdf3   : > { %4929 = vmatpush1.bf16.msra.mxu0 %v2542_v36 }
 0xdf4   : > { %v4325_v7 = vpop.permute.xlu0 %4324 }
 0xdf5   : > { %v4332_v15 = vsel %vm959_vm7, %v4325_v7, %v4327_v31  ;;  %vm9757_vm7 = vcmask 15360  }
 0xdf6   : > { %5094 = vmatpush1.bf16.msra.mxu1 %v4332_v15  ;;  %v2619_v9 = vsel %vm9757_vm7, %v8734_v13, %v8723_v30  ;;  %vm9758_vm12 = vmmov %vm9757_vm7  ;;  %v5748_v30 = vld [vmem:[#allocation8 + $0x10] ss:$52 sps:$4 sm:$0xff]  }
 0xdf7   : > { %5116 = vmatprep.subr.bf16.mxu1 %v4403_v54  ;;  %v2618_v45 = vsel %vm9758_vm12, %v2606_v43, %v8734_v13  ;;  %vm9759_vm1 = vmmov %vm9757_vm7 }
 0xdf8   : > { %v2538_v55 = vpop.permute.xlu0 %2537  ;;  %vm9760_vm14 = vmmov %vm9759_vm1 }
 0xdf9   : > { %v2544_v38 = vsel %vm9755_vm3, %v8692_v8, %v2538_v55  ;;  %5096 = vmatmul.mubr.bf16.vlgmr.msra.gmra.mrb[4].mxu1 %v5739_v27  ;;  %v2545_v34 = vsel %vm9756_vm11, %v2538_v55, %v2540_v2  ;;  %v2620_v61 = vsel %vm9760_vm14, %v2612_v11, %v2614_v4 }
 0xdfa   : > { %4930 = vmatprep.subr.bf16.mxu0 %v2545_v34  ;;  %5117 = vmatpush1.bf16.msra.mxu1 %v4402_v47 }
 0xdfb   : > { %4931 = vmatpush1.bf16.msra.mxu0 %v2544_v38  ;;  %5105 = vmatprep.mubr.bf16.mxu1 %v5745_v46 }
 0xdfc   : > { %4932 = vmatprep.subr.bf16.mxu0 %v2619_v9  ;;  %v2616_v44 = vpop.permute.xlu0 %2615  ;;  %v4645_v13 = vpop.permute.xlu1 %4644 }
 0xdfd   : > { %v2621_v8 = vsel %vm9759_vm1, %v2614_v4, %v2616_v44 }
 0xdff   : > { %4933 = vmatpush1.bf16.msra.mxu0 %v2618_v45 }
 0xe00   : > { %4934 = vmatprep.subr.bf16.mxu0 %v2621_v8  ;;  %v4399_v0 = vpop.permute.xlu0 %4398  ;;  %v4655_v33 = vpop.permute.xlu1 %4654 }
 0xe01   : > { %5106 = vmatmul.mubr.bf16.gmra.mrb[8].mxu1 %v5747_v23  ;;  %v4405_v63 = vsel %vm883_vm6, %v4399_v0, %v4401_v21 }
 0xe02   : > { %5118 = vmatprep.subr.bf16.mxu1 %v4405_v63  ;;  %5148 = vmatprep.mubr.bf16.mxu1 %v9761_v12 }
 0xe03   : > { %4935 = vmatpush1.bf16.msra.mxu0 %v2620_v61 }
 0xe04   : > { %v4397_v58 = vpop.permute.xlu0 %4396 }
 0xe05   : > { %v4404_v50 = vsel %vm883_vm6, %v4397_v58, %v4399_v0 }
 0xe06   : > { %4937 = vmatmul.mubr.bf16.vlgmr.msra.gmra.mrb[4].mxu0 %v5748_v30  ;;  %5119 = vmatpush1.bf16.msra.mxu1 %v4404_v50 }
 0xe07   : > { %4946 = vmatprep.mubr.bf16.mxu0 %v5752_v22 }
 0xe09   : > { %5416 = vmatmul.mubr.msk.bf16.vlgmr.msra.gmra.mrb[4].mxu1 %vm9762_vm9, %v5751_v40 }
 0xe0a   : > { %5158 = vmatprep.mubr.bf16.mxu1 %v9761_v12 }
 0xe0e   : > { %4947 = vmatmul.mubr.bf16.gmra.mrb[8].mxu0 %v5754_v1 }
 0xe11   : > { %5417 = vmatmul.mubr.msk.bf16.gmra.mrb[8].mxu1 %vm9763_vm5, %v5755_v41 }
 0xe15   : > { %v4650_v5 = vpop.permute.xlu0 %4649 }
 0xe19   : > { %v4660_v42 = vpop.permute.xlu0 %4659 }
 0xed9   : > { %v4938_v16 = vpop.f32.mrb[4].mxu0 }
 0xeda   : > { %v5468_v6 = vadd.f32 %v4938_v16, %v4645_v13  ;;  %v4940_v24 = vpop.f32.mrb[5].mxu0 }
 0xedb   : > { %v5470_v3 = vadd.f32 %v4940_v24, %v4645_v13  ;;  %v4942_v19 = vpop.f32.mrb[6].mxu0 }
 0xedc   : > { %v5472_v35 = vadd.f32 %v4942_v19, %v4650_v5  ;;  %v4944_v17 = vpop.f32.mrb[7].mxu0  ;;  %v5150_v53 = vpop.f32.mrb[4].mxu1 }
 0xedd   : > { %v5474_v39 = vadd.f32 %v4944_v17, %v4650_v5  ;;  %v5469_v43 = vadd.f32 %v5468_v6, %v5150_v53  ;;  %v5152_v57 = vpop.f32.mrb[5].mxu1 }
 0xede   : > { %v5471_v18 = vadd.f32 %v5470_v3, %v5152_v57  ;;  %v5154_v37 = vpop.f32.mrb[6].mxu1 }
 0xedf   : > { %5169 = vst [vmem:[%s8794_s18] sm:$0xff] %v5469_v43  ;;  %v5473_v14 = vadd.f32 %v5472_v35, %v5154_v37  ;;  %v5156_v60 = vpop.f32.mrb[7].mxu1 }
 0xee0   : > { %5170 = vst [vmem:[%s8794_s18 + $0x8] sm:$0xff] %v5471_v18  ;;  %v5475_v25 = vadd.f32 %v5474_v39, %v5156_v60 }
 0xee1   : > { %5171 = vst [vmem:[%s8794_s18 + $0x10] sm:$0xff] %v5473_v14  ;;  %v4948_v51 = vpop.f32.mrb[8].mxu0 }
 0xee2   : > { %5172 = vst [vmem:[%s8794_s18 + $0x18] sm:$0xff] %v5475_v25  ;;  %v5476_v28 = vadd.f32 %v4948_v51, %v4655_v33  ;;  %v4950_v29 = vpop.f32.mrb[9].mxu0 }
 0xee3   : > { %v5478_v20 = vadd.f32 %v4950_v29, %v4655_v33  ;;  %v4952_v62 = vpop.f32.mrb[10].mxu0 }
 0xee4   : > { %v5480_v49 = vadd.f32 %v4952_v62, %v4660_v42  ;;  %v4954_v10 = vpop.f32.mrb[11].mxu0  ;;  %v5160_v26 = vpop.f32.mrb[8].mxu1 }
 0xee5   : > { %v5482_v32 = vadd.f32 %v4954_v10, %v4660_v42  ;;  %v5477_v48 = vadd.f32 %v5476_v28, %v5160_v26  ;;  %v5162_v59 = vpop.f32.mrb[9].mxu1 }
 0xee6   : > { %v5479_v2 = vadd.f32 %v5478_v20, %v5162_v59  ;;  %v5164_v52 = vpop.f32.mrb[10].mxu1 }
 0xee7   : > { %5173 = vst [vmem:[%s8794_s18 + $0x20] sm:$0xff] %v5477_v48  ;;  %v5481_v31 = vadd.f32 %v5480_v49, %v5164_v52  ;;  %v5166_v56 = vpop.f32.mrb[11].mxu1 }
 0xee8   : > { %5174 = vst [vmem:[%s8794_s18 + $0x28] sm:$0xff] %v5479_v2  ;;  %v5483_v36 = vadd.f32 %v5482_v32, %v5166_v56 }
 0xee9   : > { %5175 = vst [vmem:[%s8794_s18 + $0x30] sm:$0xff] %v5481_v31 }
 0xeea   : > { %5176 = vst [vmem:[%s8794_s18 + $0x38] sm:$0xff] %v5483_v36 }
 0xeeb   : > { %5843 = shalt.err (!%p5840_p7)
}
 0xeec   : > { %s5844_s13 = scalar_lea.hbm %s8808_s3, 1024  ;;  %s5848_s12 = scalar_lea.hbm %s9769_s22, 2048 }
 0xeed   : > { %p5845_p9 = scmp.ne.s32.totalorder %s8808_s3, %s5844_s13  ;;  %p5849_p5 = scmp.lt.u32.totalorder %s8808_s3, %s9769_s22 }
 0xeee   : > { %p5850_p11 = scmp.lt.u32.totalorder %s5848_s12, %s5844_s13  ;;  %p5852_p4 = scmp.lt.u32.totalorder %s5844_s13, %s8808_s3 }
 0xeef   : > { %p5846_p2 = pnand %p5845_p9, %p6101_p12 }
 0xef0   : > { %p5851_p1 = por %p5850_p11, %p5849_p5 }
 0xef1   : > { %p5847_p0 = pneg %p5846_p2 }
 0xef2   : > { %p5853_p6 = por %p5852_p4, %p5851_p1 }
 0xef4   : > { %p5854_p8 = pnand %p5853_p6, %p5847_p0 }
 0xef6   : > { %5857 = shalt.err (!%p5854_p8)
}
 0xef7   : > { %s5940_s21 = smov 256   ;;  %s5941_s19 = smov 16  }
 0xef8   : > { %5530 = dma.vmem_to_hbm [thread:$0]  (%p6101_p12), %s8802_s7, 1024, %s8808_s3, %s5178_s16, %s5940_s21, %s5940_s21, %s5941_s19  }
 0xef9 PF: > { %s9770_s17 = sld [smem:[#allocation14_spill]]  ;;  %s9771_s0 = sld [smem:[#allocation19_spill]] }
 0xefa   : > { %s9772_s20 = sld [smem:[#allocation17_spill]] }
 0xeff   : > { %s5206_s4 = sand.u32 1, %s9770_s17   ;;  %p9773_p10 = scmp.ne.s32.totalorder %s9771_s0, 0 }
 0xf00   : > { %p9774_p13 = scmp.ge.s32.totalorder %s9772_s20, 2  ;;  %s5207_s18 = scalar_lea.sflag [#allocation7], %s5206_s4 }
 0xf02   : > { %p5541_p3 = pnand %p9774_p13, %p9773_p10 }
 0xf04   : > { %5883 = dma.done.wait (!%p5541_p3), %s5207_s18, 1024  }
 0xf05   : > { %5885 = vsyncadd (!%p5541_p3), %s5207_s18, 4294966272  ;;  %s9775_s26 = sld [smem:[#allocation20_spill]]  ;;  %s9776_s23 = sld [smem:[#allocation15_spill]] }
 0xf06   : > { %s9777_s24 = sld [smem:[#allocation16_spill]]  ;;  %s9778_s25 = sld [smem:[#allocation21_spill]] }
 0xf0b   : > { %p28_p7 = scmp.ge.s32.totalorder %s9775_s26, 4  }
 0xf0d   :  { %30 = sbr.rel (!%p28_p7) target bundleno = 17 (0x11), region = 117 }
 0xf14   :  { %5212 = vsyncpa [#allocation6], 1 }
 0xf15   :  { %5214 = vsyncpa [#allocation6 + $0x1], 1 }
 0xf16   :  { %5215 = vsyncpa [#allocation9], 1 }
 0xf17   :  { %5216 = vsyncpa [#allocation7], 1 }
 0xf18   :  { %5218 = vsyncpa [#allocation7 + $0x1], 1 }

</bundles_post_ra>
